<compile_context>
chip_gen: v5e
topology: v5e:2x2
jax: 0.10.0
libtpu: 0.0.40
codegen_flags: <defaults>
</compile_context>

<pallas_src>
import functools

import jax
import jax.numpy as jnp
from jax.experimental import pallas as pl
from jax.experimental.pallas import tpu as pltpu


def _round_up(x, m):
    return (x + m - 1) // m * m


def _device_info():
    """Returns (vmem_capacity_bytes, has_two_tensorcores) with safe fallbacks."""
    vmem_cap = 64 << 20                      # conservative default (v7x per-TC VMEM)
    try:
        vmem_cap = int(pltpu.get_tpu_info().vmem_capacity_bytes)
    except Exception:
        pass
    two_tc = False
    try:
        two_tc = "v7" in jax.devices()[0].device_kind.lower()
    except Exception:
        pass
    return vmem_cap, two_tc


def _vmem_need_bytes(T, Bt, Hp):
    """One copy of each buffer; double-buffering applied only where it actually happens."""
    gi_blk = T * Bt * 3 * Hp * 2             # bf16 GI chunk
    out_blk = T * Bt * Hp * 4                # f32 output chunk
    invariant = Hp * 3 * Hp * 2 + 2 * Bt * Hp * 4 + 8 * Hp * 4   # wh + (h0, mh) + bhn
    scratch = Bt * Hp * 4
    return 2 * (gi_blk + out_blk) + invariant + scratch


def _pick_time_chunk(seq_len, t_max):
    """Largest-ish chunk <= t_max that minimizes trailing time-axis padding."""
    if seq_len <= t_max:
        return max(seq_len, 1)
    best_t, best_pad = t_max, (-seq_len) % t_max
    for t in range(t_max, max(t_max // 2, 1) - 1, -1):
        pad = (-seq_len) % t
        if pad < best_pad:
            best_t, best_pad = t, pad
            if pad == 0:
                break
    return best_t


def gru_dropout_kernel(gi_ref, h0_ref, mh_ref, wh_ref, bhn_ref, out_ref, h_scr):
    """One grid step == T timesteps of the GRU-with-variational-dropout recurrence.

    gi_ref:  (T, Bt, 3*Hp) bf16  precomputed input projection (+ fused r/z biases)
    h0_ref:  (Bt, Hp)      f32   initial hidden state (read only at time-chunk 0)
    mh_ref:  (Bt, Hp)      f32   scaled hidden dropout multiplier: keep -> 1/(1-p), drop -> 0
    wh_ref:  (Hp, 3*Hp)    bf16  fused hidden->gates weights, gate order (r, z, n)
    bhn_ref: (1, Hp)       f32   hidden bias of the n gate (must be scaled by r)
    out_ref: (T, Bt, Hp)   f32   per-timestep hidden outputs
    h_scr:   (Bt, Hp)      f32   hidden-state carry across grid steps
    """
    T, Bt, Hp = out_ref.shape

    @pl.when(pl.program_id(1) == 0)
    def _():
        h_scr[...] = h0_ref[...]

    # Grid-invariant operands, loaded once per chunk.
    mh = mh_ref[...]
    wh = wh_ref[...]
    # Hoist the (1,Hp)->(Bt,Hp) broadcast out of the unrolled loop (JAX does not CSE it).
    bhn = jnp.broadcast_to(bhn_ref[...], (Bt, Hp))

    def step(k, h):
        h_drop = h * mh                                        # variational dropout
        gh = jnp.dot(h_drop.astype(jnp.bfloat16), wh,          # single fused MXU matmul
                     preferred_element_type=jnp.float32)       # (Bt, 3*Hp) f32 accum
        gi = gi_ref[k].astype(jnp.float32)                     # bf16 HBM stream -> f32
        r = jax.nn.sigmoid(gi[:, :Hp] + gh[:, :Hp])
        z = jax.nn.sigmoid(gi[:, Hp:2 * Hp] + gh[:, Hp:2 * Hp])
        n = jnp.tanh(gi[:, 2 * Hp:] + r * (gh[:, 2 * Hp:] + bhn))
        h_new = n + z * (h_drop - n)                           # == (1-z)*n + z*h_drop
        out_ref[k] = h_new
        return h_new

    # vreg-pressure-aware unroll: gi + gh keep ~2*Bt*3*Hp f32 live per iteration.
    live_bytes = 2 * Bt * 3 * Hp * 4
    unroll = True if live_bytes <= 96 * 1024 else min(4, T)
    h_scr[...] = jax.lax.fori_loop(0, T, step, h_scr[...], unroll=unroll)


@functools.partial(
    jax.jit, static_argnames=("p_dropout", "T", "Bt", "vmem_limit", "single_buffer"))
def _forward_impl(x, h0, drop_mask_x, drop_mask_h, w_ih, w_hh, b_ih, b_hh, *,
                  p_dropout, T, Bt, vmem_limit, single_buffer):
    S, B, D = x.shape
    H = h0.shape[-1]
    f32 = jnp.float32
    bf16 = jnp.bfloat16

    Bp = _round_up(B, 8)
    Hp = _round_up(H, 128)
    Sp = _round_up(S, T)

    scale = 1.0 / (1.0 - p_dropout)
    mx = (1.0 - drop_mask_x.astype(f32)) * scale                   # (B, D)
    mh = (1.0 - drop_mask_h.astype(f32)) * scale                   # (B, H)

    # ---- hoisted input projection (one bf16 GEMM, written directly in padded layout) --
    # r/z hidden biases are pre-summed here; b_hn stays separate (scaled by r in-kernel).
    w_ih_p = jnp.pad(w_ih.reshape(3, H, D), ((0, 0), (0, Hp - H), (0, 0)))
    w_ih_p = w_ih_p.reshape(3 * Hp, D)
    bias = (b_ih + jnp.concatenate([b_hh[:2 * H], jnp.zeros((H,), f32)])).reshape(3, H)
    bias_p = jnp.pad(bias, ((0, 0), (0, Hp - H))).reshape(3 * Hp)

    xm = jnp.pad(x * mx[None], ((0, Sp - S), (0, Bp - B), (0, 0)))  # (Sp, Bp, D)
    gi = jnp.einsum("sbd,gd->sbg", xm.astype(bf16), w_ih_p.astype(bf16),
                    preferred_element_type=f32) + bias_p
    gi = gi.astype(bf16)                                            # (Sp, Bp, 3*Hp) bf16

    # ---- fused, padded recurrent weights (bf16 operands for the MXU) ------------------
    whT = jnp.transpose(w_hh.reshape(3, H, H), (0, 2, 1))           # (3, H_in, H_out)
    whT = jnp.pad(whT, ((0, 0), (0, Hp - H), (0, Hp - H)))
    wh_packed = jnp.transpose(whT, (1, 0, 2)).reshape(Hp, 3 * Hp).astype(bf16)
    bhn = jnp.pad(b_hh[2 * H:], (0, Hp - H)).reshape(1, Hp)

    h0_p = jnp.pad(h0, ((0, Bp - B), (0, Hp - H)))
    mh_p = jnp.pad(mh, ((0, Bp - B), (0, Hp - H)))

    n_bb = Bp // Bt

    def spec(shape, imap, invariant):
        # Single-buffer grid-invariant operands (big win for W_hh on v7x's 64 MiB VMEM).
        if single_buffer and invariant:
            return pl.BlockSpec(shape, imap, pipeline_mode=pl.Buffered(1))
        return pl.BlockSpec(shape, imap)

    out = pl.pallas_call(
        gru_dropout_kernel,
        out_shape=jax.ShapeDtypeStruct((Sp, Bp, Hp), f32),
        grid_spec=pltpu.PrefetchScalarGridSpec(
            num_scalar_prefetch=0,
            grid=(n_bb, Sp // T),                                   # (batch blocks, time chunks)
            in_specs=[
                pl.BlockSpec((T, Bt, 3 * Hp), lambda b, c: (c, b, 0)),     # GI chunk (bf16)
                spec((Bt, Hp), lambda b, c: (b, 0), n_bb == 1),            # h0
                spec((Bt, Hp), lambda b, c: (b, 0), n_bb == 1),            # hidden dropout mult
                spec((Hp, 3 * Hp), lambda b, c: (0, 0), True),             # W_hh packed (bf16)
                spec((1, Hp), lambda b, c: (0, 0), True),                  # b_hn
            ],
            out_specs=pl.BlockSpec((T, Bt, Hp), lambda b, c: (c, b, 0)),
            scratch_shapes=[pltpu.VMEM((Bt, Hp), f32)],
        ),
        compiler_params=pltpu.CompilerParams(
            dimension_semantics=("parallel", "arbitrary"),          # batch parallel, time sequential
            vmem_limit_bytes=vmem_limit,
        ),
    )(gi, h0_p, mh_p, wh_packed, bhn)

    out = out[:S, :B, :H]
    return out, out[-1]                                             # h_last == outputs[-1]


def rnn_dropout_forward(x, h0, drop_mask_x, drop_mask_h,
                        w_ih, w_hh, b_ih, b_hh, p_dropout,
                        time_chunk=None, batch_block=None):
    """Pallas implementation of _RNNDropoutLayer.forward.

    x: (S, B, D) f32, h0: (B, H) f32, drop_mask_x: (B, D) bool (True == dropped),
    drop_mask_h: (B, H) bool, w_ih: (3H, D), w_hh: (3H, H), b_ih/b_hh: (3H,)
    (torch GRUCell layout, gate order r, z, n). Returns (outputs (S,B,H), h_last (B,H)).
    """
    S, B, _ = x.shape
    H = h0.shape[-1]
    Bp = _round_up(B, 8)
    Hp = _round_up(H, 128)

    vmem_cap, two_tc = _device_info()
    budget = int(0.75 * vmem_cap)

    if batch_block is None:
        # v5e/v6e (1 TC): one big batch block (bigger MXU M dim, no serial-loop overhead).
        # v7x (2 TCs): two batch blocks so the "parallel" axis shards across cores.
        Bt = _round_up(Bp // 2, 8) if (two_tc and Bp >= 16) else Bp
    else:
        Bt = int(batch_block)
    assert Bp % Bt == 0 and Bt % 8 == 0, "batch_block must divide padded batch, multiple of 8"

    if time_chunk is None:
        t_max = 32
        while t_max > 1 and _vmem_need_bytes(t_max, Bt, Hp) > budget:
            t_max //= 2
        T = _pick_time_chunk(S, t_max)
    else:
        T = int(time_chunk)
    assert T >= 1

    vmem_limit = int(min(vmem_cap,
                         max(32 << 20, _vmem_need_bytes(T, Bt, Hp) * 3 // 2 + (2 << 20))))

    kwargs = dict(p_dropout=float(p_dropout), T=T, Bt=Bt, vmem_limit=vmem_limit)
    try:
        return _forward_impl(x, h0, drop_mask_x, drop_mask_h, w_ih, w_hh, b_ih, b_hh,
                             single_buffer=True, **kwargs)
    except Exception:
        # TODO(synk): pipeline_mode=pl.Buffered(1) unsupported on this jax build; fall
        # back to default double-buffering of the grid-invariant operands.
        return _forward_impl(x, h0, drop_mask_x, drop_mask_h, w_ih, w_hh, b_ih, b_hh,
                             single_buffer=False, **kwargs)


# ----------------------------- references -------------------------------------------
def reference_forward_f32(x, h0, drop_mask_x, drop_mask_h, w_ih, w_hh, b_ih, b_hh, p):
    """Pure-JAX f32 reference that mirrors the PyTorch forward exactly."""
    H = h0.shape[-1]
    scale = 1.0 / (1.0 - p)
    mx = (1.0 - drop_mask_x.astype(jnp.float32)) * scale
    mh = (1.0 - drop_mask_h.astype(jnp.float32)) * scale

    def step(h, x_k):
        hd = h * mh
        xd = x_k * mx
        gi = xd @ w_ih.T + b_ih
        gh = hd @ w_hh.T + b_hh
        r = jax.nn.sigmoid(gi[:, :H] + gh[:, :H])
        z = jax.nn.sigmoid(gi[:, H:2 * H] + gh[:, H:2 * H])
        n = jnp.tanh(gi[:, 2 * H:] + r * gh[:, 2 * H:])
        h_new = (1.0 - z) * n + z * hd
        return h_new, h_new

    h_last, outs = jax.lax.scan(step, h0, x)
    return outs, h_last


def reference_forward_matched(x, h0, drop_mask_x, drop_mask_h, w_ih, w_hh, b_ih, b_hh, p):
    """Reference mirroring the kernel's numerics (bf16 GI + bf16 recurrent matmul, f32 accum)."""
    H = h0.shape[-1]
    f32, bf16 = jnp.float32, jnp.bfloat16
    scale = 1.0 / (1.0 - p)
    mx = (1.0 - drop_mask_x.astype(f32)) * scale
    mh = (1.0 - drop_mask_h.astype(f32)) * scale
    bias = b_ih + jnp.concatenate([b_hh[:2 * H], jnp.zeros((H,), f32)])
    gi_all = jnp.einsum("sbd,gd->sbg", (x * mx[None]).astype(bf16), w_ih.astype(bf16),
                        preferred_element_type=f32) + bias
    gi_all = gi_all.astype(bf16).astype(f32)
    whT = jnp.transpose(w_hh.reshape(3, H, H), (0, 2, 1))
    wh_packed = jnp.transpose(whT, (1, 0, 2)).reshape(H, 3 * H).astype(bf16)
    b_hn = b_hh[2 * H:]

    def step(h, gi):
        hd = h * mh
        gh = jnp.dot(hd.astype(bf16), wh_packed, preferred_element_type=f32)
        r = jax.nn.sigmoid(gi[:, :H] + gh[:, :H])
        z = jax.nn.sigmoid(gi[:, H:2 * H] + gh[:, H:2 * H])
        n = jnp.tanh(gi[:, 2 * H:] + r * (gh[:, 2 * H:] + b_hn))
        h_new = n + z * (hd - n)
        return h_new, h_new

    h_last, outs = jax.lax.scan(step, h0, gi_all)
    return outs, h_last


if __name__ == "__main__":
    # Small shapes consistent with the module's forward (x is (seq, batch, input)).
    # B=4 / H=32 exercise the (8, 128) padding path; S=12 exercises the time chunking.
    S, B, D, H = 12, 4, 16, 32
    P_DROPOUT = 0.2

    key = jax.random.PRNGKey(0)
    k_x, k_mi, k_mh, k_wi, k_wh, k_bi, k_bh = jax.random.split(key, 7)

    x = jax.random.normal(k_x, (S, B, D), dtype=jnp.float32)
    h0 = jnp.zeros((B, H), dtype=jnp.float32)

    # Bernoulli(p) masks, True == element is dropped (same convention as the module).
    drop_mask_x = jax.random.bernoulli(k_mi, p=P_DROPOUT, shape=(B, D))
    drop_mask_h = jax.random.bernoulli(k_mh, p=P_DROPOUT, shape=(B, H))

    # Deterministic GRUCell parameters (torch default init: U(-1/sqrt(H), 1/sqrt(H))).
    k_init = 1.0 / jnp.sqrt(jnp.float32(H))
    w_ih = jax.random.uniform(k_wi, (3 * H, D), jnp.float32, -k_init, k_init)
    w_hh = jax.random.uniform(k_wh, (3 * H, H), jnp.float32, -k_init, k_init)
    b_ih = jax.random.uniform(k_bi, (3 * H,), jnp.float32, -k_init, k_init)
    b_hh = jax.random.uniform(k_bh, (3 * H,), jnp.float32, -k_init, k_init)

    out, h_last = rnn_dropout_forward(
        x, h0, drop_mask_x, drop_mask_h, w_ih, w_hh, b_ih, b_hh, P_DROPOUT)
    jax.block_until_ready((out, h_last))

    m_out, m_h = reference_forward_matched(
        x, h0, drop_mask_x, drop_mask_h, w_ih, w_hh, b_ih, b_hh, P_DROPOUT)
    f_out, f_h = reference_forward_f32(
        x, h0, drop_mask_x, drop_mask_h, w_ih, w_hh, b_ih, b_hh, P_DROPOUT)

    assert out.shape == (S, B, H) and h_last.shape == (B, H)
    # Tight check against the numerics-matched reference (same bf16 roundings).
    assert jnp.allclose(out, m_out, atol=2e-3, rtol=2e-3)
    assert jnp.allclose(h_last, m_h, atol=2e-3, rtol=2e-3)
    # Loose sanity bound on bf16 drift vs. full-f32 PyTorch-equivalent math.
    assert jnp.allclose(out, f_out, atol=5e-2, rtol=5e-2)
    assert jnp.allclose(h_last, f_h, atol=5e-2, rtol=5e-2)

    print("KERNEL_OK")
</pallas_src>

<mosaic_0001>
module attributes {stable_mosaic.version = 11 : i64} {
  func.func @gru_dropout_kernel(%arg0: i32, %arg1: i32, %arg2: memref<12x8x384xbf16, #tpu.memory_space<vmem>>, %arg3: memref<8x128xf32, #tpu.memory_space<vmem>>, %arg4: memref<8x128xf32, #tpu.memory_space<vmem>>, %arg5: memref<128x384xbf16, #tpu.memory_space<vmem>>, %arg6: memref<1x128xf32, #tpu.memory_space<vmem>>, %arg7: memref<12x8x128xf32, #tpu.memory_space<vmem>>, %arg8: memref<8x128xf32, #tpu.memory_space<vmem>>) attributes {dimension_semantics = [#tpu.dimension_semantics<parallel>, #tpu.dimension_semantics<arbitrary>], iteration_bounds = array<i64: 1, 1>, scalar_prefetch = 0 : i64, scratch_operands = 1 : i64, tpu.core_type = #tpu.core_type<tc>, window_params = [{transform_indices = @transform_0, window_bounds = array<i64: 12, 8, 384>}, {pipeline_mode = #tpu.pipeline_mode<synchronous>, transform_indices = @transform_1, window_bounds = array<i64: 8, 128>}, {pipeline_mode = #tpu.pipeline_mode<synchronous>, transform_indices = @transform_2, window_bounds = array<i64: 8, 128>}, {pipeline_mode = #tpu.pipeline_mode<synchronous>, transform_indices = @transform_3, window_bounds = array<i64: 128, 384>}, {pipeline_mode = #tpu.pipeline_mode<synchronous>, transform_indices = @transform_4, window_bounds = array<i64: 1, 128>}, {transform_indices = @transform_5, window_bounds = array<i64: 12, 8, 128>}]} {
    %c0_i32 = arith.constant 0 : i32
    %0 = arith.cmpi eq, %arg1, %c0_i32 : i32
    %1 = arith.extui %0 : i1 to i32
    %c0_i32_0 = arith.constant 0 : i32
    %2 = arith.cmpi ne, %1, %c0_i32_0 : i32
    scf.if %2 {
      %c0_94 = arith.constant 0 : index
      %c0_95 = arith.constant 0 : index
      %442 = vector.load %arg3[%c0_94, %c0_95] : memref<8x128xf32, #tpu.memory_space<vmem>>, vector<8x128xf32>
      %c0_96 = arith.constant 0 : index
      %c0_97 = arith.constant 0 : index
      %443 = vector.load %arg8[%c0_96, %c0_97] : memref<8x128xf32, #tpu.memory_space<vmem>>, vector<8x128xf32>
      tpu.vector_store %arg8[%c0_96, %c0_97], %442 {strides = array<i32>} : memref<8x128xf32, #tpu.memory_space<vmem>>, vector<8x128xf32>,
    } else {
    }
    %c0 = arith.constant 0 : index
    %c0_1 = arith.constant 0 : index
    %3 = vector.load %arg4[%c0, %c0_1] : memref<8x128xf32, #tpu.memory_space<vmem>>, vector<8x128xf32>
    %c0_2 = arith.constant 0 : index
    %c0_3 = arith.constant 0 : index
    %4 = vector.load %arg5[%c0_2, %c0_3] : memref<128x384xbf16, #tpu.memory_space<vmem>>, vector<128x384xbf16>
    %c0_4 = arith.constant 0 : index
    %c0_5 = arith.constant 0 : index
    %5 = vector.load %arg6[%c0_4, %c0_5] : memref<1x128xf32, #tpu.memory_space<vmem>>, vector<1x128xf32>
    %6 = vector.shape_cast %5 : vector<1x128xf32> to vector<1x128xf32>
    %7 = vector.broadcast %6 : vector<1x128xf32> to vector<8x128xf32>
    %c0_6 = arith.constant 0 : index
    %c0_7 = arith.constant 0 : index
    %8 = vector.load %arg8[%c0_6, %c0_7] : memref<8x128xf32, #tpu.memory_space<vmem>>, vector<8x128xf32>
    %c0_i32_8 = arith.constant 0 : i32
    %9 = arith.mulf %8, %3 : vector<8x128xf32>
    %10 = arith.truncf %9 : vector<8x128xf32> to vector<8x128xbf16>
    %cst = arith.constant dense<0.000000e+00> : vector<8x384xf32>
    %11 = tpu.matmul %10, %4, %cst {dimension_numbers = #tpu.dot_dimension_numbers<[1], [0], [0], [1], [0, 0, 1, 1], [], []>} : vector<8x128xbf16>, vector<128x384xbf16>, vector<8x384xf32> -> vector<8x384xf32>
    %12 = arith.index_cast %c0_i32_8 : i32 to index
    %c0_9 = arith.constant 0 : index
    %c0_10 = arith.constant 0 : index
    %13 = vector.load %arg2[%12, %c0_9, %c0_10] : memref<12x8x384xbf16, #tpu.memory_space<vmem>>, vector<1x8x384xbf16>
    %14 = vector.shape_cast %13 : vector<1x8x384xbf16> to vector<8x384xbf16>
    %15 = arith.extf %14 : vector<8x384xbf16> to vector<8x384xf32>
    %16 = vector.extract_strided_slice %15 {offsets = [0, 0], sizes = [8, 128], strides = [1, 1]} : vector<8x384xf32> to vector<8x128xf32>
    %17 = vector.extract_strided_slice %11 {offsets = [0, 0], sizes = [8, 128], strides = [1, 1]} : vector<8x384xf32> to vector<8x128xf32>
    %18 = arith.addf %16, %17 : vector<8x128xf32>
    %19 = arith.negf %18 : vector<8x128xf32>
    %20 = math.exp %19 : vector<8x128xf32>
    %cst_11 = arith.constant 1.000000e+00 : f32
    %21 = vector.broadcast %cst_11 : f32 to vector<8x128xf32>
    %22 = arith.addf %21, %20 : vector<8x128xf32>
    %23 = arith.divf %21, %22 : vector<8x128xf32>
    %24 = vector.extract_strided_slice %15 {offsets = [0, 128], sizes = [8, 128], strides = [1, 1]} : vector<8x384xf32> to vector<8x128xf32>
    %25 = vector.extract_strided_slice %11 {offsets = [0, 128], sizes = [8, 128], strides = [1, 1]} : vector<8x384xf32> to vector<8x128xf32>
    %26 = arith.addf %24, %25 : vector<8x128xf32>
    %27 = arith.negf %26 : vector<8x128xf32>
    %28 = math.exp %27 : vector<8x128xf32>
    %cst_12 = arith.constant 1.000000e+00 : f32
    %29 = vector.broadcast %cst_12 : f32 to vector<8x128xf32>
    %30 = arith.addf %29, %28 : vector<8x128xf32>
    %31 = arith.divf %29, %30 : vector<8x128xf32>
    %32 = vector.extract_strided_slice %15 {offsets = [0, 256], sizes = [8, 128], strides = [1, 1]} : vector<8x384xf32> to vector<8x128xf32>
    %33 = vector.extract_strided_slice %11 {offsets = [0, 256], sizes = [8, 128], strides = [1, 1]} : vector<8x384xf32> to vector<8x128xf32>
    %34 = arith.addf %33, %7 : vector<8x128xf32>
    %35 = arith.mulf %23, %34 : vector<8x128xf32>
    %36 = arith.addf %32, %35 : vector<8x128xf32>
    %37 = math.tanh %36 : vector<8x128xf32>
    %38 = arith.subf %9, %37 : vector<8x128xf32>
    %39 = arith.mulf %31, %38 : vector<8x128xf32>
    %40 = arith.addf %37, %39 : vector<8x128xf32>
    %41 = arith.index_cast %c0_i32_8 : i32 to index
    %c0_13 = arith.constant 0 : index
    %c0_14 = arith.constant 0 : index
    %42 = vector.load %arg7[%41, %c0_13, %c0_14] : memref<12x8x128xf32, #tpu.memory_space<vmem>>, vector<1x8x128xf32>
    %43 = vector.shape_cast %42 : vector<1x8x128xf32> to vector<8x128xf32>
    %44 = vector.shape_cast %40 : vector<8x128xf32> to vector<1x8x128xf32>
    tpu.vector_store %arg7[%41, %c0_13, %c0_14], %44 {strides = array<i32>} : memref<12x8x128xf32, #tpu.memory_space<vmem>>, vector<1x8x128xf32>,
    %c1_i32 = arith.constant 1 : i32
    %45 = arith.mulf %40, %3 : vector<8x128xf32>
    %46 = arith.truncf %45 : vector<8x128xf32> to vector<8x128xbf16>
    %cst_15 = arith.constant dense<0.000000e+00> : vector<8x384xf32>
    %47 = tpu.matmul %46, %4, %cst_15 {dimension_numbers = #tpu.dot_dimension_numbers<[1], [0], [0], [1], [0, 0, 1, 1], [], []>} : vector<8x128xbf16>, vector<128x384xbf16>, vector<8x384xf32> -> vector<8x384xf32>
    %48 = arith.index_cast %c1_i32 : i32 to index
    %c0_16 = arith.constant 0 : index
    %c0_17 = arith.constant 0 : index
    %49 = vector.load %arg2[%48, %c0_16, %c0_17] : memref<12x8x384xbf16, #tpu.memory_space<vmem>>, vector<1x8x384xbf16>
    %50 = vector.shape_cast %49 : vector<1x8x384xbf16> to vector<8x384xbf16>
    %51 = arith.extf %50 : vector<8x384xbf16> to vector<8x384xf32>
    %52 = vector.extract_strided_slice %51 {offsets = [0, 0], sizes = [8, 128], strides = [1, 1]} : vector<8x384xf32> to vector<8x128xf32>
    %53 = vector.extract_strided_slice %47 {offsets = [0, 0], sizes = [8, 128], strides = [1, 1]} : vector<8x384xf32> to vector<8x128xf32>
    %54 = arith.addf %52, %53 : vector<8x128xf32>
    %55 = arith.negf %54 : vector<8x128xf32>
    %56 = math.exp %55 : vector<8x128xf32>
    %cst_18 = arith.constant 1.000000e+00 : f32
    %57 = vector.broadcast %cst_18 : f32 to vector<8x128xf32>
    %58 = arith.addf %57, %56 : vector<8x128xf32>
    %59 = arith.divf %57, %58 : vector<8x128xf32>
    %60 = vector.extract_strided_slice %51 {offsets = [0, 128], sizes = [8, 128], strides = [1, 1]} : vector<8x384xf32> to vector<8x128xf32>
    %61 = vector.extract_strided_slice %47 {offsets = [0, 128], sizes = [8, 128], strides = [1, 1]} : vector<8x384xf32> to vector<8x128xf32>
    %62 = arith.addf %60, %61 : vector<8x128xf32>
    %63 = arith.negf %62 : vector<8x128xf32>
    %64 = math.exp %63 : vector<8x128xf32>
    %cst_19 = arith.constant 1.000000e+00 : f32
    %65 = vector.broadcast %cst_19 : f32 to vector<8x128xf32>
    %66 = arith.addf %65, %64 : vector<8x128xf32>
    %67 = arith.divf %65, %66 : vector<8x128xf32>
    %68 = vector.extract_strided_slice %51 {offsets = [0, 256], sizes = [8, 128], strides = [1, 1]} : vector<8x384xf32> to vector<8x128xf32>
    %69 = vector.extract_strided_slice %47 {offsets = [0, 256], sizes = [8, 128], strides = [1, 1]} : vector<8x384xf32> to vector<8x128xf32>
    %70 = arith.addf %69, %7 : vector<8x128xf32>
    %71 = arith.mulf %59, %70 : vector<8x128xf32>
    %72 = arith.addf %68, %71 : vector<8x128xf32>
    %73 = math.tanh %72 : vector<8x128xf32>
    %74 = arith.subf %45, %73 : vector<8x128xf32>
    %75 = arith.mulf %67, %74 : vector<8x128xf32>
    %76 = arith.addf %73, %75 : vector<8x128xf32>
    %77 = arith.index_cast %c1_i32 : i32 to index
    %c0_20 = arith.constant 0 : index
    %c0_21 = arith.constant 0 : index
    %78 = vector.load %arg7[%77, %c0_20, %c0_21] : memref<12x8x128xf32, #tpu.memory_space<vmem>>, vector<1x8x128xf32>
    %79 = vector.shape_cast %78 : vector<1x8x128xf32> to vector<8x128xf32>
    %80 = vector.shape_cast %76 : vector<8x128xf32> to vector<1x8x128xf32>
    tpu.vector_store %arg7[%77, %c0_20, %c0_21], %80 {strides = array<i32>} : memref<12x8x128xf32, #tpu.memory_space<vmem>>, vector<1x8x128xf32>,
    %c2_i32 = arith.constant 2 : i32
    %81 = arith.mulf %76, %3 : vector<8x128xf32>
    %82 = arith.truncf %81 : vector<8x128xf32> to vector<8x128xbf16>
    %cst_22 = arith.constant dense<0.000000e+00> : vector<8x384xf32>
    %83 = tpu.matmul %82, %4, %cst_22 {dimension_numbers = #tpu.dot_dimension_numbers<[1], [0], [0], [1], [0, 0, 1, 1], [], []>} : vector<8x128xbf16>, vector<128x384xbf16>, vector<8x384xf32> -> vector<8x384xf32>
    %84 = arith.index_cast %c2_i32 : i32 to index
    %c0_23 = arith.constant 0 : index
    %c0_24 = arith.constant 0 : index
    %85 = vector.load %arg2[%84, %c0_23, %c0_24] : memref<12x8x384xbf16, #tpu.memory_space<vmem>>, vector<1x8x384xbf16>
    %86 = vector.shape_cast %85 : vector<1x8x384xbf16> to vector<8x384xbf16>
    %87 = arith.extf %86 : vector<8x384xbf16> to vector<8x384xf32>
    %88 = vector.extract_strided_slice %87 {offsets = [0, 0], sizes = [8, 128], strides = [1, 1]} : vector<8x384xf32> to vector<8x128xf32>
    %89 = vector.extract_strided_slice %83 {offsets = [0, 0], sizes = [8, 128], strides = [1, 1]} : vector<8x384xf32> to vector<8x128xf32>
    %90 = arith.addf %88, %89 : vector<8x128xf32>
    %91 = arith.negf %90 : vector<8x128xf32>
    %92 = math.exp %91 : vector<8x128xf32>
    %cst_25 = arith.constant 1.000000e+00 : f32
    %93 = vector.broadcast %cst_25 : f32 to vector<8x128xf32>
    %94 = arith.addf %93, %92 : vector<8x128xf32>
    %95 = arith.divf %93, %94 : vector<8x128xf32>
    %96 = vector.extract_strided_slice %87 {offsets = [0, 128], sizes = [8, 128], strides = [1, 1]} : vector<8x384xf32> to vector<8x128xf32>
    %97 = vector.extract_strided_slice %83 {offsets = [0, 128], sizes = [8, 128], strides = [1, 1]} : vector<8x384xf32> to vector<8x128xf32>
    %98 = arith.addf %96, %97 : vector<8x128xf32>
    %99 = arith.negf %98 : vector<8x128xf32>
    %100 = math.exp %99 : vector<8x128xf32>
    %cst_26 = arith.constant 1.000000e+00 : f32
    %101 = vector.broadcast %cst_26 : f32 to vector<8x128xf32>
    %102 = arith.addf %101, %100 : vector<8x128xf32>
    %103 = arith.divf %101, %102 : vector<8x128xf32>
    %104 = vector.extract_strided_slice %87 {offsets = [0, 256], sizes = [8, 128], strides = [1, 1]} : vector<8x384xf32> to vector<8x128xf32>
    %105 = vector.extract_strided_slice %83 {offsets = [0, 256], sizes = [8, 128], strides = [1, 1]} : vector<8x384xf32> to vector<8x128xf32>
    %106 = arith.addf %105, %7 : vector<8x128xf32>
    %107 = arith.mulf %95, %106 : vector<8x128xf32>
    %108 = arith.addf %104, %107 : vector<8x128xf32>
    %109 = math.tanh %108 : vector<8x128xf32>
    %110 = arith.subf %81, %109 : vector<8x128xf32>
    %111 = arith.mulf %103, %110 : vector<8x128xf32>
    %112 = arith.addf %109, %111 : vector<8x128xf32>
    %113 = arith.index_cast %c2_i32 : i32 to index
    %c0_27 = arith.constant 0 : index
    %c0_28 = arith.constant 0 : index
    %114 = vector.load %arg7[%113, %c0_27, %c0_28] : memref<12x8x128xf32, #tpu.memory_space<vmem>>, vector<1x8x128xf32>
    %115 = vector.shape_cast %114 : vector<1x8x128xf32> to vector<8x128xf32>
    %116 = vector.shape_cast %112 : vector<8x128xf32> to vector<1x8x128xf32>
    tpu.vector_store %arg7[%113, %c0_27, %c0_28], %116 {strides = array<i32>} : memref<12x8x128xf32, #tpu.memory_space<vmem>>, vector<1x8x128xf32>,
    %c3_i32 = arith.constant 3 : i32
    %117 = arith.mulf %112, %3 : vector<8x128xf32>
    %118 = arith.truncf %117 : vector<8x128xf32> to vector<8x128xbf16>
    %cst_29 = arith.constant dense<0.000000e+00> : vector<8x384xf32>
    %119 = tpu.matmul %118, %4, %cst_29 {dimension_numbers = #tpu.dot_dimension_numbers<[1], [0], [0], [1], [0, 0, 1, 1], [], []>} : vector<8x128xbf16>, vector<128x384xbf16>, vector<8x384xf32> -> vector<8x384xf32>
    %120 = arith.index_cast %c3_i32 : i32 to index
    %c0_30 = arith.constant 0 : index
    %c0_31 = arith.constant 0 : index
    %121 = vector.load %arg2[%120, %c0_30, %c0_31] : memref<12x8x384xbf16, #tpu.memory_space<vmem>>, vector<1x8x384xbf16>
    %122 = vector.shape_cast %121 : vector<1x8x384xbf16> to vector<8x384xbf16>
    %123 = arith.extf %122 : vector<8x384xbf16> to vector<8x384xf32>
    %124 = vector.extract_strided_slice %123 {offsets = [0, 0], sizes = [8, 128], strides = [1, 1]} : vector<8x384xf32> to vector<8x128xf32>
    %125 = vector.extract_strided_slice %119 {offsets = [0, 0], sizes = [8, 128], strides = [1, 1]} : vector<8x384xf32> to vector<8x128xf32>
    %126 = arith.addf %124, %125 : vector<8x128xf32>
    %127 = arith.negf %126 : vector<8x128xf32>
    %128 = math.exp %127 : vector<8x128xf32>
    %cst_32 = arith.constant 1.000000e+00 : f32
    %129 = vector.broadcast %cst_32 : f32 to vector<8x128xf32>
    %130 = arith.addf %129, %128 : vector<8x128xf32>
    %131 = arith.divf %129, %130 : vector<8x128xf32>
    %132 = vector.extract_strided_slice %123 {offsets = [0, 128], sizes = [8, 128], strides = [1, 1]} : vector<8x384xf32> to vector<8x128xf32>
    %133 = vector.extract_strided_slice %119 {offsets = [0, 128], sizes = [8, 128], strides = [1, 1]} : vector<8x384xf32> to vector<8x128xf32>
    %134 = arith.addf %132, %133 : vector<8x128xf32>
    %135 = arith.negf %134 : vector<8x128xf32>
    %136 = math.exp %135 : vector<8x128xf32>
    %cst_33 = arith.constant 1.000000e+00 : f32
    %137 = vector.broadcast %cst_33 : f32 to vector<8x128xf32>
    %138 = arith.addf %137, %136 : vector<8x128xf32>
    %139 = arith.divf %137, %138 : vector<8x128xf32>
    %140 = vector.extract_strided_slice %123 {offsets = [0, 256], sizes = [8, 128], strides = [1, 1]} : vector<8x384xf32> to vector<8x128xf32>
    %141 = vector.extract_strided_slice %119 {offsets = [0, 256], sizes = [8, 128], strides = [1, 1]} : vector<8x384xf32> to vector<8x128xf32>
    %142 = arith.addf %141, %7 : vector<8x128xf32>
    %143 = arith.mulf %131, %142 : vector<8x128xf32>
    %144 = arith.addf %140, %143 : vector<8x128xf32>
    %145 = math.tanh %144 : vector<8x128xf32>
    %146 = arith.subf %117, %145 : vector<8x128xf32>
    %147 = arith.mulf %139, %146 : vector<8x128xf32>
    %148 = arith.addf %145, %147 : vector<8x128xf32>
    %149 = arith.index_cast %c3_i32 : i32 to index
    %c0_34 = arith.constant 0 : index
    %c0_35 = arith.constant 0 : index
    %150 = vector.load %arg7[%149, %c0_34, %c0_35] : memref<12x8x128xf32, #tpu.memory_space<vmem>>, vector<1x8x128xf32>
    %151 = vector.shape_cast %150 : vector<1x8x128xf32> to vector<8x128xf32>
    %152 = vector.shape_cast %148 : vector<8x128xf32> to vector<1x8x128xf32>
    tpu.vector_store %arg7[%149, %c0_34, %c0_35], %152 {strides = array<i32>} : memref<12x8x128xf32, #tpu.memory_space<vmem>>, vector<1x8x128xf32>,
    %c4_i32 = arith.constant 4 : i32
    %153 = arith.mulf %148, %3 : vector<8x128xf32>
    %154 = arith.truncf %153 : vector<8x128xf32> to vector<8x128xbf16>
    %cst_36 = arith.constant dense<0.000000e+00> : vector<8x384xf32>
    %155 = tpu.matmul %154, %4, %cst_36 {dimension_numbers = #tpu.dot_dimension_numbers<[1], [0], [0], [1], [0, 0, 1, 1], [], []>} : vector<8x128xbf16>, vector<128x384xbf16>, vector<8x384xf32> -> vector<8x384xf32>
    %156 = arith.index_cast %c4_i32 : i32 to index
    %c0_37 = arith.constant 0 : index
    %c0_38 = arith.constant 0 : index
    %157 = vector.load %arg2[%156, %c0_37, %c0_38] : memref<12x8x384xbf16, #tpu.memory_space<vmem>>, vector<1x8x384xbf16>
    %158 = vector.shape_cast %157 : vector<1x8x384xbf16> to vector<8x384xbf16>
    %159 = arith.extf %158 : vector<8x384xbf16> to vector<8x384xf32>
    %160 = vector.extract_strided_slice %159 {offsets = [0, 0], sizes = [8, 128], strides = [1, 1]} : vector<8x384xf32> to vector<8x128xf32>
    %161 = vector.extract_strided_slice %155 {offsets = [0, 0], sizes = [8, 128], strides = [1, 1]} : vector<8x384xf32> to vector<8x128xf32>
    %162 = arith.addf %160, %161 : vector<8x128xf32>
    %163 = arith.negf %162 : vector<8x128xf32>
    %164 = math.exp %163 : vector<8x128xf32>
    %cst_39 = arith.constant 1.000000e+00 : f32
    %165 = vector.broadcast %cst_39 : f32 to vector<8x128xf32>
    %166 = arith.addf %165, %164 : vector<8x128xf32>
    %167 = arith.divf %165, %166 : vector<8x128xf32>
    %168 = vector.extract_strided_slice %159 {offsets = [0, 128], sizes = [8, 128], strides = [1, 1]} : vector<8x384xf32> to vector<8x128xf32>
    %169 = vector.extract_strided_slice %155 {offsets = [0, 128], sizes = [8, 128], strides = [1, 1]} : vector<8x384xf32> to vector<8x128xf32>
    %170 = arith.addf %168, %169 : vector<8x128xf32>
    %171 = arith.negf %170 : vector<8x128xf32>
    %172 = math.exp %171 : vector<8x128xf32>
    %cst_40 = arith.constant 1.000000e+00 : f32
    %173 = vector.broadcast %cst_40 : f32 to vector<8x128xf32>
    %174 = arith.addf %173, %172 : vector<8x128xf32>
    %175 = arith.divf %173, %174 : vector<8x128xf32>
    %176 = vector.extract_strided_slice %159 {offsets = [0, 256], sizes = [8, 128], strides = [1, 1]} : vector<8x384xf32> to vector<8x128xf32>
    %177 = vector.extract_strided_slice %155 {offsets = [0, 256], sizes = [8, 128], strides = [1, 1]} : vector<8x384xf32> to vector<8x128xf32>
    %178 = arith.addf %177, %7 : vector<8x128xf32>
    %179 = arith.mulf %167, %178 : vector<8x128xf32>
    %180 = arith.addf %176, %179 : vector<8x128xf32>
    %181 = math.tanh %180 : vector<8x128xf32>
    %182 = arith.subf %153, %181 : vector<8x128xf32>
    %183 = arith.mulf %175, %182 : vector<8x128xf32>
    %184 = arith.addf %181, %183 : vector<8x128xf32>
    %185 = arith.index_cast %c4_i32 : i32 to index
    %c0_41 = arith.constant 0 : index
    %c0_42 = arith.constant 0 : index
    %186 = vector.load %arg7[%185, %c0_41, %c0_42] : memref<12x8x128xf32, #tpu.memory_space<vmem>>, vector<1x8x128xf32>
    %187 = vector.shape_cast %186 : vector<1x8x128xf32> to vector<8x128xf32>
    %188 = vector.shape_cast %184 : vector<8x128xf32> to vector<1x8x128xf32>
    tpu.vector_store %arg7[%185, %c0_41, %c0_42], %188 {strides = array<i32>} : memref<12x8x128xf32, #tpu.memory_space<vmem>>, vector<1x8x128xf32>,
    %c5_i32 = arith.constant 5 : i32
    %189 = arith.mulf %184, %3 : vector<8x128xf32>
    %190 = arith.truncf %189 : vector<8x128xf32> to vector<8x128xbf16>
    %cst_43 = arith.constant dense<0.000000e+00> : vector<8x384xf32>
    %191 = tpu.matmul %190, %4, %cst_43 {dimension_numbers = #tpu.dot_dimension_numbers<[1], [0], [0], [1], [0, 0, 1, 1], [], []>} : vector<8x128xbf16>, vector<128x384xbf16>, vector<8x384xf32> -> vector<8x384xf32>
    %192 = arith.index_cast %c5_i32 : i32 to index
    %c0_44 = arith.constant 0 : index
    %c0_45 = arith.constant 0 : index
    %193 = vector.load %arg2[%192, %c0_44, %c0_45] : memref<12x8x384xbf16, #tpu.memory_space<vmem>>, vector<1x8x384xbf16>
    %194 = vector.shape_cast %193 : vector<1x8x384xbf16> to vector<8x384xbf16>
    %195 = arith.extf %194 : vector<8x384xbf16> to vector<8x384xf32>
    %196 = vector.extract_strided_slice %195 {offsets = [0, 0], sizes = [8, 128], strides = [1, 1]} : vector<8x384xf32> to vector<8x128xf32>
    %197 = vector.extract_strided_slice %191 {offsets = [0, 0], sizes = [8, 128], strides = [1, 1]} : vector<8x384xf32> to vector<8x128xf32>
    %198 = arith.addf %196, %197 : vector<8x128xf32>
    %199 = arith.negf %198 : vector<8x128xf32>
    %200 = math.exp %199 : vector<8x128xf32>
    %cst_46 = arith.constant 1.000000e+00 : f32
    %201 = vector.broadcast %cst_46 : f32 to vector<8x128xf32>
    %202 = arith.addf %201, %200 : vector<8x128xf32>
    %203 = arith.divf %201, %202 : vector<8x128xf32>
    %204 = vector.extract_strided_slice %195 {offsets = [0, 128], sizes = [8, 128], strides = [1, 1]} : vector<8x384xf32> to vector<8x128xf32>
    %205 = vector.extract_strided_slice %191 {offsets = [0, 128], sizes = [8, 128], strides = [1, 1]} : vector<8x384xf32> to vector<8x128xf32>
    %206 = arith.addf %204, %205 : vector<8x128xf32>
    %207 = arith.negf %206 : vector<8x128xf32>
    %208 = math.exp %207 : vector<8x128xf32>
    %cst_47 = arith.constant 1.000000e+00 : f32
    %209 = vector.broadcast %cst_47 : f32 to vector<8x128xf32>
    %210 = arith.addf %209, %208 : vector<8x128xf32>
    %211 = arith.divf %209, %210 : vector<8x128xf32>
    %212 = vector.extract_strided_slice %195 {offsets = [0, 256], sizes = [8, 128], strides = [1, 1]} : vector<8x384xf32> to vector<8x128xf32>
    %213 = vector.extract_strided_slice %191 {offsets = [0, 256], sizes = [8, 128], strides = [1, 1]} : vector<8x384xf32> to vector<8x128xf32>
    %214 = arith.addf %213, %7 : vector<8x128xf32>
    %215 = arith.mulf %203, %214 : vector<8x128xf32>
    %216 = arith.addf %212, %215 : vector<8x128xf32>
    %217 = math.tanh %216 : vector<8x128xf32>
    %218 = arith.subf %189, %217 : vector<8x128xf32>
    %219 = arith.mulf %211, %218 : vector<8x128xf32>
    %220 = arith.addf %217, %219 : vector<8x128xf32>
    %221 = arith.index_cast %c5_i32 : i32 to index
    %c0_48 = arith.constant 0 : index
    %c0_49 = arith.constant 0 : index
    %222 = vector.load %arg7[%221, %c0_48, %c0_49] : memref<12x8x128xf32, #tpu.memory_space<vmem>>, vector<1x8x128xf32>
    %223 = vector.shape_cast %222 : vector<1x8x128xf32> to vector<8x128xf32>
    %224 = vector.shape_cast %220 : vector<8x128xf32> to vector<1x8x128xf32>
    tpu.vector_store %arg7[%221, %c0_48, %c0_49], %224 {strides = array<i32>} : memref<12x8x128xf32, #tpu.memory_space<vmem>>, vector<1x8x128xf32>,
    %c6_i32 = arith.constant 6 : i32
    %225 = arith.mulf %220, %3 : vector<8x128xf32>
    %226 = arith.truncf %225 : vector<8x128xf32> to vector<8x128xbf16>
    %cst_50 = arith.constant dense<0.000000e+00> : vector<8x384xf32>
    %227 = tpu.matmul %226, %4, %cst_50 {dimension_numbers = #tpu.dot_dimension_numbers<[1], [0], [0], [1], [0, 0, 1, 1], [], []>} : vector<8x128xbf16>, vector<128x384xbf16>, vector<8x384xf32> -> vector<8x384xf32>
    %228 = arith.index_cast %c6_i32 : i32 to index
    %c0_51 = arith.constant 0 : index
    %c0_52 = arith.constant 0 : index
    %229 = vector.load %arg2[%228, %c0_51, %c0_52] : memref<12x8x384xbf16, #tpu.memory_space<vmem>>, vector<1x8x384xbf16>
    %230 = vector.shape_cast %229 : vector<1x8x384xbf16> to vector<8x384xbf16>
    %231 = arith.extf %230 : vector<8x384xbf16> to vector<8x384xf32>
    %232 = vector.extract_strided_slice %231 {offsets = [0, 0], sizes = [8, 128], strides = [1, 1]} : vector<8x384xf32> to vector<8x128xf32>
    %233 = vector.extract_strided_slice %227 {offsets = [0, 0], sizes = [8, 128], strides = [1, 1]} : vector<8x384xf32> to vector<8x128xf32>
    %234 = arith.addf %232, %233 : vector<8x128xf32>
    %235 = arith.negf %234 : vector<8x128xf32>
    %236 = math.exp %235 : vector<8x128xf32>
    %cst_53 = arith.constant 1.000000e+00 : f32
    %237 = vector.broadcast %cst_53 : f32 to vector<8x128xf32>
    %238 = arith.addf %237, %236 : vector<8x128xf32>
    %239 = arith.divf %237, %238 : vector<8x128xf32>
    %240 = vector.extract_strided_slice %231 {offsets = [0, 128], sizes = [8, 128], strides = [1, 1]} : vector<8x384xf32> to vector<8x128xf32>
    %241 = vector.extract_strided_slice %227 {offsets = [0, 128], sizes = [8, 128], strides = [1, 1]} : vector<8x384xf32> to vector<8x128xf32>
    %242 = arith.addf %240, %241 : vector<8x128xf32>
    %243 = arith.negf %242 : vector<8x128xf32>
    %244 = math.exp %243 : vector<8x128xf32>
    %cst_54 = arith.constant 1.000000e+00 : f32
    %245 = vector.broadcast %cst_54 : f32 to vector<8x128xf32>
    %246 = arith.addf %245, %244 : vector<8x128xf32>
    %247 = arith.divf %245, %246 : vector<8x128xf32>
    %248 = vector.extract_strided_slice %231 {offsets = [0, 256], sizes = [8, 128], strides = [1, 1]} : vector<8x384xf32> to vector<8x128xf32>
    %249 = vector.extract_strided_slice %227 {offsets = [0, 256], sizes = [8, 128], strides = [1, 1]} : vector<8x384xf32> to vector<8x128xf32>
    %250 = arith.addf %249, %7 : vector<8x128xf32>
    %251 = arith.mulf %239, %250 : vector<8x128xf32>
    %252 = arith.addf %248, %251 : vector<8x128xf32>
    %253 = math.tanh %252 : vector<8x128xf32>
    %254 = arith.subf %225, %253 : vector<8x128xf32>
    %255 = arith.mulf %247, %254 : vector<8x128xf32>
    %256 = arith.addf %253, %255 : vector<8x128xf32>
    %257 = arith.index_cast %c6_i32 : i32 to index
    %c0_55 = arith.constant 0 : index
    %c0_56 = arith.constant 0 : index
    %258 = vector.load %arg7[%257, %c0_55, %c0_56] : memref<12x8x128xf32, #tpu.memory_space<vmem>>, vector<1x8x128xf32>
    %259 = vector.shape_cast %258 : vector<1x8x128xf32> to vector<8x128xf32>
    %260 = vector.shape_cast %256 : vector<8x128xf32> to vector<1x8x128xf32>
    tpu.vector_store %arg7[%257, %c0_55, %c0_56], %260 {strides = array<i32>} : memref<12x8x128xf32, #tpu.memory_space<vmem>>, vector<1x8x128xf32>,
    %c7_i32 = arith.constant 7 : i32
    %261 = arith.mulf %256, %3 : vector<8x128xf32>
    %262 = arith.truncf %261 : vector<8x128xf32> to vector<8x128xbf16>
    %cst_57 = arith.constant dense<0.000000e+00> : vector<8x384xf32>
    %263 = tpu.matmul %262, %4, %cst_57 {dimension_numbers = #tpu.dot_dimension_numbers<[1], [0], [0], [1], [0, 0, 1, 1], [], []>} : vector<8x128xbf16>, vector<128x384xbf16>, vector<8x384xf32> -> vector<8x384xf32>
    %264 = arith.index_cast %c7_i32 : i32 to index
    %c0_58 = arith.constant 0 : index
    %c0_59 = arith.constant 0 : index
    %265 = vector.load %arg2[%264, %c0_58, %c0_59] : memref<12x8x384xbf16, #tpu.memory_space<vmem>>, vector<1x8x384xbf16>
    %266 = vector.shape_cast %265 : vector<1x8x384xbf16> to vector<8x384xbf16>
    %267 = arith.extf %266 : vector<8x384xbf16> to vector<8x384xf32>
    %268 = vector.extract_strided_slice %267 {offsets = [0, 0], sizes = [8, 128], strides = [1, 1]} : vector<8x384xf32> to vector<8x128xf32>
    %269 = vector.extract_strided_slice %263 {offsets = [0, 0], sizes = [8, 128], strides = [1, 1]} : vector<8x384xf32> to vector<8x128xf32>
    %270 = arith.addf %268, %269 : vector<8x128xf32>
    %271 = arith.negf %270 : vector<8x128xf32>
    %272 = math.exp %271 : vector<8x128xf32>
    %cst_60 = arith.constant 1.000000e+00 : f32
    %273 = vector.broadcast %cst_60 : f32 to vector<8x128xf32>
    %274 = arith.addf %273, %272 : vector<8x128xf32>
    %275 = arith.divf %273, %274 : vector<8x128xf32>
    %276 = vector.extract_strided_slice %267 {offsets = [0, 128], sizes = [8, 128], strides = [1, 1]} : vector<8x384xf32> to vector<8x128xf32>
    %277 = vector.extract_strided_slice %263 {offsets = [0, 128], sizes = [8, 128], strides = [1, 1]} : vector<8x384xf32> to vector<8x128xf32>
    %278 = arith.addf %276, %277 : vector<8x128xf32>
    %279 = arith.negf %278 : vector<8x128xf32>
    %280 = math.exp %279 : vector<8x128xf32>
    %cst_61 = arith.constant 1.000000e+00 : f32
    %281 = vector.broadcast %cst_61 : f32 to vector<8x128xf32>
    %282 = arith.addf %281, %280 : vector<8x128xf32>
    %283 = arith.divf %281, %282 : vector<8x128xf32>
    %284 = vector.extract_strided_slice %267 {offsets = [0, 256], sizes = [8, 128], strides = [1, 1]} : vector<8x384xf32> to vector<8x128xf32>
    %285 = vector.extract_strided_slice %263 {offsets = [0, 256], sizes = [8, 128], strides = [1, 1]} : vector<8x384xf32> to vector<8x128xf32>
    %286 = arith.addf %285, %7 : vector<8x128xf32>
    %287 = arith.mulf %275, %286 : vector<8x128xf32>
    %288 = arith.addf %284, %287 : vector<8x128xf32>
    %289 = math.tanh %288 : vector<8x128xf32>
    %290 = arith.subf %261, %289 : vector<8x128xf32>
    %291 = arith.mulf %283, %290 : vector<8x128xf32>
    %292 = arith.addf %289, %291 : vector<8x128xf32>
    %293 = arith.index_cast %c7_i32 : i32 to index
    %c0_62 = arith.constant 0 : index
    %c0_63 = arith.constant 0 : index
    %294 = vector.load %arg7[%293, %c0_62, %c0_63] : memref<12x8x128xf32, #tpu.memory_space<vmem>>, vector<1x8x128xf32>
    %295 = vector.shape_cast %294 : vector<1x8x128xf32> to vector<8x128xf32>
    %296 = vector.shape_cast %292 : vector<8x128xf32> to vector<1x8x128xf32>
    tpu.vector_store %arg7[%293, %c0_62, %c0_63], %296 {strides = array<i32>} : memref<12x8x128xf32, #tpu.memory_space<vmem>>, vector<1x8x128xf32>,
    %c8_i32 = arith.constant 8 : i32
    %297 = arith.mulf %292, %3 : vector<8x128xf32>
    %298 = arith.truncf %297 : vector<8x128xf32> to vector<8x128xbf16>
    %cst_64 = arith.constant dense<0.000000e+00> : vector<8x384xf32>
    %299 = tpu.matmul %298, %4, %cst_64 {dimension_numbers = #tpu.dot_dimension_numbers<[1], [0], [0], [1], [0, 0, 1, 1], [], []>} : vector<8x128xbf16>, vector<128x384xbf16>, vector<8x384xf32> -> vector<8x384xf32>
    %300 = arith.index_cast %c8_i32 : i32 to index
    %c0_65 = arith.constant 0 : index
    %c0_66 = arith.constant 0 : index
    %301 = vector.load %arg2[%300, %c0_65, %c0_66] : memref<12x8x384xbf16, #tpu.memory_space<vmem>>, vector<1x8x384xbf16>
    %302 = vector.shape_cast %301 : vector<1x8x384xbf16> to vector<8x384xbf16>
    %303 = arith.extf %302 : vector<8x384xbf16> to vector<8x384xf32>
    %304 = vector.extract_strided_slice %303 {offsets = [0, 0], sizes = [8, 128], strides = [1, 1]} : vector<8x384xf32> to vector<8x128xf32>
    %305 = vector.extract_strided_slice %299 {offsets = [0, 0], sizes = [8, 128], strides = [1, 1]} : vector<8x384xf32> to vector<8x128xf32>
    %306 = arith.addf %304, %305 : vector<8x128xf32>
    %307 = arith.negf %306 : vector<8x128xf32>
    %308 = math.exp %307 : vector<8x128xf32>
    %cst_67 = arith.constant 1.000000e+00 : f32
    %309 = vector.broadcast %cst_67 : f32 to vector<8x128xf32>
    %310 = arith.addf %309, %308 : vector<8x128xf32>
    %311 = arith.divf %309, %310 : vector<8x128xf32>
    %312 = vector.extract_strided_slice %303 {offsets = [0, 128], sizes = [8, 128], strides = [1, 1]} : vector<8x384xf32> to vector<8x128xf32>
    %313 = vector.extract_strided_slice %299 {offsets = [0, 128], sizes = [8, 128], strides = [1, 1]} : vector<8x384xf32> to vector<8x128xf32>
    %314 = arith.addf %312, %313 : vector<8x128xf32>
    %315 = arith.negf %314 : vector<8x128xf32>
    %316 = math.exp %315 : vector<8x128xf32>
    %cst_68 = arith.constant 1.000000e+00 : f32
    %317 = vector.broadcast %cst_68 : f32 to vector<8x128xf32>
    %318 = arith.addf %317, %316 : vector<8x128xf32>
    %319 = arith.divf %317, %318 : vector<8x128xf32>
    %320 = vector.extract_strided_slice %303 {offsets = [0, 256], sizes = [8, 128], strides = [1, 1]} : vector<8x384xf32> to vector<8x128xf32>
    %321 = vector.extract_strided_slice %299 {offsets = [0, 256], sizes = [8, 128], strides = [1, 1]} : vector<8x384xf32> to vector<8x128xf32>
    %322 = arith.addf %321, %7 : vector<8x128xf32>
    %323 = arith.mulf %311, %322 : vector<8x128xf32>
    %324 = arith.addf %320, %323 : vector<8x128xf32>
    %325 = math.tanh %324 : vector<8x128xf32>
    %326 = arith.subf %297, %325 : vector<8x128xf32>
    %327 = arith.mulf %319, %326 : vector<8x128xf32>
    %328 = arith.addf %325, %327 : vector<8x128xf32>
    %329 = arith.index_cast %c8_i32 : i32 to index
    %c0_69 = arith.constant 0 : index
    %c0_70 = arith.constant 0 : index
    %330 = vector.load %arg7[%329, %c0_69, %c0_70] : memref<12x8x128xf32, #tpu.memory_space<vmem>>, vector<1x8x128xf32>
    %331 = vector.shape_cast %330 : vector<1x8x128xf32> to vector<8x128xf32>
    %332 = vector.shape_cast %328 : vector<8x128xf32> to vector<1x8x128xf32>
    tpu.vector_store %arg7[%329, %c0_69, %c0_70], %332 {strides = array<i32>} : memref<12x8x128xf32, #tpu.memory_space<vmem>>, vector<1x8x128xf32>,
    %c9_i32 = arith.constant 9 : i32
    %333 = arith.mulf %328, %3 : vector<8x128xf32>
    %334 = arith.truncf %333 : vector<8x128xf32> to vector<8x128xbf16>
    %cst_71 = arith.constant dense<0.000000e+00> : vector<8x384xf32>
    %335 = tpu.matmul %334, %4, %cst_71 {dimension_numbers = #tpu.dot_dimension_numbers<[1], [0], [0], [1], [0, 0, 1, 1], [], []>} : vector<8x128xbf16>, vector<128x384xbf16>, vector<8x384xf32> -> vector<8x384xf32>
    %336 = arith.index_cast %c9_i32 : i32 to index
    %c0_72 = arith.constant 0 : index
    %c0_73 = arith.constant 0 : index
    %337 = vector.load %arg2[%336, %c0_72, %c0_73] : memref<12x8x384xbf16, #tpu.memory_space<vmem>>, vector<1x8x384xbf16>
    %338 = vector.shape_cast %337 : vector<1x8x384xbf16> to vector<8x384xbf16>
    %339 = arith.extf %338 : vector<8x384xbf16> to vector<8x384xf32>
    %340 = vector.extract_strided_slice %339 {offsets = [0, 0], sizes = [8, 128], strides = [1, 1]} : vector<8x384xf32> to vector<8x128xf32>
    %341 = vector.extract_strided_slice %335 {offsets = [0, 0], sizes = [8, 128], strides = [1, 1]} : vector<8x384xf32> to vector<8x128xf32>
    %342 = arith.addf %340, %341 : vector<8x128xf32>
    %343 = arith.negf %342 : vector<8x128xf32>
    %344 = math.exp %343 : vector<8x128xf32>
    %cst_74 = arith.constant 1.000000e+00 : f32
    %345 = vector.broadcast %cst_74 : f32 to vector<8x128xf32>
    %346 = arith.addf %345, %344 : vector<8x128xf32>
    %347 = arith.divf %345, %346 : vector<8x128xf32>
    %348 = vector.extract_strided_slice %339 {offsets = [0, 128], sizes = [8, 128], strides = [1, 1]} : vector<8x384xf32> to vector<8x128xf32>
    %349 = vector.extract_strided_slice %335 {offsets = [0, 128], sizes = [8, 128], strides = [1, 1]} : vector<8x384xf32> to vector<8x128xf32>
    %350 = arith.addf %348, %349 : vector<8x128xf32>
    %351 = arith.negf %350 : vector<8x128xf32>
    %352 = math.exp %351 : vector<8x128xf32>
    %cst_75 = arith.constant 1.000000e+00 : f32
    %353 = vector.broadcast %cst_75 : f32 to vector<8x128xf32>
    %354 = arith.addf %353, %352 : vector<8x128xf32>
    %355 = arith.divf %353, %354 : vector<8x128xf32>
    %356 = vector.extract_strided_slice %339 {offsets = [0, 256], sizes = [8, 128], strides = [1, 1]} : vector<8x384xf32> to vector<8x128xf32>
    %357 = vector.extract_strided_slice %335 {offsets = [0, 256], sizes = [8, 128], strides = [1, 1]} : vector<8x384xf32> to vector<8x128xf32>
    %358 = arith.addf %357, %7 : vector<8x128xf32>
    %359 = arith.mulf %347, %358 : vector<8x128xf32>
    %360 = arith.addf %356, %359 : vector<8x128xf32>
    %361 = math.tanh %360 : vector<8x128xf32>
    %362 = arith.subf %333, %361 : vector<8x128xf32>
    %363 = arith.mulf %355, %362 : vector<8x128xf32>
    %364 = arith.addf %361, %363 : vector<8x128xf32>
    %365 = arith.index_cast %c9_i32 : i32 to index
    %c0_76 = arith.constant 0 : index
    %c0_77 = arith.constant 0 : index
    %366 = vector.load %arg7[%365, %c0_76, %c0_77] : memref<12x8x128xf32, #tpu.memory_space<vmem>>, vector<1x8x128xf32>
    %367 = vector.shape_cast %366 : vector<1x8x128xf32> to vector<8x128xf32>
    %368 = vector.shape_cast %364 : vector<8x128xf32> to vector<1x8x128xf32>
    tpu.vector_store %arg7[%365, %c0_76, %c0_77], %368 {strides = array<i32>} : memref<12x8x128xf32, #tpu.memory_space<vmem>>, vector<1x8x128xf32>,
    %c10_i32 = arith.constant 10 : i32
    %369 = arith.mulf %364, %3 : vector<8x128xf32>
    %370 = arith.truncf %369 : vector<8x128xf32> to vector<8x128xbf16>
    %cst_78 = arith.constant dense<0.000000e+00> : vector<8x384xf32>
    %371 = tpu.matmul %370, %4, %cst_78 {dimension_numbers = #tpu.dot_dimension_numbers<[1], [0], [0], [1], [0, 0, 1, 1], [], []>} : vector<8x128xbf16>, vector<128x384xbf16>, vector<8x384xf32> -> vector<8x384xf32>
    %372 = arith.index_cast %c10_i32 : i32 to index
    %c0_79 = arith.constant 0 : index
    %c0_80 = arith.constant 0 : index
    %373 = vector.load %arg2[%372, %c0_79, %c0_80] : memref<12x8x384xbf16, #tpu.memory_space<vmem>>, vector<1x8x384xbf16>
    %374 = vector.shape_cast %373 : vector<1x8x384xbf16> to vector<8x384xbf16>
    %375 = arith.extf %374 : vector<8x384xbf16> to vector<8x384xf32>
    %376 = vector.extract_strided_slice %375 {offsets = [0, 0], sizes = [8, 128], strides = [1, 1]} : vector<8x384xf32> to vector<8x128xf32>
    %377 = vector.extract_strided_slice %371 {offsets = [0, 0], sizes = [8, 128], strides = [1, 1]} : vector<8x384xf32> to vector<8x128xf32>
    %378 = arith.addf %376, %377 : vector<8x128xf32>
    %379 = arith.negf %378 : vector<8x128xf32>
    %380 = math.exp %379 : vector<8x128xf32>
    %cst_81 = arith.constant 1.000000e+00 : f32
    %381 = vector.broadcast %cst_81 : f32 to vector<8x128xf32>
    %382 = arith.addf %381, %380 : vector<8x128xf32>
    %383 = arith.divf %381, %382 : vector<8x128xf32>
    %384 = vector.extract_strided_slice %375 {offsets = [0, 128], sizes = [8, 128], strides = [1, 1]} : vector<8x384xf32> to vector<8x128xf32>
    %385 = vector.extract_strided_slice %371 {offsets = [0, 128], sizes = [8, 128], strides = [1, 1]} : vector<8x384xf32> to vector<8x128xf32>
    %386 = arith.addf %384, %385 : vector<8x128xf32>
    %387 = arith.negf %386 : vector<8x128xf32>
    %388 = math.exp %387 : vector<8x128xf32>
    %cst_82 = arith.constant 1.000000e+00 : f32
    %389 = vector.broadcast %cst_82 : f32 to vector<8x128xf32>
    %390 = arith.addf %389, %388 : vector<8x128xf32>
    %391 = arith.divf %389, %390 : vector<8x128xf32>
    %392 = vector.extract_strided_slice %375 {offsets = [0, 256], sizes = [8, 128], strides = [1, 1]} : vector<8x384xf32> to vector<8x128xf32>
    %393 = vector.extract_strided_slice %371 {offsets = [0, 256], sizes = [8, 128], strides = [1, 1]} : vector<8x384xf32> to vector<8x128xf32>
    %394 = arith.addf %393, %7 : vector<8x128xf32>
    %395 = arith.mulf %383, %394 : vector<8x128xf32>
    %396 = arith.addf %392, %395 : vector<8x128xf32>
    %397 = math.tanh %396 : vector<8x128xf32>
    %398 = arith.subf %369, %397 : vector<8x128xf32>
    %399 = arith.mulf %391, %398 : vector<8x128xf32>
    %400 = arith.addf %397, %399 : vector<8x128xf32>
    %401 = arith.index_cast %c10_i32 : i32 to index
    %c0_83 = arith.constant 0 : index
    %c0_84 = arith.constant 0 : index
    %402 = vector.load %arg7[%401, %c0_83, %c0_84] : memref<12x8x128xf32, #tpu.memory_space<vmem>>, vector<1x8x128xf32>
    %403 = vector.shape_cast %402 : vector<1x8x128xf32> to vector<8x128xf32>
    %404 = vector.shape_cast %400 : vector<8x128xf32> to vector<1x8x128xf32>
    tpu.vector_store %arg7[%401, %c0_83, %c0_84], %404 {strides = array<i32>} : memref<12x8x128xf32, #tpu.memory_space<vmem>>, vector<1x8x128xf32>,
    %c11_i32 = arith.constant 11 : i32
    %405 = arith.mulf %400, %3 : vector<8x128xf32>
    %406 = arith.truncf %405 : vector<8x128xf32> to vector<8x128xbf16>
    %cst_85 = arith.constant dense<0.000000e+00> : vector<8x384xf32>
    %407 = tpu.matmul %406, %4, %cst_85 {dimension_numbers = #tpu.dot_dimension_numbers<[1], [0], [0], [1], [0, 0, 1, 1], [], []>} : vector<8x128xbf16>, vector<128x384xbf16>, vector<8x384xf32> -> vector<8x384xf32>
    %408 = arith.index_cast %c11_i32 : i32 to index
    %c0_86 = arith.constant 0 : index
    %c0_87 = arith.constant 0 : index
    %409 = vector.load %arg2[%408, %c0_86, %c0_87] : memref<12x8x384xbf16, #tpu.memory_space<vmem>>, vector<1x8x384xbf16>
    %410 = vector.shape_cast %409 : vector<1x8x384xbf16> to vector<8x384xbf16>
    %411 = arith.extf %410 : vector<8x384xbf16> to vector<8x384xf32>
    %412 = vector.extract_strided_slice %411 {offsets = [0, 0], sizes = [8, 128], strides = [1, 1]} : vector<8x384xf32> to vector<8x128xf32>
    %413 = vector.extract_strided_slice %407 {offsets = [0, 0], sizes = [8, 128], strides = [1, 1]} : vector<8x384xf32> to vector<8x128xf32>
    %414 = arith.addf %412, %413 : vector<8x128xf32>
    %415 = arith.negf %414 : vector<8x128xf32>
    %416 = math.exp %415 : vector<8x128xf32>
    %cst_88 = arith.constant 1.000000e+00 : f32
    %417 = vector.broadcast %cst_88 : f32 to vector<8x128xf32>
    %418 = arith.addf %417, %416 : vector<8x128xf32>
    %419 = arith.divf %417, %418 : vector<8x128xf32>
    %420 = vector.extract_strided_slice %411 {offsets = [0, 128], sizes = [8, 128], strides = [1, 1]} : vector<8x384xf32> to vector<8x128xf32>
    %421 = vector.extract_strided_slice %407 {offsets = [0, 128], sizes = [8, 128], strides = [1, 1]} : vector<8x384xf32> to vector<8x128xf32>
    %422 = arith.addf %420, %421 : vector<8x128xf32>
    %423 = arith.negf %422 : vector<8x128xf32>
    %424 = math.exp %423 : vector<8x128xf32>
    %cst_89 = arith.constant 1.000000e+00 : f32
    %425 = vector.broadcast %cst_89 : f32 to vector<8x128xf32>
    %426 = arith.addf %425, %424 : vector<8x128xf32>
    %427 = arith.divf %425, %426 : vector<8x128xf32>
    %428 = vector.extract_strided_slice %411 {offsets = [0, 256], sizes = [8, 128], strides = [1, 1]} : vector<8x384xf32> to vector<8x128xf32>
    %429 = vector.extract_strided_slice %407 {offsets = [0, 256], sizes = [8, 128], strides = [1, 1]} : vector<8x384xf32> to vector<8x128xf32>
    %430 = arith.addf %429, %7 : vector<8x128xf32>
    %431 = arith.mulf %419, %430 : vector<8x128xf32>
    %432 = arith.addf %428, %431 : vector<8x128xf32>
    %433 = math.tanh %432 : vector<8x128xf32>
    %434 = arith.subf %405, %433 : vector<8x128xf32>
    %435 = arith.mulf %427, %434 : vector<8x128xf32>
    %436 = arith.addf %433, %435 : vector<8x128xf32>
    %437 = arith.index_cast %c11_i32 : i32 to index
    %c0_90 = arith.constant 0 : index
    %c0_91 = arith.constant 0 : index
    %438 = vector.load %arg7[%437, %c0_90, %c0_91] : memref<12x8x128xf32, #tpu.memory_space<vmem>>, vector<1x8x128xf32>
    %439 = vector.shape_cast %438 : vector<1x8x128xf32> to vector<8x128xf32>
    %440 = vector.shape_cast %436 : vector<8x128xf32> to vector<1x8x128xf32>
    tpu.vector_store %arg7[%437, %c0_90, %c0_91], %440 {strides = array<i32>} : memref<12x8x128xf32, #tpu.memory_space<vmem>>, vector<1x8x128xf32>,
    %c12_i32 = arith.constant 12 : i32
    %c0_92 = arith.constant 0 : index
    %c0_93 = arith.constant 0 : index
    %441 = vector.load %arg8[%c0_92, %c0_93] : memref<8x128xf32, #tpu.memory_space<vmem>>, vector<8x128xf32>
    tpu.vector_store %arg8[%c0_92, %c0_93], %436 {strides = array<i32>} : memref<8x128xf32, #tpu.memory_space<vmem>>, vector<8x128xf32>,
    return
  }
  func.func @transform_0(%arg0: i32, %arg1: i32) -> (i32, i32, i32) {
    %c0_i32 = arith.constant 0 : i32
    %c0_i32_0 = arith.constant 0 : i32
    return %arg1, %arg0, %c0_i32 : i32, i32, i32
  }
  func.func @transform_1(%arg0: i32, %arg1: i32) -> (i32, i32) {
    %c0_i32 = arith.constant 0 : i32
    %c0_i32_0 = arith.constant 0 : i32
    return %arg0, %c0_i32 : i32, i32
  }
  func.func @transform_2(%arg0: i32, %arg1: i32) -> (i32, i32) {
    %c0_i32 = arith.constant 0 : i32
    %c0_i32_0 = arith.constant 0 : i32
    return %arg0, %c0_i32 : i32, i32
  }
  func.func @transform_3(%arg0: i32, %arg1: i32) -> (i32, i32) {
    %c0_i32 = arith.constant 0 : i32
    %c0_i32_0 = arith.constant 0 : i32
    %c0_i32_1 = arith.constant 0 : i32
    return %c0_i32, %c0_i32_0 : i32, i32
  }
  func.func @transform_4(%arg0: i32, %arg1: i32) -> (i32, i32) {
    %c0_i32 = arith.constant 0 : i32
    %c0_i32_0 = arith.constant 0 : i32
    %c0_i32_1 = arith.constant 0 : i32
    return %c0_i32, %c0_i32_0 : i32, i32
  }
  func.func @transform_5(%arg0: i32, %arg1: i32) -> (i32, i32, i32) {
    %c0_i32 = arith.constant 0 : i32
    %c0_i32_0 = arith.constant 0 : i32
    return %arg1, %arg0, %c0_i32 : i32, i32, i32
  }
}

module attributes {stable_mosaic.version = 11 : i64} {
  func.func @gru_dropout_kernel(%arg0: i32, %arg1: i32, %arg2: memref<12x8x384xbf16, #tpu.memory_space<vmem>>, %arg3: memref<8x128xf32, #tpu.memory_space<vmem>>, %arg4: memref<8x128xf32, #tpu.memory_space<vmem>>, %arg5: memref<128x384xbf16, #tpu.memory_space<vmem>>, %arg6: memref<1x128xf32, #tpu.memory_space<vmem>>, %arg7: memref<12x8x128xf32, #tpu.memory_space<vmem>>, %arg8: memref<8x128xf32, #tpu.memory_space<vmem>>) attributes {dimension_semantics = [#tpu.dimension_semantics<parallel>, #tpu.dimension_semantics<arbitrary>], iteration_bounds = array<i64: 1, 1>, scalar_prefetch = 0 : i64, scratch_operands = 1 : i64, tpu.core_type = #tpu.core_type<tc>, window_params = [{transform_indices = @transform_0, window_bounds = array<i64: 12, 8, 384>}, {transform_indices = @transform_1, window_bounds = array<i64: 8, 128>}, {transform_indices = @transform_2, window_bounds = array<i64: 8, 128>}, {pipeline_mode = #tpu.pipeline_mode<synchronous>, transform_indices = @transform_3, window_bounds = array<i64: 128, 384>}, {pipeline_mode = #tpu.pipeline_mode<synchronous>, transform_indices = @transform_4, window_bounds = array<i64: 1, 128>}, {transform_indices = @transform_5, window_bounds = array<i64: 12, 8, 128>}]} {
    %c0_i32 = arith.constant 0 : i32
    %0 = arith.cmpi eq, %arg1, %c0_i32 : i32
    %1 = arith.extui %0 : i1 to i32
    %c0_i32_0 = arith.constant 0 : i32
    %2 = arith.cmpi ne, %1, %c0_i32_0 : i32
    scf.if %2 {
      %c0_94 = arith.constant 0 : index
      %c0_95 = arith.constant 0 : index
      %442 = vector.load %arg3[%c0_94, %c0_95] : memref<8x128xf32, #tpu.memory_space<vmem>>, vector<8x128xf32>
      %c0_96 = arith.constant 0 : index
      %c0_97 = arith.constant 0 : index
      %443 = vector.load %arg8[%c0_96, %c0_97] : memref<8x128xf32, #tpu.memory_space<vmem>>, vector<8x128xf32>
      tpu.vector_store %arg8[%c0_96, %c0_97], %442 {strides = array<i32>} : memref<8x128xf32, #tpu.memory_space<vmem>>, vector<8x128xf32>,
    } else {
    }
    %c0 = arith.constant 0 : index
    %c0_1 = arith.constant 0 : index
    %3 = vector.load %arg4[%c0, %c0_1] : memref<8x128xf32, #tpu.memory_space<vmem>>, vector<8x128xf32>
    %c0_2 = arith.constant 0 : index
    %c0_3 = arith.constant 0 : index
    %4 = vector.load %arg5[%c0_2, %c0_3] : memref<128x384xbf16, #tpu.memory_space<vmem>>, vector<128x384xbf16>
    %c0_4 = arith.constant 0 : index
    %c0_5 = arith.constant 0 : index
    %5 = vector.load %arg6[%c0_4, %c0_5] : memref<1x128xf32, #tpu.memory_space<vmem>>, vector<1x128xf32>
    %6 = vector.shape_cast %5 : vector<1x128xf32> to vector<1x128xf32>
    %7 = vector.broadcast %6 : vector<1x128xf32> to vector<8x128xf32>
    %c0_6 = arith.constant 0 : index
    %c0_7 = arith.constant 0 : index
    %8 = vector.load %arg8[%c0_6, %c0_7] : memref<8x128xf32, #tpu.memory_space<vmem>>, vector<8x128xf32>
    %c0_i32_8 = arith.constant 0 : i32
    %9 = arith.mulf %8, %3 : vector<8x128xf32>
    %10 = arith.truncf %9 : vector<8x128xf32> to vector<8x128xbf16>
    %cst = arith.constant dense<0.000000e+00> : vector<8x384xf32>
    %11 = tpu.matmul %10, %4, %cst {dimension_numbers = #tpu.dot_dimension_numbers<[1], [0], [0], [1], [0, 0, 1, 1], [], []>} : vector<8x128xbf16>, vector<128x384xbf16>, vector<8x384xf32> -> vector<8x384xf32>
    %12 = arith.index_cast %c0_i32_8 : i32 to index
    %c0_9 = arith.constant 0 : index
    %c0_10 = arith.constant 0 : index
    %13 = vector.load %arg2[%12, %c0_9, %c0_10] : memref<12x8x384xbf16, #tpu.memory_space<vmem>>, vector<1x8x384xbf16>
    %14 = vector.shape_cast %13 : vector<1x8x384xbf16> to vector<8x384xbf16>
    %15 = arith.extf %14 : vector<8x384xbf16> to vector<8x384xf32>
    %16 = vector.extract_strided_slice %15 {offsets = [0, 0], sizes = [8, 128], strides = [1, 1]} : vector<8x384xf32> to vector<8x128xf32>
    %17 = vector.extract_strided_slice %11 {offsets = [0, 0], sizes = [8, 128], strides = [1, 1]} : vector<8x384xf32> to vector<8x128xf32>
    %18 = arith.addf %16, %17 : vector<8x128xf32>
    %19 = arith.negf %18 : vector<8x128xf32>
    %20 = math.exp %19 : vector<8x128xf32>
    %cst_11 = arith.constant 1.000000e+00 : f32
    %21 = vector.broadcast %cst_11 : f32 to vector<8x128xf32>
    %22 = arith.addf %21, %20 : vector<8x128xf32>
    %23 = arith.divf %21, %22 : vector<8x128xf32>
    %24 = vector.extract_strided_slice %15 {offsets = [0, 128], sizes = [8, 128], strides = [1, 1]} : vector<8x384xf32> to vector<8x128xf32>
    %25 = vector.extract_strided_slice %11 {offsets = [0, 128], sizes = [8, 128], strides = [1, 1]} : vector<8x384xf32> to vector<8x128xf32>
    %26 = arith.addf %24, %25 : vector<8x128xf32>
    %27 = arith.negf %26 : vector<8x128xf32>
    %28 = math.exp %27 : vector<8x128xf32>
    %cst_12 = arith.constant 1.000000e+00 : f32
    %29 = vector.broadcast %cst_12 : f32 to vector<8x128xf32>
    %30 = arith.addf %29, %28 : vector<8x128xf32>
    %31 = arith.divf %29, %30 : vector<8x128xf32>
    %32 = vector.extract_strided_slice %15 {offsets = [0, 256], sizes = [8, 128], strides = [1, 1]} : vector<8x384xf32> to vector<8x128xf32>
    %33 = vector.extract_strided_slice %11 {offsets = [0, 256], sizes = [8, 128], strides = [1, 1]} : vector<8x384xf32> to vector<8x128xf32>
    %34 = arith.addf %33, %7 : vector<8x128xf32>
    %35 = arith.mulf %23, %34 : vector<8x128xf32>
    %36 = arith.addf %32, %35 : vector<8x128xf32>
    %37 = math.tanh %36 : vector<8x128xf32>
    %38 = arith.subf %9, %37 : vector<8x128xf32>
    %39 = arith.mulf %31, %38 : vector<8x128xf32>
    %40 = arith.addf %37, %39 : vector<8x128xf32>
    %41 = arith.index_cast %c0_i32_8 : i32 to index
    %c0_13 = arith.constant 0 : index
    %c0_14 = arith.constant 0 : index
    %42 = vector.load %arg7[%41, %c0_13, %c0_14] : memref<12x8x128xf32, #tpu.memory_space<vmem>>, vector<1x8x128xf32>
    %43 = vector.shape_cast %42 : vector<1x8x128xf32> to vector<8x128xf32>
    %44 = vector.shape_cast %40 : vector<8x128xf32> to vector<1x8x128xf32>
    tpu.vector_store %arg7[%41, %c0_13, %c0_14], %44 {strides = array<i32>} : memref<12x8x128xf32, #tpu.memory_space<vmem>>, vector<1x8x128xf32>,
    %c1_i32 = arith.constant 1 : i32
    %45 = arith.mulf %40, %3 : vector<8x128xf32>
    %46 = arith.truncf %45 : vector<8x128xf32> to vector<8x128xbf16>
    %cst_15 = arith.constant dense<0.000000e+00> : vector<8x384xf32>
    %47 = tpu.matmul %46, %4, %cst_15 {dimension_numbers = #tpu.dot_dimension_numbers<[1], [0], [0], [1], [0, 0, 1, 1], [], []>} : vector<8x128xbf16>, vector<128x384xbf16>, vector<8x384xf32> -> vector<8x384xf32>
    %48 = arith.index_cast %c1_i32 : i32 to index
    %c0_16 = arith.constant 0 : index
    %c0_17 = arith.constant 0 : index
    %49 = vector.load %arg2[%48, %c0_16, %c0_17] : memref<12x8x384xbf16, #tpu.memory_space<vmem>>, vector<1x8x384xbf16>
    %50 = vector.shape_cast %49 : vector<1x8x384xbf16> to vector<8x384xbf16>
    %51 = arith.extf %50 : vector<8x384xbf16> to vector<8x384xf32>
    %52 = vector.extract_strided_slice %51 {offsets = [0, 0], sizes = [8, 128], strides = [1, 1]} : vector<8x384xf32> to vector<8x128xf32>
    %53 = vector.extract_strided_slice %47 {offsets = [0, 0], sizes = [8, 128], strides = [1, 1]} : vector<8x384xf32> to vector<8x128xf32>
    %54 = arith.addf %52, %53 : vector<8x128xf32>
    %55 = arith.negf %54 : vector<8x128xf32>
    %56 = math.exp %55 : vector<8x128xf32>
    %cst_18 = arith.constant 1.000000e+00 : f32
    %57 = vector.broadcast %cst_18 : f32 to vector<8x128xf32>
    %58 = arith.addf %57, %56 : vector<8x128xf32>
    %59 = arith.divf %57, %58 : vector<8x128xf32>
    %60 = vector.extract_strided_slice %51 {offsets = [0, 128], sizes = [8, 128], strides = [1, 1]} : vector<8x384xf32> to vector<8x128xf32>
    %61 = vector.extract_strided_slice %47 {offsets = [0, 128], sizes = [8, 128], strides = [1, 1]} : vector<8x384xf32> to vector<8x128xf32>
    %62 = arith.addf %60, %61 : vector<8x128xf32>
    %63 = arith.negf %62 : vector<8x128xf32>
    %64 = math.exp %63 : vector<8x128xf32>
    %cst_19 = arith.constant 1.000000e+00 : f32
    %65 = vector.broadcast %cst_19 : f32 to vector<8x128xf32>
    %66 = arith.addf %65, %64 : vector<8x128xf32>
    %67 = arith.divf %65, %66 : vector<8x128xf32>
    %68 = vector.extract_strided_slice %51 {offsets = [0, 256], sizes = [8, 128], strides = [1, 1]} : vector<8x384xf32> to vector<8x128xf32>
    %69 = vector.extract_strided_slice %47 {offsets = [0, 256], sizes = [8, 128], strides = [1, 1]} : vector<8x384xf32> to vector<8x128xf32>
    %70 = arith.addf %69, %7 : vector<8x128xf32>
    %71 = arith.mulf %59, %70 : vector<8x128xf32>
    %72 = arith.addf %68, %71 : vector<8x128xf32>
    %73 = math.tanh %72 : vector<8x128xf32>
    %74 = arith.subf %45, %73 : vector<8x128xf32>
    %75 = arith.mulf %67, %74 : vector<8x128xf32>
    %76 = arith.addf %73, %75 : vector<8x128xf32>
    %77 = arith.index_cast %c1_i32 : i32 to index
    %c0_20 = arith.constant 0 : index
    %c0_21 = arith.constant 0 : index
    %78 = vector.load %arg7[%77, %c0_20, %c0_21] : memref<12x8x128xf32, #tpu.memory_space<vmem>>, vector<1x8x128xf32>
    %79 = vector.shape_cast %78 : vector<1x8x128xf32> to vector<8x128xf32>
    %80 = vector.shape_cast %76 : vector<8x128xf32> to vector<1x8x128xf32>
    tpu.vector_store %arg7[%77, %c0_20, %c0_21], %80 {strides = array<i32>} : memref<12x8x128xf32, #tpu.memory_space<vmem>>, vector<1x8x128xf32>,
    %c2_i32 = arith.constant 2 : i32
    %81 = arith.mulf %76, %3 : vector<8x128xf32>
    %82 = arith.truncf %81 : vector<8x128xf32> to vector<8x128xbf16>
    %cst_22 = arith.constant dense<0.000000e+00> : vector<8x384xf32>
    %83 = tpu.matmul %82, %4, %cst_22 {dimension_numbers = #tpu.dot_dimension_numbers<[1], [0], [0], [1], [0, 0, 1, 1], [], []>} : vector<8x128xbf16>, vector<128x384xbf16>, vector<8x384xf32> -> vector<8x384xf32>
    %84 = arith.index_cast %c2_i32 : i32 to index
    %c0_23 = arith.constant 0 : index
    %c0_24 = arith.constant 0 : index
    %85 = vector.load %arg2[%84, %c0_23, %c0_24] : memref<12x8x384xbf16, #tpu.memory_space<vmem>>, vector<1x8x384xbf16>
    %86 = vector.shape_cast %85 : vector<1x8x384xbf16> to vector<8x384xbf16>
    %87 = arith.extf %86 : vector<8x384xbf16> to vector<8x384xf32>
    %88 = vector.extract_strided_slice %87 {offsets = [0, 0], sizes = [8, 128], strides = [1, 1]} : vector<8x384xf32> to vector<8x128xf32>
    %89 = vector.extract_strided_slice %83 {offsets = [0, 0], sizes = [8, 128], strides = [1, 1]} : vector<8x384xf32> to vector<8x128xf32>
    %90 = arith.addf %88, %89 : vector<8x128xf32>
    %91 = arith.negf %90 : vector<8x128xf32>
    %92 = math.exp %91 : vector<8x128xf32>
    %cst_25 = arith.constant 1.000000e+00 : f32
    %93 = vector.broadcast %cst_25 : f32 to vector<8x128xf32>
    %94 = arith.addf %93, %92 : vector<8x128xf32>
    %95 = arith.divf %93, %94 : vector<8x128xf32>
    %96 = vector.extract_strided_slice %87 {offsets = [0, 128], sizes = [8, 128], strides = [1, 1]} : vector<8x384xf32> to vector<8x128xf32>
    %97 = vector.extract_strided_slice %83 {offsets = [0, 128], sizes = [8, 128], strides = [1, 1]} : vector<8x384xf32> to vector<8x128xf32>
    %98 = arith.addf %96, %97 : vector<8x128xf32>
    %99 = arith.negf %98 : vector<8x128xf32>
    %100 = math.exp %99 : vector<8x128xf32>
    %cst_26 = arith.constant 1.000000e+00 : f32
    %101 = vector.broadcast %cst_26 : f32 to vector<8x128xf32>
    %102 = arith.addf %101, %100 : vector<8x128xf32>
    %103 = arith.divf %101, %102 : vector<8x128xf32>
    %104 = vector.extract_strided_slice %87 {offsets = [0, 256], sizes = [8, 128], strides = [1, 1]} : vector<8x384xf32> to vector<8x128xf32>
    %105 = vector.extract_strided_slice %83 {offsets = [0, 256], sizes = [8, 128], strides = [1, 1]} : vector<8x384xf32> to vector<8x128xf32>
    %106 = arith.addf %105, %7 : vector<8x128xf32>
    %107 = arith.mulf %95, %106 : vector<8x128xf32>
    %108 = arith.addf %104, %107 : vector<8x128xf32>
    %109 = math.tanh %108 : vector<8x128xf32>
    %110 = arith.subf %81, %109 : vector<8x128xf32>
    %111 = arith.mulf %103, %110 : vector<8x128xf32>
    %112 = arith.addf %109, %111 : vector<8x128xf32>
    %113 = arith.index_cast %c2_i32 : i32 to index
    %c0_27 = arith.constant 0 : index
    %c0_28 = arith.constant 0 : index
    %114 = vector.load %arg7[%113, %c0_27, %c0_28] : memref<12x8x128xf32, #tpu.memory_space<vmem>>, vector<1x8x128xf32>
    %115 = vector.shape_cast %114 : vector<1x8x128xf32> to vector<8x128xf32>
    %116 = vector.shape_cast %112 : vector<8x128xf32> to vector<1x8x128xf32>
    tpu.vector_store %arg7[%113, %c0_27, %c0_28], %116 {strides = array<i32>} : memref<12x8x128xf32, #tpu.memory_space<vmem>>, vector<1x8x128xf32>,
    %c3_i32 = arith.constant 3 : i32
    %117 = arith.mulf %112, %3 : vector<8x128xf32>
    %118 = arith.truncf %117 : vector<8x128xf32> to vector<8x128xbf16>
    %cst_29 = arith.constant dense<0.000000e+00> : vector<8x384xf32>
    %119 = tpu.matmul %118, %4, %cst_29 {dimension_numbers = #tpu.dot_dimension_numbers<[1], [0], [0], [1], [0, 0, 1, 1], [], []>} : vector<8x128xbf16>, vector<128x384xbf16>, vector<8x384xf32> -> vector<8x384xf32>
    %120 = arith.index_cast %c3_i32 : i32 to index
    %c0_30 = arith.constant 0 : index
    %c0_31 = arith.constant 0 : index
    %121 = vector.load %arg2[%120, %c0_30, %c0_31] : memref<12x8x384xbf16, #tpu.memory_space<vmem>>, vector<1x8x384xbf16>
    %122 = vector.shape_cast %121 : vector<1x8x384xbf16> to vector<8x384xbf16>
    %123 = arith.extf %122 : vector<8x384xbf16> to vector<8x384xf32>
    %124 = vector.extract_strided_slice %123 {offsets = [0, 0], sizes = [8, 128], strides = [1, 1]} : vector<8x384xf32> to vector<8x128xf32>
    %125 = vector.extract_strided_slice %119 {offsets = [0, 0], sizes = [8, 128], strides = [1, 1]} : vector<8x384xf32> to vector<8x128xf32>
    %126 = arith.addf %124, %125 : vector<8x128xf32>
    %127 = arith.negf %126 : vector<8x128xf32>
    %128 = math.exp %127 : vector<8x128xf32>
    %cst_32 = arith.constant 1.000000e+00 : f32
    %129 = vector.broadcast %cst_32 : f32 to vector<8x128xf32>
    %130 = arith.addf %129, %128 : vector<8x128xf32>
    %131 = arith.divf %129, %130 : vector<8x128xf32>
    %132 = vector.extract_strided_slice %123 {offsets = [0, 128], sizes = [8, 128], strides = [1, 1]} : vector<8x384xf32> to vector<8x128xf32>
    %133 = vector.extract_strided_slice %119 {offsets = [0, 128], sizes = [8, 128], strides = [1, 1]} : vector<8x384xf32> to vector<8x128xf32>
    %134 = arith.addf %132, %133 : vector<8x128xf32>
    %135 = arith.negf %134 : vector<8x128xf32>
    %136 = math.exp %135 : vector<8x128xf32>
    %cst_33 = arith.constant 1.000000e+00 : f32
    %137 = vector.broadcast %cst_33 : f32 to vector<8x128xf32>
    %138 = arith.addf %137, %136 : vector<8x128xf32>
    %139 = arith.divf %137, %138 : vector<8x128xf32>
    %140 = vector.extract_strided_slice %123 {offsets = [0, 256], sizes = [8, 128], strides = [1, 1]} : vector<8x384xf32> to vector<8x128xf32>
    %141 = vector.extract_strided_slice %119 {offsets = [0, 256], sizes = [8, 128], strides = [1, 1]} : vector<8x384xf32> to vector<8x128xf32>
    %142 = arith.addf %141, %7 : vector<8x128xf32>
    %143 = arith.mulf %131, %142 : vector<8x128xf32>
    %144 = arith.addf %140, %143 : vector<8x128xf32>
    %145 = math.tanh %144 : vector<8x128xf32>
    %146 = arith.subf %117, %145 : vector<8x128xf32>
    %147 = arith.mulf %139, %146 : vector<8x128xf32>
    %148 = arith.addf %145, %147 : vector<8x128xf32>
    %149 = arith.index_cast %c3_i32 : i32 to index
    %c0_34 = arith.constant 0 : index
    %c0_35 = arith.constant 0 : index
    %150 = vector.load %arg7[%149, %c0_34, %c0_35] : memref<12x8x128xf32, #tpu.memory_space<vmem>>, vector<1x8x128xf32>
    %151 = vector.shape_cast %150 : vector<1x8x128xf32> to vector<8x128xf32>
    %152 = vector.shape_cast %148 : vector<8x128xf32> to vector<1x8x128xf32>
    tpu.vector_store %arg7[%149, %c0_34, %c0_35], %152 {strides = array<i32>} : memref<12x8x128xf32, #tpu.memory_space<vmem>>, vector<1x8x128xf32>,
    %c4_i32 = arith.constant 4 : i32
    %153 = arith.mulf %148, %3 : vector<8x128xf32>
    %154 = arith.truncf %153 : vector<8x128xf32> to vector<8x128xbf16>
    %cst_36 = arith.constant dense<0.000000e+00> : vector<8x384xf32>
    %155 = tpu.matmul %154, %4, %cst_36 {dimension_numbers = #tpu.dot_dimension_numbers<[1], [0], [0], [1], [0, 0, 1, 1], [], []>} : vector<8x128xbf16>, vector<128x384xbf16>, vector<8x384xf32> -> vector<8x384xf32>
    %156 = arith.index_cast %c4_i32 : i32 to index
    %c0_37 = arith.constant 0 : index
    %c0_38 = arith.constant 0 : index
    %157 = vector.load %arg2[%156, %c0_37, %c0_38] : memref<12x8x384xbf16, #tpu.memory_space<vmem>>, vector<1x8x384xbf16>
    %158 = vector.shape_cast %157 : vector<1x8x384xbf16> to vector<8x384xbf16>
    %159 = arith.extf %158 : vector<8x384xbf16> to vector<8x384xf32>
    %160 = vector.extract_strided_slice %159 {offsets = [0, 0], sizes = [8, 128], strides = [1, 1]} : vector<8x384xf32> to vector<8x128xf32>
    %161 = vector.extract_strided_slice %155 {offsets = [0, 0], sizes = [8, 128], strides = [1, 1]} : vector<8x384xf32> to vector<8x128xf32>
    %162 = arith.addf %160, %161 : vector<8x128xf32>
    %163 = arith.negf %162 : vector<8x128xf32>
    %164 = math.exp %163 : vector<8x128xf32>
    %cst_39 = arith.constant 1.000000e+00 : f32
    %165 = vector.broadcast %cst_39 : f32 to vector<8x128xf32>
    %166 = arith.addf %165, %164 : vector<8x128xf32>
    %167 = arith.divf %165, %166 : vector<8x128xf32>
    %168 = vector.extract_strided_slice %159 {offsets = [0, 128], sizes = [8, 128], strides = [1, 1]} : vector<8x384xf32> to vector<8x128xf32>
    %169 = vector.extract_strided_slice %155 {offsets = [0, 128], sizes = [8, 128], strides = [1, 1]} : vector<8x384xf32> to vector<8x128xf32>
    %170 = arith.addf %168, %169 : vector<8x128xf32>
    %171 = arith.negf %170 : vector<8x128xf32>
    %172 = math.exp %171 : vector<8x128xf32>
    %cst_40 = arith.constant 1.000000e+00 : f32
    %173 = vector.broadcast %cst_40 : f32 to vector<8x128xf32>
    %174 = arith.addf %173, %172 : vector<8x128xf32>
    %175 = arith.divf %173, %174 : vector<8x128xf32>
    %176 = vector.extract_strided_slice %159 {offsets = [0, 256], sizes = [8, 128], strides = [1, 1]} : vector<8x384xf32> to vector<8x128xf32>
    %177 = vector.extract_strided_slice %155 {offsets = [0, 256], sizes = [8, 128], strides = [1, 1]} : vector<8x384xf32> to vector<8x128xf32>
    %178 = arith.addf %177, %7 : vector<8x128xf32>
    %179 = arith.mulf %167, %178 : vector<8x128xf32>
    %180 = arith.addf %176, %179 : vector<8x128xf32>
    %181 = math.tanh %180 : vector<8x128xf32>
    %182 = arith.subf %153, %181 : vector<8x128xf32>
    %183 = arith.mulf %175, %182 : vector<8x128xf32>
    %184 = arith.addf %181, %183 : vector<8x128xf32>
    %185 = arith.index_cast %c4_i32 : i32 to index
    %c0_41 = arith.constant 0 : index
    %c0_42 = arith.constant 0 : index
    %186 = vector.load %arg7[%185, %c0_41, %c0_42] : memref<12x8x128xf32, #tpu.memory_space<vmem>>, vector<1x8x128xf32>
    %187 = vector.shape_cast %186 : vector<1x8x128xf32> to vector<8x128xf32>
    %188 = vector.shape_cast %184 : vector<8x128xf32> to vector<1x8x128xf32>
    tpu.vector_store %arg7[%185, %c0_41, %c0_42], %188 {strides = array<i32>} : memref<12x8x128xf32, #tpu.memory_space<vmem>>, vector<1x8x128xf32>,
    %c5_i32 = arith.constant 5 : i32
    %189 = arith.mulf %184, %3 : vector<8x128xf32>
    %190 = arith.truncf %189 : vector<8x128xf32> to vector<8x128xbf16>
    %cst_43 = arith.constant dense<0.000000e+00> : vector<8x384xf32>
    %191 = tpu.matmul %190, %4, %cst_43 {dimension_numbers = #tpu.dot_dimension_numbers<[1], [0], [0], [1], [0, 0, 1, 1], [], []>} : vector<8x128xbf16>, vector<128x384xbf16>, vector<8x384xf32> -> vector<8x384xf32>
    %192 = arith.index_cast %c5_i32 : i32 to index
    %c0_44 = arith.constant 0 : index
    %c0_45 = arith.constant 0 : index
    %193 = vector.load %arg2[%192, %c0_44, %c0_45] : memref<12x8x384xbf16, #tpu.memory_space<vmem>>, vector<1x8x384xbf16>
    %194 = vector.shape_cast %193 : vector<1x8x384xbf16> to vector<8x384xbf16>
    %195 = arith.extf %194 : vector<8x384xbf16> to vector<8x384xf32>
    %196 = vector.extract_strided_slice %195 {offsets = [0, 0], sizes = [8, 128], strides = [1, 1]} : vector<8x384xf32> to vector<8x128xf32>
    %197 = vector.extract_strided_slice %191 {offsets = [0, 0], sizes = [8, 128], strides = [1, 1]} : vector<8x384xf32> to vector<8x128xf32>
    %198 = arith.addf %196, %197 : vector<8x128xf32>
    %199 = arith.negf %198 : vector<8x128xf32>
    %200 = math.exp %199 : vector<8x128xf32>
    %cst_46 = arith.constant 1.000000e+00 : f32
    %201 = vector.broadcast %cst_46 : f32 to vector<8x128xf32>
    %202 = arith.addf %201, %200 : vector<8x128xf32>
    %203 = arith.divf %201, %202 : vector<8x128xf32>
    %204 = vector.extract_strided_slice %195 {offsets = [0, 128], sizes = [8, 128], strides = [1, 1]} : vector<8x384xf32> to vector<8x128xf32>
    %205 = vector.extract_strided_slice %191 {offsets = [0, 128], sizes = [8, 128], strides = [1, 1]} : vector<8x384xf32> to vector<8x128xf32>
    %206 = arith.addf %204, %205 : vector<8x128xf32>
    %207 = arith.negf %206 : vector<8x128xf32>
    %208 = math.exp %207 : vector<8x128xf32>
    %cst_47 = arith.constant 1.000000e+00 : f32
    %209 = vector.broadcast %cst_47 : f32 to vector<8x128xf32>
    %210 = arith.addf %209, %208 : vector<8x128xf32>
    %211 = arith.divf %209, %210 : vector<8x128xf32>
    %212 = vector.extract_strided_slice %195 {offsets = [0, 256], sizes = [8, 128], strides = [1, 1]} : vector<8x384xf32> to vector<8x128xf32>
    %213 = vector.extract_strided_slice %191 {offsets = [0, 256], sizes = [8, 128], strides = [1, 1]} : vector<8x384xf32> to vector<8x128xf32>
    %214 = arith.addf %213, %7 : vector<8x128xf32>
    %215 = arith.mulf %203, %214 : vector<8x128xf32>
    %216 = arith.addf %212, %215 : vector<8x128xf32>
    %217 = math.tanh %216 : vector<8x128xf32>
    %218 = arith.subf %189, %217 : vector<8x128xf32>
    %219 = arith.mulf %211, %218 : vector<8x128xf32>
    %220 = arith.addf %217, %219 : vector<8x128xf32>
    %221 = arith.index_cast %c5_i32 : i32 to index
    %c0_48 = arith.constant 0 : index
    %c0_49 = arith.constant 0 : index
    %222 = vector.load %arg7[%221, %c0_48, %c0_49] : memref<12x8x128xf32, #tpu.memory_space<vmem>>, vector<1x8x128xf32>
    %223 = vector.shape_cast %222 : vector<1x8x128xf32> to vector<8x128xf32>
    %224 = vector.shape_cast %220 : vector<8x128xf32> to vector<1x8x128xf32>
    tpu.vector_store %arg7[%221, %c0_48, %c0_49], %224 {strides = array<i32>} : memref<12x8x128xf32, #tpu.memory_space<vmem>>, vector<1x8x128xf32>,
    %c6_i32 = arith.constant 6 : i32
    %225 = arith.mulf %220, %3 : vector<8x128xf32>
    %226 = arith.truncf %225 : vector<8x128xf32> to vector<8x128xbf16>
    %cst_50 = arith.constant dense<0.000000e+00> : vector<8x384xf32>
    %227 = tpu.matmul %226, %4, %cst_50 {dimension_numbers = #tpu.dot_dimension_numbers<[1], [0], [0], [1], [0, 0, 1, 1], [], []>} : vector<8x128xbf16>, vector<128x384xbf16>, vector<8x384xf32> -> vector<8x384xf32>
    %228 = arith.index_cast %c6_i32 : i32 to index
    %c0_51 = arith.constant 0 : index
    %c0_52 = arith.constant 0 : index
    %229 = vector.load %arg2[%228, %c0_51, %c0_52] : memref<12x8x384xbf16, #tpu.memory_space<vmem>>, vector<1x8x384xbf16>
    %230 = vector.shape_cast %229 : vector<1x8x384xbf16> to vector<8x384xbf16>
    %231 = arith.extf %230 : vector<8x384xbf16> to vector<8x384xf32>
    %232 = vector.extract_strided_slice %231 {offsets = [0, 0], sizes = [8, 128], strides = [1, 1]} : vector<8x384xf32> to vector<8x128xf32>
    %233 = vector.extract_strided_slice %227 {offsets = [0, 0], sizes = [8, 128], strides = [1, 1]} : vector<8x384xf32> to vector<8x128xf32>
    %234 = arith.addf %232, %233 : vector<8x128xf32>
    %235 = arith.negf %234 : vector<8x128xf32>
    %236 = math.exp %235 : vector<8x128xf32>
    %cst_53 = arith.constant 1.000000e+00 : f32
    %237 = vector.broadcast %cst_53 : f32 to vector<8x128xf32>
    %238 = arith.addf %237, %236 : vector<8x128xf32>
    %239 = arith.divf %237, %238 : vector<8x128xf32>
    %240 = vector.extract_strided_slice %231 {offsets = [0, 128], sizes = [8, 128], strides = [1, 1]} : vector<8x384xf32> to vector<8x128xf32>
    %241 = vector.extract_strided_slice %227 {offsets = [0, 128], sizes = [8, 128], strides = [1, 1]} : vector<8x384xf32> to vector<8x128xf32>
    %242 = arith.addf %240, %241 : vector<8x128xf32>
    %243 = arith.negf %242 : vector<8x128xf32>
    %244 = math.exp %243 : vector<8x128xf32>
    %cst_54 = arith.constant 1.000000e+00 : f32
    %245 = vector.broadcast %cst_54 : f32 to vector<8x128xf32>
    %246 = arith.addf %245, %244 : vector<8x128xf32>
    %247 = arith.divf %245, %246 : vector<8x128xf32>
    %248 = vector.extract_strided_slice %231 {offsets = [0, 256], sizes = [8, 128], strides = [1, 1]} : vector<8x384xf32> to vector<8x128xf32>
    %249 = vector.extract_strided_slice %227 {offsets = [0, 256], sizes = [8, 128], strides = [1, 1]} : vector<8x384xf32> to vector<8x128xf32>
    %250 = arith.addf %249, %7 : vector<8x128xf32>
    %251 = arith.mulf %239, %250 : vector<8x128xf32>
    %252 = arith.addf %248, %251 : vector<8x128xf32>
    %253 = math.tanh %252 : vector<8x128xf32>
    %254 = arith.subf %225, %253 : vector<8x128xf32>
    %255 = arith.mulf %247, %254 : vector<8x128xf32>
    %256 = arith.addf %253, %255 : vector<8x128xf32>
    %257 = arith.index_cast %c6_i32 : i32 to index
    %c0_55 = arith.constant 0 : index
    %c0_56 = arith.constant 0 : index
    %258 = vector.load %arg7[%257, %c0_55, %c0_56] : memref<12x8x128xf32, #tpu.memory_space<vmem>>, vector<1x8x128xf32>
    %259 = vector.shape_cast %258 : vector<1x8x128xf32> to vector<8x128xf32>
    %260 = vector.shape_cast %256 : vector<8x128xf32> to vector<1x8x128xf32>
    tpu.vector_store %arg7[%257, %c0_55, %c0_56], %260 {strides = array<i32>} : memref<12x8x128xf32, #tpu.memory_space<vmem>>, vector<1x8x128xf32>,
    %c7_i32 = arith.constant 7 : i32
    %261 = arith.mulf %256, %3 : vector<8x128xf32>
    %262 = arith.truncf %261 : vector<8x128xf32> to vector<8x128xbf16>
    %cst_57 = arith.constant dense<0.000000e+00> : vector<8x384xf32>
    %263 = tpu.matmul %262, %4, %cst_57 {dimension_numbers = #tpu.dot_dimension_numbers<[1], [0], [0], [1], [0, 0, 1, 1], [], []>} : vector<8x128xbf16>, vector<128x384xbf16>, vector<8x384xf32> -> vector<8x384xf32>
    %264 = arith.index_cast %c7_i32 : i32 to index
    %c0_58 = arith.constant 0 : index
    %c0_59 = arith.constant 0 : index
    %265 = vector.load %arg2[%264, %c0_58, %c0_59] : memref<12x8x384xbf16, #tpu.memory_space<vmem>>, vector<1x8x384xbf16>
    %266 = vector.shape_cast %265 : vector<1x8x384xbf16> to vector<8x384xbf16>
    %267 = arith.extf %266 : vector<8x384xbf16> to vector<8x384xf32>
    %268 = vector.extract_strided_slice %267 {offsets = [0, 0], sizes = [8, 128], strides = [1, 1]} : vector<8x384xf32> to vector<8x128xf32>
    %269 = vector.extract_strided_slice %263 {offsets = [0, 0], sizes = [8, 128], strides = [1, 1]} : vector<8x384xf32> to vector<8x128xf32>
    %270 = arith.addf %268, %269 : vector<8x128xf32>
    %271 = arith.negf %270 : vector<8x128xf32>
    %272 = math.exp %271 : vector<8x128xf32>
    %cst_60 = arith.constant 1.000000e+00 : f32
    %273 = vector.broadcast %cst_60 : f32 to vector<8x128xf32>
    %274 = arith.addf %273, %272 : vector<8x128xf32>
    %275 = arith.divf %273, %274 : vector<8x128xf32>
    %276 = vector.extract_strided_slice %267 {offsets = [0, 128], sizes = [8, 128], strides = [1, 1]} : vector<8x384xf32> to vector<8x128xf32>
    %277 = vector.extract_strided_slice %263 {offsets = [0, 128], sizes = [8, 128], strides = [1, 1]} : vector<8x384xf32> to vector<8x128xf32>
    %278 = arith.addf %276, %277 : vector<8x128xf32>
    %279 = arith.negf %278 : vector<8x128xf32>
    %280 = math.exp %279 : vector<8x128xf32>
    %cst_61 = arith.constant 1.000000e+00 : f32
    %281 = vector.broadcast %cst_61 : f32 to vector<8x128xf32>
    %282 = arith.addf %281, %280 : vector<8x128xf32>
    %283 = arith.divf %281, %282 : vector<8x128xf32>
    %284 = vector.extract_strided_slice %267 {offsets = [0, 256], sizes = [8, 128], strides = [1, 1]} : vector<8x384xf32> to vector<8x128xf32>
    %285 = vector.extract_strided_slice %263 {offsets = [0, 256], sizes = [8, 128], strides = [1, 1]} : vector<8x384xf32> to vector<8x128xf32>
    %286 = arith.addf %285, %7 : vector<8x128xf32>
    %287 = arith.mulf %275, %286 : vector<8x128xf32>
    %288 = arith.addf %284, %287 : vector<8x128xf32>
    %289 = math.tanh %288 : vector<8x128xf32>
    %290 = arith.subf %261, %289 : vector<8x128xf32>
    %291 = arith.mulf %283, %290 : vector<8x128xf32>
    %292 = arith.addf %289, %291 : vector<8x128xf32>
    %293 = arith.index_cast %c7_i32 : i32 to index
    %c0_62 = arith.constant 0 : index
    %c0_63 = arith.constant 0 : index
    %294 = vector.load %arg7[%293, %c0_62, %c0_63] : memref<12x8x128xf32, #tpu.memory_space<vmem>>, vector<1x8x128xf32>
    %295 = vector.shape_cast %294 : vector<1x8x128xf32> to vector<8x128xf32>
    %296 = vector.shape_cast %292 : vector<8x128xf32> to vector<1x8x128xf32>
    tpu.vector_store %arg7[%293, %c0_62, %c0_63], %296 {strides = array<i32>} : memref<12x8x128xf32, #tpu.memory_space<vmem>>, vector<1x8x128xf32>,
    %c8_i32 = arith.constant 8 : i32
    %297 = arith.mulf %292, %3 : vector<8x128xf32>
    %298 = arith.truncf %297 : vector<8x128xf32> to vector<8x128xbf16>
    %cst_64 = arith.constant dense<0.000000e+00> : vector<8x384xf32>
    %299 = tpu.matmul %298, %4, %cst_64 {dimension_numbers = #tpu.dot_dimension_numbers<[1], [0], [0], [1], [0, 0, 1, 1], [], []>} : vector<8x128xbf16>, vector<128x384xbf16>, vector<8x384xf32> -> vector<8x384xf32>
    %300 = arith.index_cast %c8_i32 : i32 to index
    %c0_65 = arith.constant 0 : index
    %c0_66 = arith.constant 0 : index
    %301 = vector.load %arg2[%300, %c0_65, %c0_66] : memref<12x8x384xbf16, #tpu.memory_space<vmem>>, vector<1x8x384xbf16>
    %302 = vector.shape_cast %301 : vector<1x8x384xbf16> to vector<8x384xbf16>
    %303 = arith.extf %302 : vector<8x384xbf16> to vector<8x384xf32>
    %304 = vector.extract_strided_slice %303 {offsets = [0, 0], sizes = [8, 128], strides = [1, 1]} : vector<8x384xf32> to vector<8x128xf32>
    %305 = vector.extract_strided_slice %299 {offsets = [0, 0], sizes = [8, 128], strides = [1, 1]} : vector<8x384xf32> to vector<8x128xf32>
    %306 = arith.addf %304, %305 : vector<8x128xf32>
    %307 = arith.negf %306 : vector<8x128xf32>
    %308 = math.exp %307 : vector<8x128xf32>
    %cst_67 = arith.constant 1.000000e+00 : f32
    %309 = vector.broadcast %cst_67 : f32 to vector<8x128xf32>
    %310 = arith.addf %309, %308 : vector<8x128xf32>
    %311 = arith.divf %309, %310 : vector<8x128xf32>
    %312 = vector.extract_strided_slice %303 {offsets = [0, 128], sizes = [8, 128], strides = [1, 1]} : vector<8x384xf32> to vector<8x128xf32>
    %313 = vector.extract_strided_slice %299 {offsets = [0, 128], sizes = [8, 128], strides = [1, 1]} : vector<8x384xf32> to vector<8x128xf32>
    %314 = arith.addf %312, %313 : vector<8x128xf32>
    %315 = arith.negf %314 : vector<8x128xf32>
    %316 = math.exp %315 : vector<8x128xf32>
    %cst_68 = arith.constant 1.000000e+00 : f32
    %317 = vector.broadcast %cst_68 : f32 to vector<8x128xf32>
    %318 = arith.addf %317, %316 : vector<8x128xf32>
    %319 = arith.divf %317, %318 : vector<8x128xf32>
    %320 = vector.extract_strided_slice %303 {offsets = [0, 256], sizes = [8, 128], strides = [1, 1]} : vector<8x384xf32> to vector<8x128xf32>
    %321 = vector.extract_strided_slice %299 {offsets = [0, 256], sizes = [8, 128], strides = [1, 1]} : vector<8x384xf32> to vector<8x128xf32>
    %322 = arith.addf %321, %7 : vector<8x128xf32>
    %323 = arith.mulf %311, %322 : vector<8x128xf32>
    %324 = arith.addf %320, %323 : vector<8x128xf32>
    %325 = math.tanh %324 : vector<8x128xf32>
    %326 = arith.subf %297, %325 : vector<8x128xf32>
    %327 = arith.mulf %319, %326 : vector<8x128xf32>
    %328 = arith.addf %325, %327 : vector<8x128xf32>
    %329 = arith.index_cast %c8_i32 : i32 to index
    %c0_69 = arith.constant 0 : index
    %c0_70 = arith.constant 0 : index
    %330 = vector.load %arg7[%329, %c0_69, %c0_70] : memref<12x8x128xf32, #tpu.memory_space<vmem>>, vector<1x8x128xf32>
    %331 = vector.shape_cast %330 : vector<1x8x128xf32> to vector<8x128xf32>
    %332 = vector.shape_cast %328 : vector<8x128xf32> to vector<1x8x128xf32>
    tpu.vector_store %arg7[%329, %c0_69, %c0_70], %332 {strides = array<i32>} : memref<12x8x128xf32, #tpu.memory_space<vmem>>, vector<1x8x128xf32>,
    %c9_i32 = arith.constant 9 : i32
    %333 = arith.mulf %328, %3 : vector<8x128xf32>
    %334 = arith.truncf %333 : vector<8x128xf32> to vector<8x128xbf16>
    %cst_71 = arith.constant dense<0.000000e+00> : vector<8x384xf32>
    %335 = tpu.matmul %334, %4, %cst_71 {dimension_numbers = #tpu.dot_dimension_numbers<[1], [0], [0], [1], [0, 0, 1, 1], [], []>} : vector<8x128xbf16>, vector<128x384xbf16>, vector<8x384xf32> -> vector<8x384xf32>
    %336 = arith.index_cast %c9_i32 : i32 to index
    %c0_72 = arith.constant 0 : index
    %c0_73 = arith.constant 0 : index
    %337 = vector.load %arg2[%336, %c0_72, %c0_73] : memref<12x8x384xbf16, #tpu.memory_space<vmem>>, vector<1x8x384xbf16>
    %338 = vector.shape_cast %337 : vector<1x8x384xbf16> to vector<8x384xbf16>
    %339 = arith.extf %338 : vector<8x384xbf16> to vector<8x384xf32>
    %340 = vector.extract_strided_slice %339 {offsets = [0, 0], sizes = [8, 128], strides = [1, 1]} : vector<8x384xf32> to vector<8x128xf32>
    %341 = vector.extract_strided_slice %335 {offsets = [0, 0], sizes = [8, 128], strides = [1, 1]} : vector<8x384xf32> to vector<8x128xf32>
    %342 = arith.addf %340, %341 : vector<8x128xf32>
    %343 = arith.negf %342 : vector<8x128xf32>
    %344 = math.exp %343 : vector<8x128xf32>
    %cst_74 = arith.constant 1.000000e+00 : f32
    %345 = vector.broadcast %cst_74 : f32 to vector<8x128xf32>
    %346 = arith.addf %345, %344 : vector<8x128xf32>
    %347 = arith.divf %345, %346 : vector<8x128xf32>
    %348 = vector.extract_strided_slice %339 {offsets = [0, 128], sizes = [8, 128], strides = [1, 1]} : vector<8x384xf32> to vector<8x128xf32>
    %349 = vector.extract_strided_slice %335 {offsets = [0, 128], sizes = [8, 128], strides = [1, 1]} : vector<8x384xf32> to vector<8x128xf32>
    %350 = arith.addf %348, %349 : vector<8x128xf32>
    %351 = arith.negf %350 : vector<8x128xf32>
    %352 = math.exp %351 : vector<8x128xf32>
    %cst_75 = arith.constant 1.000000e+00 : f32
    %353 = vector.broadcast %cst_75 : f32 to vector<8x128xf32>
    %354 = arith.addf %353, %352 : vector<8x128xf32>
    %355 = arith.divf %353, %354 : vector<8x128xf32>
    %356 = vector.extract_strided_slice %339 {offsets = [0, 256], sizes = [8, 128], strides = [1, 1]} : vector<8x384xf32> to vector<8x128xf32>
    %357 = vector.extract_strided_slice %335 {offsets = [0, 256], sizes = [8, 128], strides = [1, 1]} : vector<8x384xf32> to vector<8x128xf32>
    %358 = arith.addf %357, %7 : vector<8x128xf32>
    %359 = arith.mulf %347, %358 : vector<8x128xf32>
    %360 = arith.addf %356, %359 : vector<8x128xf32>
    %361 = math.tanh %360 : vector<8x128xf32>
    %362 = arith.subf %333, %361 : vector<8x128xf32>
    %363 = arith.mulf %355, %362 : vector<8x128xf32>
    %364 = arith.addf %361, %363 : vector<8x128xf32>
    %365 = arith.index_cast %c9_i32 : i32 to index
    %c0_76 = arith.constant 0 : index
    %c0_77 = arith.constant 0 : index
    %366 = vector.load %arg7[%365, %c0_76, %c0_77] : memref<12x8x128xf32, #tpu.memory_space<vmem>>, vector<1x8x128xf32>
    %367 = vector.shape_cast %366 : vector<1x8x128xf32> to vector<8x128xf32>
    %368 = vector.shape_cast %364 : vector<8x128xf32> to vector<1x8x128xf32>
    tpu.vector_store %arg7[%365, %c0_76, %c0_77], %368 {strides = array<i32>} : memref<12x8x128xf32, #tpu.memory_space<vmem>>, vector<1x8x128xf32>,
    %c10_i32 = arith.constant 10 : i32
    %369 = arith.mulf %364, %3 : vector<8x128xf32>
    %370 = arith.truncf %369 : vector<8x128xf32> to vector<8x128xbf16>
    %cst_78 = arith.constant dense<0.000000e+00> : vector<8x384xf32>
    %371 = tpu.matmul %370, %4, %cst_78 {dimension_numbers = #tpu.dot_dimension_numbers<[1], [0], [0], [1], [0, 0, 1, 1], [], []>} : vector<8x128xbf16>, vector<128x384xbf16>, vector<8x384xf32> -> vector<8x384xf32>
    %372 = arith.index_cast %c10_i32 : i32 to index
    %c0_79 = arith.constant 0 : index
    %c0_80 = arith.constant 0 : index
    %373 = vector.load %arg2[%372, %c0_79, %c0_80] : memref<12x8x384xbf16, #tpu.memory_space<vmem>>, vector<1x8x384xbf16>
    %374 = vector.shape_cast %373 : vector<1x8x384xbf16> to vector<8x384xbf16>
    %375 = arith.extf %374 : vector<8x384xbf16> to vector<8x384xf32>
    %376 = vector.extract_strided_slice %375 {offsets = [0, 0], sizes = [8, 128], strides = [1, 1]} : vector<8x384xf32> to vector<8x128xf32>
    %377 = vector.extract_strided_slice %371 {offsets = [0, 0], sizes = [8, 128], strides = [1, 1]} : vector<8x384xf32> to vector<8x128xf32>
    %378 = arith.addf %376, %377 : vector<8x128xf32>
    %379 = arith.negf %378 : vector<8x128xf32>
    %380 = math.exp %379 : vector<8x128xf32>
    %cst_81 = arith.constant 1.000000e+00 : f32
    %381 = vector.broadcast %cst_81 : f32 to vector<8x128xf32>
    %382 = arith.addf %381, %380 : vector<8x128xf32>
    %383 = arith.divf %381, %382 : vector<8x128xf32>
    %384 = vector.extract_strided_slice %375 {offsets = [0, 128], sizes = [8, 128], strides = [1, 1]} : vector<8x384xf32> to vector<8x128xf32>
    %385 = vector.extract_strided_slice %371 {offsets = [0, 128], sizes = [8, 128], strides = [1, 1]} : vector<8x384xf32> to vector<8x128xf32>
    %386 = arith.addf %384, %385 : vector<8x128xf32>
    %387 = arith.negf %386 : vector<8x128xf32>
    %388 = math.exp %387 : vector<8x128xf32>
    %cst_82 = arith.constant 1.000000e+00 : f32
    %389 = vector.broadcast %cst_82 : f32 to vector<8x128xf32>
    %390 = arith.addf %389, %388 : vector<8x128xf32>
    %391 = arith.divf %389, %390 : vector<8x128xf32>
    %392 = vector.extract_strided_slice %375 {offsets = [0, 256], sizes = [8, 128], strides = [1, 1]} : vector<8x384xf32> to vector<8x128xf32>
    %393 = vector.extract_strided_slice %371 {offsets = [0, 256], sizes = [8, 128], strides = [1, 1]} : vector<8x384xf32> to vector<8x128xf32>
    %394 = arith.addf %393, %7 : vector<8x128xf32>
    %395 = arith.mulf %383, %394 : vector<8x128xf32>
    %396 = arith.addf %392, %395 : vector<8x128xf32>
    %397 = math.tanh %396 : vector<8x128xf32>
    %398 = arith.subf %369, %397 : vector<8x128xf32>
    %399 = arith.mulf %391, %398 : vector<8x128xf32>
    %400 = arith.addf %397, %399 : vector<8x128xf32>
    %401 = arith.index_cast %c10_i32 : i32 to index
    %c0_83 = arith.constant 0 : index
    %c0_84 = arith.constant 0 : index
    %402 = vector.load %arg7[%401, %c0_83, %c0_84] : memref<12x8x128xf32, #tpu.memory_space<vmem>>, vector<1x8x128xf32>
    %403 = vector.shape_cast %402 : vector<1x8x128xf32> to vector<8x128xf32>
    %404 = vector.shape_cast %400 : vector<8x128xf32> to vector<1x8x128xf32>
    tpu.vector_store %arg7[%401, %c0_83, %c0_84], %404 {strides = array<i32>} : memref<12x8x128xf32, #tpu.memory_space<vmem>>, vector<1x8x128xf32>,
    %c11_i32 = arith.constant 11 : i32
    %405 = arith.mulf %400, %3 : vector<8x128xf32>
    %406 = arith.truncf %405 : vector<8x128xf32> to vector<8x128xbf16>
    %cst_85 = arith.constant dense<0.000000e+00> : vector<8x384xf32>
    %407 = tpu.matmul %406, %4, %cst_85 {dimension_numbers = #tpu.dot_dimension_numbers<[1], [0], [0], [1], [0, 0, 1, 1], [], []>} : vector<8x128xbf16>, vector<128x384xbf16>, vector<8x384xf32> -> vector<8x384xf32>
    %408 = arith.index_cast %c11_i32 : i32 to index
    %c0_86 = arith.constant 0 : index
    %c0_87 = arith.constant 0 : index
    %409 = vector.load %arg2[%408, %c0_86, %c0_87] : memref<12x8x384xbf16, #tpu.memory_space<vmem>>, vector<1x8x384xbf16>
    %410 = vector.shape_cast %409 : vector<1x8x384xbf16> to vector<8x384xbf16>
    %411 = arith.extf %410 : vector<8x384xbf16> to vector<8x384xf32>
    %412 = vector.extract_strided_slice %411 {offsets = [0, 0], sizes = [8, 128], strides = [1, 1]} : vector<8x384xf32> to vector<8x128xf32>
    %413 = vector.extract_strided_slice %407 {offsets = [0, 0], sizes = [8, 128], strides = [1, 1]} : vector<8x384xf32> to vector<8x128xf32>
    %414 = arith.addf %412, %413 : vector<8x128xf32>
    %415 = arith.negf %414 : vector<8x128xf32>
    %416 = math.exp %415 : vector<8x128xf32>
    %cst_88 = arith.constant 1.000000e+00 : f32
    %417 = vector.broadcast %cst_88 : f32 to vector<8x128xf32>
    %418 = arith.addf %417, %416 : vector<8x128xf32>
    %419 = arith.divf %417, %418 : vector<8x128xf32>
    %420 = vector.extract_strided_slice %411 {offsets = [0, 128], sizes = [8, 128], strides = [1, 1]} : vector<8x384xf32> to vector<8x128xf32>
    %421 = vector.extract_strided_slice %407 {offsets = [0, 128], sizes = [8, 128], strides = [1, 1]} : vector<8x384xf32> to vector<8x128xf32>
    %422 = arith.addf %420, %421 : vector<8x128xf32>
    %423 = arith.negf %422 : vector<8x128xf32>
    %424 = math.exp %423 : vector<8x128xf32>
    %cst_89 = arith.constant 1.000000e+00 : f32
    %425 = vector.broadcast %cst_89 : f32 to vector<8x128xf32>
    %426 = arith.addf %425, %424 : vector<8x128xf32>
    %427 = arith.divf %425, %426 : vector<8x128xf32>
    %428 = vector.extract_strided_slice %411 {offsets = [0, 256], sizes = [8, 128], strides = [1, 1]} : vector<8x384xf32> to vector<8x128xf32>
    %429 = vector.extract_strided_slice %407 {offsets = [0, 256], sizes = [8, 128], strides = [1, 1]} : vector<8x384xf32> to vector<8x128xf32>
    %430 = arith.addf %429, %7 : vector<8x128xf32>
    %431 = arith.mulf %419, %430 : vector<8x128xf32>
    %432 = arith.addf %428, %431 : vector<8x128xf32>
    %433 = math.tanh %432 : vector<8x128xf32>
    %434 = arith.subf %405, %433 : vector<8x128xf32>
    %435 = arith.mulf %427, %434 : vector<8x128xf32>
    %436 = arith.addf %433, %435 : vector<8x128xf32>
    %437 = arith.index_cast %c11_i32 : i32 to index
    %c0_90 = arith.constant 0 : index
    %c0_91 = arith.constant 0 : index
    %438 = vector.load %arg7[%437, %c0_90, %c0_91] : memref<12x8x128xf32, #tpu.memory_space<vmem>>, vector<1x8x128xf32>
    %439 = vector.shape_cast %438 : vector<1x8x128xf32> to vector<8x128xf32>
    %440 = vector.shape_cast %436 : vector<8x128xf32> to vector<1x8x128xf32>
    tpu.vector_store %arg7[%437, %c0_90, %c0_91], %440 {strides = array<i32>} : memref<12x8x128xf32, #tpu.memory_space<vmem>>, vector<1x8x128xf32>,
    %c12_i32 = arith.constant 12 : i32
    %c0_92 = arith.constant 0 : index
    %c0_93 = arith.constant 0 : index
    %441 = vector.load %arg8[%c0_92, %c0_93] : memref<8x128xf32, #tpu.memory_space<vmem>>, vector<8x128xf32>
    tpu.vector_store %arg8[%c0_92, %c0_93], %436 {strides = array<i32>} : memref<8x128xf32, #tpu.memory_space<vmem>>, vector<8x128xf32>,
    return
  }
  func.func @transform_0(%arg0: i32, %arg1: i32) -> (i32, i32, i32) {
    %c0_i32 = arith.constant 0 : i32
    %c0_i32_0 = arith.constant 0 : i32
    return %arg1, %arg0, %c0_i32 : i32, i32, i32
  }
  func.func @transform_1(%arg0: i32, %arg1: i32) -> (i32, i32) {
    %c0_i32 = arith.constant 0 : i32
    %c0_i32_0 = arith.constant 0 : i32
    return %arg0, %c0_i32 : i32, i32
  }
  func.func @transform_2(%arg0: i32, %arg1: i32) -> (i32, i32) {
    %c0_i32 = arith.constant 0 : i32
    %c0_i32_0 = arith.constant 0 : i32
    return %arg0, %c0_i32 : i32, i32
  }
  func.func @transform_3(%arg0: i32, %arg1: i32) -> (i32, i32) {
    %c0_i32 = arith.constant 0 : i32
    %c0_i32_0 = arith.constant 0 : i32
    %c0_i32_1 = arith.constant 0 : i32
    return %c0_i32, %c0_i32_0 : i32, i32
  }
  func.func @transform_4(%arg0: i32, %arg1: i32) -> (i32, i32) {
    %c0_i32 = arith.constant 0 : i32
    %c0_i32_0 = arith.constant 0 : i32
    %c0_i32_1 = arith.constant 0 : i32
    return %c0_i32, %c0_i32_0 : i32, i32
  }
  func.func @transform_5(%arg0: i32, %arg1: i32) -> (i32, i32, i32) {
    %c0_i32 = arith.constant 0 : i32
    %c0_i32_0 = arith.constant 0 : i32
    return %arg1, %arg0, %c0_i32 : i32, i32, i32
  }
}

</mosaic_0001>

<bundles_post_ra>
// kernel: _forward_impl.1
= control target key start
LH: loop header
LB: loop body
LE: loop exit
PB: predicated region body
PF: predicated region fallthrough
CT: control target
= control target key end

     0   :  { %s2372_s3 = inlined_call_operand.vmem [shape: bf16[128,384], index: 3, kind: input, shape index: {}]   ;;  %s2373_s1 = inlined_call_operand.vmem [shape: f32[8,128], index: 1, kind: input, shape index: {}]   ;;  %s2374_s2 = inlined_call_operand.vmem [shape: f32[8,128], index: 2, kind: input, shape index: {}]   ;;  %s2375_s4 = inlined_call_operand.vmem [shape: f32[1,128], index: 4, kind: input, shape index: {}]   ;;  %s2376_s0 = inlined_call_operand.vmem [shape: bf16[12,8,384], index: 0, kind: input, shape index: {}]   ;;  %s2377_s5 = inlined_call_operand.vmem [shape: f32[12,8,128], index: 5, kind: output, shape index: {}]  }
   0x1   :  { %v1433_v0 = vld [vmem:[%s2372_s3 + $0xa8] sm:$0xf]  ;;  %v1522_v1 = vld [vmem:[%s2372_s3 + $0xb0] sm:$0xf0]  ;;  %v1521_v2 = vld [vmem:[%s2372_s3 + $0xac] sm:$0xf] }
   0x2   :  { %v1686_v3 = vor.u32 %v1522_v1, %v1433_v0  ;;  %v1435_v4 = vld [vmem:[%s2372_s3 + $0xb4] sm:$0xf0]  ;;  %v1421_v5 = vld [vmem:[%s2372_s3 + $0x90] sm:$0xf]  ;;  %v1519_v6 = vld [vmem:[%s2372_s3 + $0x98] sm:$0xf0] }
   0x3   :  { %v1697_v7 = vor.u32 %v1521_v2, %v1435_v4  ;;  %v1518_v8 = vld [vmem:[%s2372_s3 + $0x94] sm:$0xf]  ;;  %v1423_v9 = vld [vmem:[%s2372_s3 + $0x9c] sm:$0xf0]  ;;  %v1706_v10 = vor.u32 %v1519_v6, %v1421_v5  ;;  %v1409_v12 = vld [vmem:[%s2372_s3 + $0x78] sm:$0xf] }
   0x4   :  { %194 = vmatpush.bf16.msra.mxu0 %v1686_v3  ;;  %288 = vmatpush.bf16.msra.mxu3 %v1686_v3  ;;  %v1710_v11 = vor.u32 %v1518_v8, %v1423_v9  ;;  %v1516_v13 = vld [vmem:[%s2372_s3 + $0x80] sm:$0xf0]  ;;  %v1515_v14 = vld [vmem:[%s2372_s3 + $0x7c] sm:$0xf]  ;;  %v1411_v15 = vld [vmem:[%s2372_s3 + $0x84] sm:$0xf0] }
   0x5   :  { %207 = vmatpush.bf16.msra.mxu1 %v1697_v7  ;;  %v1441_v16 = vld [vmem:[%s2372_s3 + $0xb0] sm:$0xf]  ;;  %v1523_v17 = vld [vmem:[%s2372_s3 + $0xb8] sm:$0xf0]  ;;  %v1733_v19 = vor.u32 %v1516_v13, %v1409_v12  ;;  %v1429_v20 = vld [vmem:[%s2372_s3 + $0x98] sm:$0xf]  ;;  %v1743_v22 = vor.u32 %v1515_v14, %v1411_v15 }
   0x6   :  { %v1730_v18 = vor.u32 %v1523_v17, %v1441_v16  ;;  %v1520_v21 = vld [vmem:[%s2372_s3 + $0xa0] sm:$0xf0]  ;;  %v1397_v23 = vld [vmem:[%s2372_s3 + $0x60] sm:$0xf]  ;;  %v1513_v24 = vld [vmem:[%s2372_s3 + $0x68] sm:$0xf0] }
   0x7   :  { %v1512_v25 = vld [vmem:[%s2372_s3 + $0x64] sm:$0xf]  ;;  %v1755_v26 = vor.u32 %v1520_v21, %v1429_v20  ;;  %v1399_v27 = vld [vmem:[%s2372_s3 + $0x6c] sm:$0xf0]  ;;  %v1417_v28 = vld [vmem:[%s2372_s3 + $0x80] sm:$0xf]  ;;  %v1767_v30 = vor.u32 %v1513_v24, %v1397_v23 }
   0x8   :  { %195 = vmatpush.bf16.msra.mxu0 %v1706_v10  ;;  %289 = vmatpush.bf16.msra.mxu3 %v1706_v10  ;;  %v1517_v29 = vld [vmem:[%s2372_s3 + $0x88] sm:$0xf0]  ;;  %v1771_v31 = vor.u32 %v1512_v25, %v1399_v27  ;;  %v1385_v32 = vld [vmem:[%s2372_s3 + $0x48] sm:$0xf]  ;;  %v1510_v33 = vld [vmem:[%s2372_s3 + $0x50] sm:$0xf0] }
   0x9   :  { %208 = vmatpush.bf16.msra.mxu1 %v1710_v11  ;;  %220 = vmatpush.bf16.msra.mxu2 %v1730_v18  ;;  %v1509_v34 = vld [vmem:[%s2372_s3 + $0x4c] sm:$0xf]  ;;  %v1783_v35 = vor.u32 %v1517_v29, %v1417_v28  ;;  %v1387_v36 = vld [vmem:[%s2372_s3 + $0x54] sm:$0xf0]  ;;  %v1405_v37 = vld [vmem:[%s2372_s3 + $0x68] sm:$0xf]  ;;  %v1795_v39 = vor.u32 %v1510_v33, %v1385_v32 }
   0xa   :  { %v1514_v38 = vld [vmem:[%s2372_s3 + $0x70] sm:$0xf0]  ;;  %v1799_v40 = vor.u32 %v1509_v34, %v1387_v36  ;;  %v1373_v41 = vld [vmem:[%s2372_s3 + $0x30] sm:$0xf]  ;;  %v1507_v42 = vld [vmem:[%s2372_s3 + $0x38] sm:$0xf0] }
   0xb   :  { %v1506_v43 = vld [vmem:[%s2372_s3 + $0x34] sm:$0xf]  ;;  %v1811_v44 = vor.u32 %v1514_v38, %v1405_v37  ;;  %v1375_v45 = vld [vmem:[%s2372_s3 + $0x3c] sm:$0xf0]  ;;  %v1393_v46 = vld [vmem:[%s2372_s3 + $0x50] sm:$0xf]  ;;  %v1823_v48 = vor.u32 %v1507_v42, %v1373_v41 }
   0xc   :  { %196 = vmatpush.bf16.msra.mxu0 %v1733_v19  ;;  %290 = vmatpush.bf16.msra.mxu3 %v1733_v19  ;;  %v1511_v47 = vld [vmem:[%s2372_s3 + $0x58] sm:$0xf0]  ;;  %v1827_v49 = vor.u32 %v1506_v43, %v1375_v45  ;;  %v1361_v50 = vld [vmem:[%s2372_s3 + $0x18] sm:$0xf]  ;;  %v1504_v51 = vld [vmem:[%s2372_s3 + $0x20] sm:$0xf0] }
   0xd   :  { %209 = vmatpush.bf16.msra.mxu1 %v1743_v22  ;;  %221 = vmatpush.bf16.msra.mxu2 %v1755_v26  ;;  %v1503_v52 = vld [vmem:[%s2372_s3 + $0x1c] sm:$0xf]  ;;  %v1839_v53 = vor.u32 %v1511_v47, %v1393_v46  ;;  %v1363_v54 = vld [vmem:[%s2372_s3 + $0x24] sm:$0xf0]  ;;  %v1381_v55 = vld [vmem:[%s2372_s3 + $0x38] sm:$0xf]  ;;  %v1851_v57 = vor.u32 %v1504_v51, %v1361_v50 }
   0xe   :  { %v1508_v56 = vld [vmem:[%s2372_s3 + $0x40] sm:$0xf0]  ;;  %v1863_v60 = vor.u32 %v1503_v52, %v1363_v54  ;;  %v1349_v61 = vld [vmem:[%s2372_s3] sm:$0xf]  ;;  %v1501_v62 = vld [vmem:[%s2372_s3 + $0x8] sm:$0xf0] }
   0xf   :  { %v24_v58 = vld [vmem:[%s2373_s1] sm:$0xff]  ;;  %v1875_v0 = vor.u32 %v1508_v56, %v1381_v55  ;;  %v1351_v1 = vld [vmem:[%s2372_s3 + $0xc] sm:$0xf0]  ;;  %v1505_v4 = vld [vmem:[%s2372_s3 + $0x28] sm:$0xf0]  ;;  %v1890_v6 = vor.u32 %v1501_v62, %v1349_v61 }
  0x10   :  { %197 = vmatpush.bf16.msra.mxu0 %v1767_v30  ;;  %291 = vmatpush.bf16.msra.mxu3 %v1767_v30  ;;  %v1859_v59 = vld [vmem:[%s2374_s2] sm:$0xff]  ;;  %v1357_v12 = vld [vmem:[%s2372_s3 + $0x8] sm:$0xf]  ;;  %v1502_v13 = vld [vmem:[%s2372_s3 + $0x10] sm:$0xf0] }
  0x11   :  { %210 = vmatpush.bf16.msra.mxu1 %v1771_v31  ;;  %222 = vmatpush.bf16.msra.mxu2 %v1783_v35  ;;  %v1500_v63 = vld [vmem:[%s2372_s3 + $0x4] sm:$0xf]  ;;  %v1369_v2 = vld [vmem:[%s2372_s3 + $0x20] sm:$0xf]  ;;  %v1887_v5 = vmul.f32 %v1859_v59, %v24_v58  ;;  %v1911_v15 = vor.u32 %v1502_v13, %v1357_v12  ;;  %v234_v55 = vld [vmem:[%s2376_s0 + $0x8] sm:$0xf] }
  0x12   :  { %v1894_v8 = vor.u32 %v1500_v63, %v1351_v1  ;;  %v1897_v9 = vor.u32 %v1505_v4, %v1369_v2  ;;  %v233_v16 = vld [vmem:[%s2376_s0] sm:$0xff]  ;;  %v237_v63 = vunpack.c.l.bf16 %v234_v55 }
  0x13   :  { %v65_v14 = vpack.c.bf16 %v1887_v5, %v1887_v5  ;;  %v235_v17 = vunpack.c.l.bf16 %v233_v16  ;;  %v236_v20 = vunpack.c.h.bf16 %v233_v16  ;;  %v1976_v46 = vld [vmem:[%s2375_s4] ss:$0 sm:$0xff] }
  0x14   :  { %198 = vmatpush.bf16.msra.mxu0 %v1795_v39  ;;  %292 = vmatpush.bf16.msra.mxu3 %v1795_v39 }
  0x15   :  { %211 = vmatpush.bf16.msra.mxu1 %v1799_v40  ;;  %223 = vmatpush.bf16.msra.mxu2 %v1811_v44 }
  0x18   :  { %199 = vmatpush.bf16.msra.mxu0 %v1823_v48  ;;  %293 = vmatpush.bf16.msra.mxu3 %v1823_v48 }
  0x19   :  { %212 = vmatpush.bf16.msra.mxu1 %v1827_v49  ;;  %224 = vmatpush.bf16.msra.mxu2 %v1839_v53 }
  0x1c   :  { %200 = vmatpush.bf16.msra.mxu0 %v1851_v57  ;;  %294 = vmatpush.bf16.msra.mxu3 %v1851_v57 }
  0x1d   :  { %213 = vmatpush.bf16.msra.mxu1 %v1863_v60  ;;  %225 = vmatpush.bf16.msra.mxu2 %v1875_v0 }
  0x20   :  { %201 = vmatpush.bf16.msra.mxu0 %v1890_v6  ;;  %295 = vmatpush.bf16.msra.mxu3 %v1890_v6 }
  0x21   :  { %214 = vmatpush.bf16.msra.mxu1 %v1894_v8  ;;  %226 = vmatpush.bf16.msra.mxu2 %v1897_v9 }
  0x23   :  { %202 = vmatmul.bf16.vlgmr.msra.gmra.mxu0 %v65_v14 }
  0x24   :  { %301 = vmatpush.bf16.msrb.mxu0 %v1697_v7  ;;  %397 = vmatpush.bf16.msrb.mxu3 %v1697_v7 }
  0x25   :  { %314 = vmatpush.bf16.msrb.mxu1 %v1730_v18  ;;  %227 = vmatpush.bf16.msra.mxu2 %v1911_v15 }
  0x26   :  { %215 = vmatmul.bf16.vlgmr.msra.gmra.mxu1 %v65_v14 }
  0x28   :  { %302 = vmatpush.bf16.msrb.mxu0 %v1710_v11  ;;  %398 = vmatpush.bf16.msrb.mxu3 %v1710_v11 }
  0x29   :  { %315 = vmatpush.bf16.msrb.mxu1 %v1755_v26  ;;  %384 = vmatpush.bf16.msrb.mxu2 %v1686_v3 }
  0x2a   :  { %228 = vmatmul.bf16.vlgmr.msra.gmra.mxu2 %v65_v14 }
  0x2c   :  { %303 = vmatpush.bf16.msrb.mxu0 %v1743_v22  ;;  %399 = vmatpush.bf16.msrb.mxu3 %v1743_v22 }
  0x2d   :  { %316 = vmatpush.bf16.msrb.mxu1 %v1783_v35  ;;  %385 = vmatpush.bf16.msrb.mxu2 %v1706_v10 }
  0x30   :  { %304 = vmatpush.bf16.msrb.mxu0 %v1771_v31  ;;  %400 = vmatpush.bf16.msrb.mxu3 %v1771_v31 }
  0x31   :  { %317 = vmatpush.bf16.msrb.mxu1 %v1811_v44  ;;  %386 = vmatpush.bf16.msrb.mxu2 %v1733_v19 }
  0x34   :  { %305 = vmatpush.bf16.msrb.mxu0 %v1799_v40  ;;  %401 = vmatpush.bf16.msrb.mxu3 %v1799_v40 }
  0x35   :  { %318 = vmatpush.bf16.msrb.mxu1 %v1839_v53  ;;  %387 = vmatpush.bf16.msrb.mxu2 %v1767_v30 }
  0x38   :  { %306 = vmatpush.bf16.msrb.mxu0 %v1827_v49  ;;  %402 = vmatpush.bf16.msrb.mxu3 %v1827_v49 }
  0x39   :  { %319 = vmatpush.bf16.msrb.mxu1 %v1875_v0  ;;  %388 = vmatpush.bf16.msrb.mxu2 %v1795_v39 }
  0x3c   :  { %307 = vmatpush.bf16.msrb.mxu0 %v1863_v60  ;;  %403 = vmatpush.bf16.msrb.mxu3 %v1863_v60 }
  0x3d   :  { %320 = vmatpush.bf16.msrb.mxu1 %v1897_v9  ;;  %389 = vmatpush.bf16.msrb.mxu2 %v1823_v48 }
  0x40   :  { %308 = vmatpush.bf16.msrb.mxu0 %v1894_v8  ;;  %404 = vmatpush.bf16.msrb.mxu3 %v1894_v8 }
  0x41   :  { %321 = vmatpush.bf16.msrb.mxu1 %v1911_v15  ;;  %390 = vmatpush.bf16.msrb.mxu2 %v1851_v57 }
  0x44   :  { %410 = vmatpush.bf16.msra.mxu0 %v1730_v18 }
  0x45   :  { %480 = vmatpush.bf16.msra.mxu1 %v1686_v3  ;;  %391 = vmatpush.bf16.msrb.mxu2 %v1890_v6 }
  0x48   :  { %411 = vmatpush.bf16.msra.mxu0 %v1755_v26 }
  0x49   :  { %493 = vmatpush.bf16.msra.mxu2 %v1697_v7  ;;  %481 = vmatpush.bf16.msra.mxu1 %v1706_v10 }
  0x4c   :  { %412 = vmatpush.bf16.msra.mxu0 %v1783_v35 }
  0x4d   :  { %494 = vmatpush.bf16.msra.mxu2 %v1710_v11  ;;  %482 = vmatpush.bf16.msra.mxu1 %v1733_v19 }
  0x50   :  { %413 = vmatpush.bf16.msra.mxu0 %v1811_v44 }
  0x51   :  { %495 = vmatpush.bf16.msra.mxu2 %v1743_v22  ;;  %483 = vmatpush.bf16.msra.mxu1 %v1767_v30 }
  0x54   :  { %414 = vmatpush.bf16.msra.mxu0 %v1839_v53 }
  0x55   :  { %496 = vmatpush.bf16.msra.mxu2 %v1771_v31  ;;  %484 = vmatpush.bf16.msra.mxu1 %v1795_v39 }
  0x58   :  { %415 = vmatpush.bf16.msra.mxu0 %v1875_v0 }
  0x59   :  { %497 = vmatpush.bf16.msra.mxu2 %v1799_v40  ;;  %485 = vmatpush.bf16.msra.mxu1 %v1823_v48 }
  0x5c   :  { %416 = vmatpush.bf16.msra.mxu0 %v1897_v9 }
  0x5d   :  { %498 = vmatpush.bf16.msra.mxu2 %v1827_v49  ;;  %486 = vmatpush.bf16.msra.mxu1 %v1851_v57 }
  0x60   :  { %417 = vmatpush.bf16.msra.mxu0 %v1911_v15 }
  0x61   :  { %499 = vmatpush.bf16.msra.mxu2 %v1863_v60  ;;  %487 = vmatpush.bf16.msra.mxu1 %v1890_v6 }
  0x65   :  { %500 = vmatpush.bf16.msra.mxu2 %v1894_v8 }
  0xa0   :  { %v203_v21 = vpop.f32.mrf.mxu0 }
  0xa1   :  { %v238_v23 = vadd.f32 %v235_v17, %v203_v21 }
  0xa3   :  { %v216_v24 = vpop.f32.mrf.mxu1  ;;  %v1443_v27 = vmul.f32 -1.442695, %v238_v23 }
  0xa4   :  { %v258_v25 = vadd.f32 %v236_v20, %v216_v24 }
  0xa5   :  { %1525 = vpow2.f32 %v1443_v27 }
  0xa6   :  { %v1444_v28 = vmul.f32 -1.442695, %v258_v25 }
  0xa8   :  { %1527 = vpow2.f32 %v1444_v28  ;;  %v205_v29 = vpop.f32.mrf.mxu0 }
  0xab   :  { %v218_v32 = vpop.f32.mrf.mxu1  ;;  %v1526_v33 = vpop.eup %1525 }
  0xac   :  { %v242_v37 = vadd.f32 1.0, %v1526_v33 }
  0xad   :  { %v229_v34 = vpop.f32.mrf.mxu2 }
  0xae   :  { %v1528_v36 = vpop.eup %1527  ;;  %1529 = vrcp.f32 %v242_v37  ;;  %v254_v51 = vand.u32 2147483648, %v242_v37  ;;  %v252_v54 = vand.u32 2147483647, %v242_v37  ;;  %vm248_vm1 = vweird.f32 %v242_v37 }
  0xaf   :  { %v262_v38 = vadd.f32 1.0, %v1528_v36  ;;  %v278_v58 = vadd.f32 %v1976_v46, %v229_v34 }
  0xb0   :  { %v255_v62 = vor.u32 1.1754944e-38, %v254_v51  ;;  %vm253_vm3 = vcmp.eq.f32.partialorder %v252_v54, 8.507059e+37 }
  0xb1   :  { %1531 = vrcp.f32 %v262_v38  ;;  %vm268_vm4 = vweird.f32 %v262_v38  ;;  %v274_v14 = vand.u32 2147483648, %v262_v38  ;;  %v272_v17 = vand.u32 2147483647, %v262_v38 }
  0xb3   :  { %v275_v20 = vor.u32 1.1754944e-38, %v274_v14  ;;  %vm273_vm7 = vcmp.eq.f32.partialorder %v272_v17, 8.507059e+37 }
  0xb4   :  { %v1530_v42 = vpop.eup %1529 }
  0xb5   :  { %v231_v41 = vpop.f32.mrf.mxu2  ;;  %v244_v45 = vmul.f32 %v1530_v42, %v242_v37  ;;  %vm249_vm0 = vweird.f32 %v1530_v42 }
  0xb6   :  { %vm250_vm2 = vmor %vm248_vm1, %vm249_vm0 }
  0xb7   :  { %v1532_v43 = vpop.eup %1531  ;;  %v245_v47 = vsub.f32 1.0, %v244_v45 }
  0xb8   :  { %v264_v50 = vmul.f32 %v1532_v43, %v262_v38  ;;  %vm269_vm5 = vweird.f32 %v1532_v43 }
  0xb9   :  { %v246_v52 = vmul.f32 %v1530_v42, %v245_v47  ;;  %vm270_vm6 = vmor %vm268_vm4, %vm269_vm5 }
  0xba   :  { %v265_v61 = vsub.f32 1.0, %v264_v50 }
  0xbb   :  { %v247_v56 = vadd.f32 %v1530_v42, %v246_v52 }
  0xbc   :  { %v266_v12 = vmul.f32 %v1532_v43, %v265_v61 }
  0xbd   :  { %v251_v1 = vsel %vm250_vm2, %v1530_v42, %v247_v56 }
  0xbe   :  { %v256_v2 = vsel %vm253_vm3, %v255_v62, %v251_v1  ;;  %v267_v16 = vadd.f32 %v1532_v43, %v266_v12 }
  0xbf   :  { %v279_v4 = vmul.f32 %v278_v58, %v256_v2 }
  0xc0   :  { %v271_v21 = vsel %vm270_vm6, %v1532_v43, %v267_v16 }
  0xc1   :  { %v280_v13 = vadd.f32 %v279_v4, %v237_v63  ;;  %v276_v25 = vsel %vm273_vm7, %v275_v20, %v271_v21 }
  0xc3   :  { %1533 = vtanh.f32 %v280_v13  ;;  %v1446_v13 = vld [vmem:[%s2376_s0 + $0x14] sm:$0xf] }
  0xc9   :  { %v1534_v23 = vpop.eup %1533 }
  0xca   :  { %v282_v24 = vsub.f32 %v1887_v5, %v1534_v23  ;;  %v1445_v5 = vld [vmem:[%s2376_s0 + $0xc] sm:$0xff] }
  0xcb   :  { %v331_v33 = vunpack.c.h.bf16 %v1445_v5  ;;  %v330_v38 = vunpack.c.l.bf16 %v1445_v5 }
  0xcc   :  { %v283_v27 = vmul.f32 %v282_v24, %v276_v25 }
  0xce   :  { %v284_v28 = vadd.f32 %v1534_v23, %v283_v27  ;;  %v332_v23 = vunpack.c.l.bf16 %v1446_v13 }
  0xd0   :  { %285 = vst [vmem:[%s2377_s5] sm:$0xff] %v284_v28  ;;  %v1987_v29 = vmul.f32 %v284_v28, %v1859_v59 }
  0xd2   :  { %v287_v32 = vpack.c.bf16 %v1987_v29, %v1987_v29 }
  0xd4   :  { %296 = vmatmul.bf16.vlgmr.msra.gmra.mxu3 %v287_v32  ;;  %309 = vmatmul.bf16.vlgmr.msrb.gmra.mxu0 %v287_v32 }
  0xd5   :  { %322 = vmatmul.bf16.vlgmr.msrb.gmra.mxu1 %v287_v32  ;;  %506 = vmatpush.bf16.msra.mxu3 %v1730_v18 }
  0xd6   :  { %576 = vmatpush.bf16.msrb.mxu0 %v1686_v3  ;;  %589 = vmatpush.bf16.msrb.mxu1 %v1697_v7 }
  0xd9   :  { %507 = vmatpush.bf16.msra.mxu3 %v1755_v26 }
  0xda   :  { %577 = vmatpush.bf16.msrb.mxu0 %v1706_v10  ;;  %590 = vmatpush.bf16.msrb.mxu1 %v1710_v11 }
  0xdd   :  { %508 = vmatpush.bf16.msra.mxu3 %v1783_v35 }
  0xde   :  { %578 = vmatpush.bf16.msrb.mxu0 %v1733_v19  ;;  %591 = vmatpush.bf16.msrb.mxu1 %v1743_v22 }
  0xe1   :  { %509 = vmatpush.bf16.msra.mxu3 %v1811_v44 }
  0xe2   :  { %579 = vmatpush.bf16.msrb.mxu0 %v1767_v30  ;;  %592 = vmatpush.bf16.msrb.mxu1 %v1771_v31 }
  0xe5   :  { %510 = vmatpush.bf16.msra.mxu3 %v1839_v53 }
  0xe6   :  { %580 = vmatpush.bf16.msrb.mxu0 %v1795_v39  ;;  %593 = vmatpush.bf16.msrb.mxu1 %v1799_v40 }
  0xe9   :  { %511 = vmatpush.bf16.msra.mxu3 %v1875_v0 }
  0xea   :  { %581 = vmatpush.bf16.msrb.mxu0 %v1823_v48  ;;  %594 = vmatpush.bf16.msrb.mxu1 %v1827_v49 }
  0xed   :  { %512 = vmatpush.bf16.msra.mxu3 %v1897_v9 }
  0xee   :  { %582 = vmatpush.bf16.msrb.mxu0 %v1851_v57  ;;  %595 = vmatpush.bf16.msrb.mxu1 %v1863_v60 }
  0xf1   :  { %513 = vmatpush.bf16.msra.mxu3 %v1911_v15 }
  0xf2   :  { %583 = vmatpush.bf16.msrb.mxu0 %v1890_v6  ;;  %596 = vmatpush.bf16.msrb.mxu1 %v1894_v8 }
 0x151   :  { %v310_v34 = vpop.f32.mrf.mxu0 }
 0x152   :  { %v353_v36 = vadd.f32 %v331_v33, %v310_v34  ;;  %v323_v37 = vpop.f32.mrf.mxu1 }
 0x153   :  { %v373_v20 = vadd.f32 %v1976_v46, %v323_v37 }
 0x154   :  { %v1448_v41 = vmul.f32 -1.442695, %v353_v36 }
 0x156   :  { %1535 = vpow2.f32 %v1448_v41 }
 0x157   :  { %v297_v42 = vpop.f32.mrf.mxu3 }
 0x158   :  { %v333_v43 = vadd.f32 %v330_v38, %v297_v42 }
 0x159   :  { %v312_v45 = vpop.f32.mrf.mxu0 }
 0x15a   :  { %v1447_v47 = vmul.f32 -1.442695, %v333_v43  ;;  %v325_v50 = vpop.f32.mrf.mxu1 }
 0x15c   :  { %1537 = vpow2.f32 %v1447_v47  ;;  %v1536_v51 = vpop.eup %1535 }
 0x15d   :  { %v357_v55 = vadd.f32 1.0, %v1536_v51 }
 0x15f   :  { %v299_v52 = vpop.f32.mrf.mxu3  ;;  %v369_v5 = vand.u32 2147483648, %v357_v55  ;;  %vm363_vm13 = vweird.f32 %v357_v55  ;;  %v367_v33 = vand.u32 2147483647, %v357_v55 }
 0x161   :  { %v370_v38 = vor.u32 1.1754944e-38, %v369_v5  ;;  %vm368_vm15 = vcmp.eq.f32.partialorder %v367_v33, 8.507059e+37 }
 0x162   :  { %v1538_v54 = vpop.eup %1537 }
 0x163   :  { %v337_v56 = vadd.f32 1.0, %v1538_v54 }
 0x165   :  { %1539 = vrcp.f32 %v337_v56  ;;  %v349_v2 = vand.u32 2147483648, %v337_v56  ;;  %v347_v12 = vand.u32 2147483647, %v337_v56  ;;  %vm343_vm9 = vweird.f32 %v337_v56 }
 0x166   :  { %1541 = vrcp.f32 %v357_v55 }
 0x167   :  { %v350_v17 = vor.u32 1.1754944e-38, %v349_v2  ;;  %vm348_vm11 = vcmp.eq.f32.partialorder %v347_v12, 8.507059e+37 }
 0x16b   :  { %v1540_v58 = vpop.eup %1539 }
 0x16c   :  { %v1542_v61 = vpop.eup %1541  ;;  %v339_v62 = vmul.f32 %v1540_v58, %v337_v56  ;;  %vm344_vm8 = vweird.f32 %v1540_v58 }
 0x16d   :  { %v359_v1 = vmul.f32 %v1542_v61, %v357_v55  ;;  %vm345_vm10 = vmor %vm343_vm9, %vm344_vm8  ;;  %vm364_vm12 = vweird.f32 %v1542_v61 }
 0x16e   :  { %v340_v63 = vsub.f32 1.0, %v339_v62  ;;  %vm365_vm14 = vmor %vm363_vm13, %vm364_vm12 }
 0x16f   :  { %v360_v16 = vsub.f32 1.0, %v359_v1 }
 0x170   :  { %v341_v4 = vmul.f32 %v1540_v58, %v340_v63 }
 0x171   :  { %v361_v27 = vmul.f32 %v1542_v61, %v360_v16 }
 0x172   :  { %v342_v14 = vadd.f32 %v1540_v58, %v341_v4 }
 0x173   :  { %v362_v32 = vadd.f32 %v1542_v61, %v361_v27 }
 0x174   :  { %v346_v21 = vsel %vm345_vm10, %v1540_v58, %v342_v14 }
 0x175   :  { %v351_v24 = vsel %vm348_vm11, %v350_v17, %v346_v21  ;;  %v366_v34 = vsel %vm365_vm14, %v1542_v61, %v362_v32 }
 0x176   :  { %v374_v25 = vmul.f32 %v373_v20, %v351_v24  ;;  %v371_v41 = vsel %vm368_vm15, %v370_v38, %v366_v34 }
 0x178   :  { %v375_v28 = vadd.f32 %v374_v25, %v332_v23 }
 0x17a   :  { %1543 = vtanh.f32 %v375_v28  ;;  %v1451_v28 = vld [vmem:[%s2376_s0 + $0x20] sm:$0xf] }
 0x17b   :  { %v428_v38 = vunpack.c.l.bf16 %v1451_v28 }
 0x180   :  { %v1544_v36 = vpop.eup %1543 }
 0x181   :  { %v377_v37 = vsub.f32 %v1987_v29, %v1544_v36  ;;  %v1450_v29 = vld [vmem:[%s2376_s0 + $0x18] sm:$0xff] }
 0x182   :  { %v426_v51 = vunpack.c.l.bf16 %v1450_v29  ;;  %v427_v52 = vunpack.c.h.bf16 %v1450_v29 }
 0x183   :  { %v378_v42 = vmul.f32 %v377_v37, %v371_v41 }
 0x185   :  { %v379_v43 = vadd.f32 %v1544_v36, %v378_v42 }
 0x187   :  { %1449 = vst [vmem:[%s2377_s5 + $0x8] sm:$0xff] %v379_v43  ;;  %v2027_v45 = vmul.f32 %v379_v43, %v1859_v59 }
 0x189   :  { %v383_v47 = vpack.c.bf16 %v2027_v45, %v2027_v45 }
 0x18b   :  { %392 = vmatmul.bf16.vlgmr.msrb.gmra.mxu2 %v383_v47  ;;  %405 = vmatmul.bf16.vlgmr.msrb.gmra.mxu3 %v383_v47 }
 0x18c   :  { %418 = vmatmul.bf16.vlgmr.msra.gmra.mxu0 %v383_v47  ;;  %602 = vmatpush.bf16.msrb.mxu2 %v1730_v18 }
 0x18d   :  { %672 = vmatpush.bf16.msrb.mxu3 %v1686_v3  ;;  %685 = vmatpush.bf16.msra.mxu0 %v1697_v7 }
 0x190   :  { %603 = vmatpush.bf16.msrb.mxu2 %v1755_v26 }
 0x191   :  { %673 = vmatpush.bf16.msrb.mxu3 %v1706_v10  ;;  %686 = vmatpush.bf16.msra.mxu0 %v1710_v11 }
 0x194   :  { %604 = vmatpush.bf16.msrb.mxu2 %v1783_v35 }
 0x195   :  { %674 = vmatpush.bf16.msrb.mxu3 %v1733_v19  ;;  %687 = vmatpush.bf16.msra.mxu0 %v1743_v22 }
 0x198   :  { %605 = vmatpush.bf16.msrb.mxu2 %v1811_v44 }
 0x199   :  { %675 = vmatpush.bf16.msrb.mxu3 %v1767_v30  ;;  %688 = vmatpush.bf16.msra.mxu0 %v1771_v31 }
 0x19c   :  { %606 = vmatpush.bf16.msrb.mxu2 %v1839_v53 }
 0x19d   :  { %676 = vmatpush.bf16.msrb.mxu3 %v1795_v39  ;;  %689 = vmatpush.bf16.msra.mxu0 %v1799_v40 }
 0x1a0   :  { %607 = vmatpush.bf16.msrb.mxu2 %v1875_v0 }
 0x1a1   :  { %677 = vmatpush.bf16.msrb.mxu3 %v1823_v48  ;;  %690 = vmatpush.bf16.msra.mxu0 %v1827_v49 }
 0x1a4   :  { %608 = vmatpush.bf16.msrb.mxu2 %v1897_v9 }
 0x1a5   :  { %678 = vmatpush.bf16.msrb.mxu3 %v1851_v57  ;;  %691 = vmatpush.bf16.msra.mxu0 %v1863_v60 }
 0x1a8   :  { %609 = vmatpush.bf16.msrb.mxu2 %v1911_v15 }
 0x1a9   :  { %679 = vmatpush.bf16.msrb.mxu3 %v1890_v6  ;;  %692 = vmatpush.bf16.msra.mxu0 %v1894_v8 }
 0x209   :  { %v419_v50 = vpop.f32.mrf.mxu0 }
 0x20a   :  { %v469_v34 = vadd.f32 %v1976_v46, %v419_v50 }
 0x20e   :  { %v393_v54 = vpop.f32.mrf.mxu2  ;;  %v406_v55 = vpop.f32.mrf.mxu3 }
 0x20f   :  { %v429_v56 = vadd.f32 %v426_v51, %v393_v54  ;;  %v449_v58 = vadd.f32 %v427_v52, %v406_v55 }
 0x211   :  { %v1452_v61 = vmul.f32 -1.442695, %v429_v56  ;;  %v1453_v62 = vmul.f32 -1.442695, %v449_v58  ;;  %v421_v63 = vpop.f32.mrf.mxu0 }
 0x213   :  { %1545 = vpow2.f32 %v1452_v61 }
 0x214   :  { %1547 = vpow2.f32 %v1453_v62 }
 0x216   :  { %v395_v1 = vpop.f32.mrf.mxu2  ;;  %v408_v2 = vpop.f32.mrf.mxu3 }
 0x219   :  { %v1546_v4 = vpop.eup %1545 }
 0x21a   :  { %v1548_v12 = vpop.eup %1547  ;;  %v433_v13 = vadd.f32 1.0, %v1546_v4 }
 0x21b   :  { %v453_v14 = vadd.f32 1.0, %v1548_v12 }
 0x21c   :  { %1549 = vrcp.f32 %v433_v13  ;;  %v445_v23 = vand.u32 2147483648, %v433_v13  ;;  %v443_v27 = vand.u32 2147483647, %v433_v13  ;;  %vm439_vm1 = vweird.f32 %v433_v13 }
 0x21d   :  { %1551 = vrcp.f32 %v453_v14  ;;  %v465_v29 = vand.u32 2147483648, %v453_v14  ;;  %vm459_vm5 = vweird.f32 %v453_v14  ;;  %v463_v51 = vand.u32 2147483647, %v453_v14 }
 0x21e   :  { %v446_v5 = vor.u32 1.1754944e-38, %v445_v23  ;;  %vm444_vm3 = vcmp.eq.f32.partialorder %v443_v27, 8.507059e+37 }
 0x21f   :  { %v466_v55 = vor.u32 1.1754944e-38, %v465_v29  ;;  %vm464_vm7 = vcmp.eq.f32.partialorder %v463_v51, 8.507059e+37 }
 0x222   :  { %v1550_v16 = vpop.eup %1549 }
 0x223   :  { %v1552_v17 = vpop.eup %1551  ;;  %v435_v20 = vmul.f32 %v1550_v16, %v433_v13  ;;  %vm440_vm0 = vweird.f32 %v1550_v16 }
 0x224   :  { %v455_v24 = vmul.f32 %v1552_v17, %v453_v14  ;;  %vm441_vm2 = vmor %vm439_vm1, %vm440_vm0  ;;  %vm460_vm4 = vweird.f32 %v1552_v17 }
 0x225   :  { %v436_v21 = vsub.f32 1.0, %v435_v20  ;;  %vm461_vm6 = vmor %vm459_vm5, %vm460_vm4 }
 0x226   :  { %v456_v33 = vsub.f32 1.0, %v455_v24 }
 0x227   :  { %v437_v25 = vmul.f32 %v1550_v16, %v436_v21 }
 0x228   :  { %v457_v42 = vmul.f32 %v1552_v17, %v456_v33 }
 0x229   :  { %v438_v32 = vadd.f32 %v1550_v16, %v437_v25 }
 0x22a   :  { %v458_v47 = vadd.f32 %v1552_v17, %v457_v42 }
 0x22b   :  { %v442_v36 = vsel %vm441_vm2, %v1550_v16, %v438_v32 }
 0x22c   :  { %v447_v37 = vsel %vm444_vm3, %v446_v5, %v442_v36  ;;  %v462_v52 = vsel %vm461_vm6, %v1552_v17, %v458_v47 }
 0x22d   :  { %v470_v41 = vmul.f32 %v469_v34, %v447_v37  ;;  %v467_v56 = vsel %vm464_vm7, %v466_v55, %v462_v52 }
 0x22f   :  { %v471_v43 = vadd.f32 %v470_v41, %v428_v38  ;;  %v1456_v38 = vld [vmem:[%s2376_s0 + $0x2c] sm:$0xf] }
 0x230   :  { %v524_v29 = vunpack.c.l.bf16 %v1456_v38 }
 0x231   :  { %1553 = vtanh.f32 %v471_v43 }
 0x237   :  { %v1554_v54 = vpop.eup %1553 }
 0x238   :  { %v473_v50 = vsub.f32 %v2027_v45, %v1554_v54  ;;  %v1455_v45 = vld [vmem:[%s2376_s0 + $0x24] sm:$0xff] }
 0x239   :  { %v522_v1 = vunpack.c.l.bf16 %v1455_v45  ;;  %v523_v13 = vunpack.c.h.bf16 %v1455_v45 }
 0x23a   :  { %v474_v58 = vmul.f32 %v473_v50, %v467_v56 }
 0x23c   :  { %v475_v61 = vadd.f32 %v1554_v54, %v474_v58 }
 0x23e   :  { %1454 = vst [vmem:[%s2377_s5 + $0x10] sm:$0xff] %v475_v61  ;;  %v2067_v62 = vmul.f32 %v475_v61, %v1859_v59 }
 0x240   :  { %v479_v63 = vpack.c.bf16 %v2067_v62, %v2067_v62 }
 0x242   :  { %488 = vmatmul.bf16.vlgmr.msra.gmra.mxu1 %v479_v63  ;;  %501 = vmatmul.bf16.vlgmr.msra.gmra.mxu2 %v479_v63 }
 0x243   :  { %514 = vmatmul.bf16.vlgmr.msra.gmra.mxu3 %v479_v63  ;;  %698 = vmatpush.bf16.msra.mxu1 %v1730_v18 }
 0x244   :  { %768 = vmatpush.bf16.msra.mxu2 %v1686_v3  ;;  %781 = vmatpush.bf16.msra.mxu3 %v1697_v7 }
 0x247   :  { %699 = vmatpush.bf16.msra.mxu1 %v1755_v26 }
 0x248   :  { %769 = vmatpush.bf16.msra.mxu2 %v1706_v10  ;;  %782 = vmatpush.bf16.msra.mxu3 %v1710_v11 }
 0x24b   :  { %700 = vmatpush.bf16.msra.mxu1 %v1783_v35 }
 0x24c   :  { %770 = vmatpush.bf16.msra.mxu2 %v1733_v19  ;;  %783 = vmatpush.bf16.msra.mxu3 %v1743_v22 }
 0x24f   :  { %701 = vmatpush.bf16.msra.mxu1 %v1811_v44 }
 0x250   :  { %771 = vmatpush.bf16.msra.mxu2 %v1767_v30  ;;  %784 = vmatpush.bf16.msra.mxu3 %v1771_v31 }
 0x253   :  { %702 = vmatpush.bf16.msra.mxu1 %v1839_v53 }
 0x254   :  { %772 = vmatpush.bf16.msra.mxu2 %v1795_v39  ;;  %785 = vmatpush.bf16.msra.mxu3 %v1799_v40 }
 0x257   :  { %703 = vmatpush.bf16.msra.mxu1 %v1875_v0 }
 0x258   :  { %773 = vmatpush.bf16.msra.mxu2 %v1823_v48  ;;  %786 = vmatpush.bf16.msra.mxu3 %v1827_v49 }
 0x25b   :  { %704 = vmatpush.bf16.msra.mxu1 %v1897_v9 }
 0x25c   :  { %774 = vmatpush.bf16.msra.mxu2 %v1851_v57  ;;  %787 = vmatpush.bf16.msra.mxu3 %v1863_v60 }
 0x25f   :  { %705 = vmatpush.bf16.msra.mxu1 %v1911_v15 }
 0x260   :  { %775 = vmatpush.bf16.msra.mxu2 %v1890_v6  ;;  %788 = vmatpush.bf16.msra.mxu3 %v1894_v8 }
 0x2bf   :  { %v489_v2 = vpop.f32.mrf.mxu1 }
 0x2c0   :  { %v525_v4 = vadd.f32 %v522_v1, %v489_v2 }
 0x2c2   :  { %v1457_v12 = vmul.f32 -1.442695, %v525_v4 }
 0x2c4   :  { %1555 = vpow2.f32 %v1457_v12 }
 0x2c5   :  { %v502_v14 = vpop.f32.mrf.mxu2 }
 0x2c6   :  { %v545_v16 = vadd.f32 %v523_v13, %v502_v14  ;;  %v515_v17 = vpop.f32.mrf.mxu3 }
 0x2c7   :  { %v491_v20 = vpop.f32.mrf.mxu1  ;;  %v565_v55 = vadd.f32 %v1976_v46, %v515_v17 }
 0x2c8   :  { %v1458_v21 = vmul.f32 -1.442695, %v545_v16 }
 0x2ca   :  { %v1556_v23 = vpop.eup %1555  ;;  %1557 = vpow2.f32 %v1458_v21 }
 0x2cb   :  { %v529_v24 = vadd.f32 1.0, %v1556_v23 }
 0x2cd   :  { %1559 = vrcp.f32 %v529_v24  ;;  %v504_v25 = vpop.f32.mrf.mxu2  ;;  %v541_v36 = vand.u32 2147483648, %v529_v24  ;;  %v539_v41 = vand.u32 2147483647, %v529_v24  ;;  %vm535_vm9 = vweird.f32 %v529_v24 }
 0x2ce   :  { %v517_v27 = vpop.f32.mrf.mxu3 }
 0x2cf   :  { %v542_v51 = vor.u32 1.1754944e-38, %v541_v36  ;;  %vm540_vm11 = vcmp.eq.f32.partialorder %v539_v41, 8.507059e+37 }
 0x2d0   :  { %v1558_v28 = vpop.eup %1557 }
 0x2d1   :  { %v549_v32 = vadd.f32 1.0, %v1558_v28 }
 0x2d3   :  { %v1560_v5 = vpop.eup %1559  ;;  %1561 = vrcp.f32 %v549_v32  ;;  %v561_v45 = vand.u32 2147483648, %v549_v32  ;;  %vm555_vm13 = vweird.f32 %v549_v32  ;;  %v559_v1 = vand.u32 2147483647, %v549_v32 }
 0x2d4   :  { %v531_v33 = vmul.f32 %v1560_v5, %v529_v24  ;;  %vm536_vm8 = vweird.f32 %v1560_v5 }
 0x2d5   :  { %vm537_vm10 = vmor %vm535_vm9, %vm536_vm8  ;;  %v562_v12 = vor.u32 1.1754944e-38, %v561_v45  ;;  %vm560_vm15 = vcmp.eq.f32.partialorder %v559_v1, 8.507059e+37 }
 0x2d6   :  { %v532_v34 = vsub.f32 1.0, %v531_v33 }
 0x2d8   :  { %v533_v37 = vmul.f32 %v1560_v5, %v532_v34 }
 0x2d9   :  { %v1562_v42 = vpop.eup %1561 }
 0x2da   :  { %v551_v43 = vmul.f32 %v1562_v42, %v549_v32  ;;  %v534_v47 = vadd.f32 %v1560_v5, %v533_v37  ;;  %vm556_vm12 = vweird.f32 %v1562_v42 }
 0x2db   :  { %vm557_vm14 = vmor %vm555_vm13, %vm556_vm12 }
 0x2dc   :  { %v552_v52 = vsub.f32 1.0, %v551_v43  ;;  %v538_v54 = vsel %vm537_vm10, %v1560_v5, %v534_v47 }
 0x2dd   :  { %v543_v50 = vsel %vm540_vm11, %v542_v51, %v538_v54 }
 0x2de   :  { %v566_v56 = vmul.f32 %v565_v55, %v543_v50  ;;  %v553_v58 = vmul.f32 %v1562_v42, %v552_v52 }
 0x2e0   :  { %v567_v61 = vadd.f32 %v566_v56, %v524_v29  ;;  %v554_v63 = vadd.f32 %v1562_v42, %v553_v58 }
 0x2e2   :  { %1563 = vtanh.f32 %v567_v61  ;;  %v558_v2 = vsel %vm557_vm14, %v1562_v42, %v554_v63  ;;  %v1461_v61 = vld [vmem:[%s2376_s0 + $0x38] sm:$0xf] }
 0x2e3   :  { %v563_v14 = vsel %vm560_vm15, %v562_v12, %v558_v2  ;;  %v620_v2 = vunpack.c.l.bf16 %v1461_v61 }
 0x2e8   :  { %v1564_v4 = vpop.eup %1563 }
 0x2e9   :  { %v569_v13 = vsub.f32 %v2067_v62, %v1564_v4  ;;  %v1460_v62 = vld [vmem:[%s2376_s0 + $0x30] sm:$0xff] }
 0x2ea   :  { %v618_v23 = vunpack.c.l.bf16 %v1460_v62  ;;  %v619_v24 = vunpack.c.h.bf16 %v1460_v62 }
 0x2eb   :  { %v570_v16 = vmul.f32 %v569_v13, %v563_v14 }
 0x2ed   :  { %v571_v17 = vadd.f32 %v1564_v4, %v570_v16 }
 0x2ef   :  { %1459 = vst [vmem:[%s2377_s5 + $0x18] sm:$0xff] %v571_v17  ;;  %v2107_v20 = vmul.f32 %v571_v17, %v1859_v59 }
 0x2f1   :  { %v575_v21 = vpack.c.bf16 %v2107_v20, %v2107_v20 }
 0x2f3   :  { %584 = vmatmul.bf16.vlgmr.msrb.gmra.mxu0 %v575_v21  ;;  %597 = vmatmul.bf16.vlgmr.msrb.gmra.mxu1 %v575_v21 }
 0x2f4   :  { %610 = vmatmul.bf16.vlgmr.msrb.gmra.mxu2 %v575_v21  ;;  %794 = vmatpush.bf16.msrb.mxu0 %v1730_v18 }
 0x2f5   :  { %864 = vmatpush.bf16.msrb.mxu1 %v1686_v3  ;;  %877 = vmatpush.bf16.msrb.mxu2 %v1697_v7 }
 0x2f8   :  { %795 = vmatpush.bf16.msrb.mxu0 %v1755_v26 }
 0x2f9   :  { %865 = vmatpush.bf16.msrb.mxu1 %v1706_v10  ;;  %878 = vmatpush.bf16.msrb.mxu2 %v1710_v11 }
 0x2fc   :  { %796 = vmatpush.bf16.msrb.mxu0 %v1783_v35 }
 0x2fd   :  { %866 = vmatpush.bf16.msrb.mxu1 %v1733_v19  ;;  %879 = vmatpush.bf16.msrb.mxu2 %v1743_v22 }
 0x300   :  { %797 = vmatpush.bf16.msrb.mxu0 %v1811_v44 }
 0x301   :  { %867 = vmatpush.bf16.msrb.mxu1 %v1767_v30  ;;  %880 = vmatpush.bf16.msrb.mxu2 %v1771_v31 }
 0x304   :  { %798 = vmatpush.bf16.msrb.mxu0 %v1839_v53 }
 0x305   :  { %868 = vmatpush.bf16.msrb.mxu1 %v1795_v39  ;;  %881 = vmatpush.bf16.msrb.mxu2 %v1799_v40 }
 0x308   :  { %799 = vmatpush.bf16.msrb.mxu0 %v1875_v0 }
 0x309   :  { %869 = vmatpush.bf16.msrb.mxu1 %v1823_v48  ;;  %882 = vmatpush.bf16.msrb.mxu2 %v1827_v49 }
 0x30c   :  { %800 = vmatpush.bf16.msrb.mxu0 %v1897_v9 }
 0x30d   :  { %870 = vmatpush.bf16.msrb.mxu1 %v1851_v57  ;;  %883 = vmatpush.bf16.msrb.mxu2 %v1863_v60 }
 0x310   :  { %801 = vmatpush.bf16.msrb.mxu0 %v1911_v15 }
 0x311   :  { %871 = vmatpush.bf16.msrb.mxu1 %v1890_v6  ;;  %884 = vmatpush.bf16.msrb.mxu2 %v1894_v8 }
 0x370   :  { %v585_v25 = vpop.f32.mrf.mxu0  ;;  %v598_v27 = vpop.f32.mrf.mxu1 }
 0x371   :  { %v621_v28 = vadd.f32 %v618_v23, %v585_v25  ;;  %v641_v32 = vadd.f32 %v619_v24, %v598_v27 }
 0x373   :  { %v1462_v5 = vmul.f32 -1.442695, %v621_v28  ;;  %v1463_v33 = vmul.f32 -1.442695, %v641_v32 }
 0x375   :  { %1565 = vpow2.f32 %v1462_v5 }
 0x376   :  { %1567 = vpow2.f32 %v1463_v33 }
 0x377   :  { %v611_v34 = vpop.f32.mrf.mxu2 }
 0x378   :  { %v587_v36 = vpop.f32.mrf.mxu0  ;;  %v600_v38 = vpop.f32.mrf.mxu1  ;;  %v661_v12 = vadd.f32 %v1976_v46, %v611_v34 }
 0x37b   :  { %v1566_v37 = vpop.eup %1565 }
 0x37c   :  { %v1568_v41 = vpop.eup %1567  ;;  %v625_v42 = vadd.f32 1.0, %v1566_v37 }
 0x37d   :  { %v645_v43 = vadd.f32 1.0, %v1568_v41 }
 0x37e   :  { %1569 = vrcp.f32 %v625_v42  ;;  %v637_v50 = vand.u32 2147483648, %v625_v42  ;;  %v635_v58 = vand.u32 2147483647, %v625_v42  ;;  %vm631_vm1 = vweird.f32 %v625_v42 }
 0x37f   :  { %1571 = vrcp.f32 %v645_v43  ;;  %v613_v47 = vpop.f32.mrf.mxu2  ;;  %v657_v62 = vand.u32 2147483648, %v645_v43  ;;  %vm651_vm5 = vweird.f32 %v645_v43  ;;  %v655_v23 = vand.u32 2147483647, %v645_v43 }
 0x380   :  { %v638_v1 = vor.u32 1.1754944e-38, %v637_v50  ;;  %vm636_vm3 = vcmp.eq.f32.partialorder %v635_v58, 8.507059e+37 }
 0x381   :  { %v658_v27 = vor.u32 1.1754944e-38, %v657_v62  ;;  %vm656_vm7 = vcmp.eq.f32.partialorder %v655_v23, 8.507059e+37 }
 0x384   :  { %v1570_v29 = vpop.eup %1569 }
 0x385   :  { %v1572_v51 = vpop.eup %1571  ;;  %v627_v52 = vmul.f32 %v1570_v29, %v625_v42  ;;  %vm632_vm0 = vweird.f32 %v1570_v29 }
 0x386   :  { %v647_v55 = vmul.f32 %v1572_v51, %v645_v43  ;;  %vm633_vm2 = vmor %vm631_vm1, %vm632_vm0  ;;  %vm652_vm4 = vweird.f32 %v1572_v51 }
 0x387   :  { %v628_v54 = vsub.f32 1.0, %v627_v52  ;;  %vm653_vm6 = vmor %vm651_vm5, %vm652_vm4 }
 0x388   :  { %v648_v45 = vsub.f32 1.0, %v647_v55 }
 0x389   :  { %v629_v56 = vmul.f32 %v1570_v29, %v628_v54 }
 0x38a   :  { %v649_v16 = vmul.f32 %v1572_v51, %v648_v45 }
 0x38b   :  { %v630_v63 = vadd.f32 %v1570_v29, %v629_v56 }
 0x38c   :  { %v650_v21 = vadd.f32 %v1572_v51, %v649_v16  ;;  %v1466_v16 = vld [vmem:[%s2376_s0 + $0x44] sm:$0xf] }
 0x38d   :  { %v634_v4 = vsel %vm633_vm2, %v1570_v29, %v630_v63 }
 0x38e   :  { %v639_v13 = vsel %vm636_vm3, %v638_v1, %v634_v4  ;;  %v654_v24 = vsel %vm653_vm6, %v1572_v51, %v650_v21 }
 0x38f   :  { %v662_v14 = vmul.f32 %v661_v12, %v639_v13  ;;  %v659_v32 = vsel %vm656_vm7, %v658_v27, %v654_v24 }
 0x391   :  { %v663_v17 = vadd.f32 %v662_v14, %v620_v2 }
 0x393   :  { %1573 = vtanh.f32 %v663_v17 }
 0x399   :  { %v1574_v25 = vpop.eup %1573 }
 0x39a   :  { %v665_v28 = vsub.f32 %v2107_v20, %v1574_v25 }
 0x39c   :  { %v666_v5 = vmul.f32 %v665_v28, %v659_v32 }
 0x39e   :  { %v667_v33 = vadd.f32 %v1574_v25, %v666_v5  ;;  %v716_v25 = vunpack.c.l.bf16 %v1466_v16 }
 0x3a0   :  { %1464 = vst [vmem:[%s2377_s5 + $0x20] sm:$0xff] %v667_v33  ;;  %v2147_v34 = vmul.f32 %v667_v33, %v1859_v59  ;;  %v1465_v59 = vld [vmem:[%s2376_s0 + $0x3c] sm:$0xff] }
 0x3a1   :  { %v715_v20 = vunpack.c.h.bf16 %v1465_v59  ;;  %v714_v42 = vunpack.c.l.bf16 %v1465_v59 }
 0x3a2   :  { %v671_v36 = vpack.c.bf16 %v2147_v34, %v2147_v34 }
 0x3a4   :  { %680 = vmatmul.bf16.vlgmr.msrb.gmra.mxu3 %v671_v36  ;;  %693 = vmatmul.bf16.vlgmr.msra.gmra.mxu0 %v671_v36 }
 0x3a5   :  { %706 = vmatmul.bf16.vlgmr.msra.gmra.mxu1 %v671_v36  ;;  %890 = vmatpush.bf16.msrb.mxu3 %v1730_v18 }
 0x3a6   :  { %960 = vmatpush.bf16.msra.mxu0 %v1686_v3  ;;  %973 = vmatpush.bf16.msra.mxu1 %v1697_v7 }
 0x3a9   :  { %891 = vmatpush.bf16.msrb.mxu3 %v1755_v26 }
 0x3aa   :  { %961 = vmatpush.bf16.msra.mxu0 %v1706_v10  ;;  %974 = vmatpush.bf16.msra.mxu1 %v1710_v11 }
 0x3ad   :  { %892 = vmatpush.bf16.msrb.mxu3 %v1783_v35 }
 0x3ae   :  { %962 = vmatpush.bf16.msra.mxu0 %v1733_v19  ;;  %975 = vmatpush.bf16.msra.mxu1 %v1743_v22 }
 0x3b1   :  { %893 = vmatpush.bf16.msrb.mxu3 %v1811_v44 }
 0x3b2   :  { %963 = vmatpush.bf16.msra.mxu0 %v1767_v30  ;;  %976 = vmatpush.bf16.msra.mxu1 %v1771_v31 }
 0x3b5   :  { %894 = vmatpush.bf16.msrb.mxu3 %v1839_v53 }
 0x3b6   :  { %964 = vmatpush.bf16.msra.mxu0 %v1795_v39  ;;  %977 = vmatpush.bf16.msra.mxu1 %v1799_v40 }
 0x3b9   :  { %895 = vmatpush.bf16.msrb.mxu3 %v1875_v0 }
 0x3ba   :  { %965 = vmatpush.bf16.msra.mxu0 %v1823_v48  ;;  %978 = vmatpush.bf16.msra.mxu1 %v1827_v49 }
 0x3bd   :  { %896 = vmatpush.bf16.msrb.mxu3 %v1897_v9 }
 0x3be   :  { %966 = vmatpush.bf16.msra.mxu0 %v1851_v57  ;;  %979 = vmatpush.bf16.msra.mxu1 %v1863_v60 }
 0x3c1   :  { %897 = vmatpush.bf16.msrb.mxu3 %v1911_v15 }
 0x3c2   :  { %967 = vmatpush.bf16.msra.mxu0 %v1890_v6  ;;  %980 = vmatpush.bf16.msra.mxu1 %v1894_v8 }
 0x421   :  { %v694_v38 = vpop.f32.mrf.mxu0 }
 0x422   :  { %v737_v37 = vadd.f32 %v715_v20, %v694_v38  ;;  %v707_v41 = vpop.f32.mrf.mxu1 }
 0x423   :  { %v757_v23 = vadd.f32 %v1976_v46, %v707_v41 }
 0x424   :  { %v1468_v43 = vmul.f32 -1.442695, %v737_v37 }
 0x426   :  { %1575 = vpow2.f32 %v1468_v43 }
 0x427   :  { %v681_v47 = vpop.f32.mrf.mxu3 }
 0x428   :  { %v717_v29 = vadd.f32 %v714_v42, %v681_v47  ;;  %v2189_v47 = vld [vmem:[%s2374_s2] sm:$0xff] }
 0x429   :  { %v696_v51 = vpop.f32.mrf.mxu0 }
 0x42a   :  { %v1467_v52 = vmul.f32 -1.442695, %v717_v29  ;;  %v709_v54 = vpop.f32.mrf.mxu1 }
 0x42c   :  { %1577 = vpow2.f32 %v1467_v52  ;;  %v1576_v55 = vpop.eup %1575 }
 0x42d   :  { %v741_v58 = vadd.f32 1.0, %v1576_v55 }
 0x42f   :  { %v683_v50 = vpop.f32.mrf.mxu3  ;;  %v753_v36 = vand.u32 2147483648, %v741_v58  ;;  %vm747_vm13 = vweird.f32 %v741_v58  ;;  %v751_v59 = vand.u32 2147483647, %v741_v58 }
 0x431   :  { %v754_v37 = vor.u32 1.1754944e-38, %v753_v36  ;;  %vm752_vm15 = vcmp.eq.f32.partialorder %v751_v59, 8.507059e+37  ;;  %v2229_v59 = vld [vmem:[%s2375_s4] ss:$0 sm:$0xff] }
 0x432   :  { %v1578_v56 = vpop.eup %1577 }
 0x433   :  { %v721_v61 = vadd.f32 1.0, %v1578_v56 }
 0x435   :  { %1579 = vrcp.f32 %v721_v61  ;;  %v733_v12 = vand.u32 2147483648, %v721_v61  ;;  %v731_v14 = vand.u32 2147483647, %v721_v61  ;;  %vm727_vm9 = vweird.f32 %v721_v61 }
 0x436   :  { %1581 = vrcp.f32 %v741_v58 }
 0x437   :  { %v734_v62 = vor.u32 1.1754944e-38, %v733_v12  ;;  %vm732_vm11 = vcmp.eq.f32.partialorder %v731_v14, 8.507059e+37 }
 0x43b   :  { %v1580_v63 = vpop.eup %1579 }
 0x43c   :  { %v1582_v45 = vpop.eup %1581  ;;  %v723_v1 = vmul.f32 %v1580_v63, %v721_v61  ;;  %vm728_vm8 = vweird.f32 %v1580_v63 }
 0x43d   :  { %v743_v4 = vmul.f32 %v1582_v45, %v741_v58  ;;  %vm729_vm10 = vmor %vm727_vm9, %vm728_vm8  ;;  %vm748_vm12 = vweird.f32 %v1582_v45 }
 0x43e   :  { %v724_v2 = vsub.f32 1.0, %v723_v1  ;;  %vm749_vm14 = vmor %vm747_vm13, %vm748_vm12 }
 0x43f   :  { %v744_v21 = vsub.f32 1.0, %v743_v4 }
 0x440   :  { %v725_v13 = vmul.f32 %v1580_v63, %v724_v2 }
 0x441   :  { %v745_v32 = vmul.f32 %v1582_v45, %v744_v21 }
 0x442   :  { %v726_v17 = vadd.f32 %v1580_v63, %v725_v13 }
 0x443   :  { %v746_v33 = vadd.f32 %v1582_v45, %v745_v32  ;;  %v1471_v32 = vld [vmem:[%s2376_s0 + $0x50] sm:$0xf] }
 0x444   :  { %v730_v24 = vsel %vm729_vm10, %v1580_v63, %v726_v17 }
 0x445   :  { %v735_v27 = vsel %vm732_vm11, %v734_v62, %v730_v24  ;;  %v750_v20 = vsel %vm749_vm14, %v1582_v45, %v746_v33 }
 0x446   :  { %v758_v28 = vmul.f32 %v757_v23, %v735_v27  ;;  %v755_v41 = vsel %vm752_vm15, %v754_v37, %v750_v20  ;;  %v812_v37 = vunpack.c.l.bf16 %v1471_v32 }
 0x448   :  { %v759_v5 = vadd.f32 %v758_v28, %v716_v25 }
 0x44a   :  { %1583 = vtanh.f32 %v759_v5 }
 0x450   :  { %v1584_v38 = vpop.eup %1583 }
 0x451   :  { %v761_v46 = vsub.f32 %v2147_v34, %v1584_v38  ;;  %v1470_v34 = vld [vmem:[%s2376_s0 + $0x48] sm:$0xff] }
 0x452   :  { %v810_v54 = vunpack.c.l.bf16 %v1470_v34  ;;  %v811_v55 = vunpack.c.h.bf16 %v1470_v34 }
 0x453   :  { %v762_v42 = vmul.f32 %v761_v46, %v755_v41 }
 0x455   :  { %v763_v43 = vadd.f32 %v1584_v38, %v762_v42 }
 0x457   :  { %1469 = vst [vmem:[%s2377_s5 + $0x28] sm:$0xff] %v763_v43  ;;  %v2192_v29 = vmul.f32 %v2189_v47, %v763_v43 }
 0x459   :  { %v767_v51 = vpack.c.bf16 %v2192_v29, %v2192_v29 }
 0x45b   :  { %776 = vmatmul.bf16.vlgmr.msra.gmra.mxu2 %v767_v51  ;;  %789 = vmatmul.bf16.vlgmr.msra.gmra.mxu3 %v767_v51 }
 0x45c   :  { %802 = vmatmul.bf16.vlgmr.msrb.gmra.mxu0 %v767_v51  ;;  %986 = vmatpush.bf16.msra.mxu2 %v1730_v18 }
 0x45d   :  { %1056 = vmatpush.bf16.msra.mxu3 %v1686_v3  ;;  %1069 = vmatpush.bf16.msrb.mxu0 %v1697_v7 }
 0x460   :  { %987 = vmatpush.bf16.msra.mxu2 %v1755_v26 }
 0x461   :  { %1057 = vmatpush.bf16.msra.mxu3 %v1706_v10  ;;  %1070 = vmatpush.bf16.msrb.mxu0 %v1710_v11 }
 0x464   :  { %988 = vmatpush.bf16.msra.mxu2 %v1783_v35 }
 0x465   :  { %1058 = vmatpush.bf16.msra.mxu3 %v1733_v19  ;;  %1071 = vmatpush.bf16.msrb.mxu0 %v1743_v22 }
 0x468   :  { %989 = vmatpush.bf16.msra.mxu2 %v1811_v44 }
 0x469   :  { %1059 = vmatpush.bf16.msra.mxu3 %v1767_v30  ;;  %1072 = vmatpush.bf16.msrb.mxu0 %v1771_v31 }
 0x46c   :  { %990 = vmatpush.bf16.msra.mxu2 %v1839_v53 }
 0x46d   :  { %1060 = vmatpush.bf16.msra.mxu3 %v1795_v39  ;;  %1073 = vmatpush.bf16.msrb.mxu0 %v1799_v40 }
 0x470   :  { %991 = vmatpush.bf16.msra.mxu2 %v1875_v0 }
 0x471   :  { %1061 = vmatpush.bf16.msra.mxu3 %v1823_v48  ;;  %1074 = vmatpush.bf16.msrb.mxu0 %v1827_v49 }
 0x474   :  { %992 = vmatpush.bf16.msra.mxu2 %v1897_v9 }
 0x475   :  { %1062 = vmatpush.bf16.msra.mxu3 %v1851_v57  ;;  %1075 = vmatpush.bf16.msrb.mxu0 %v1863_v60 }
 0x478   :  { %993 = vmatpush.bf16.msra.mxu2 %v1911_v15 }
 0x479   :  { %1063 = vmatpush.bf16.msra.mxu3 %v1890_v6  ;;  %1076 = vmatpush.bf16.msrb.mxu0 %v1894_v8 }
 0x4d9   :  { %v803_v52 = vpop.f32.mrf.mxu0 }
 0x4da   :  { %v853_v20 = vadd.f32 %v2229_v59, %v803_v52 }
 0x4de   :  { %v777_v50 = vpop.f32.mrf.mxu2  ;;  %v790_v56 = vpop.f32.mrf.mxu3 }
 0x4df   :  { %v813_v58 = vadd.f32 %v810_v54, %v777_v50  ;;  %v833_v61 = vadd.f32 %v811_v55, %v790_v56 }
 0x4e1   :  { %v1472_v63 = vmul.f32 -1.442695, %v813_v58  ;;  %v1473_v45 = vmul.f32 -1.442695, %v833_v61  ;;  %v805_v1 = vpop.f32.mrf.mxu0 }
 0x4e3   :  { %1585 = vpow2.f32 %v1472_v63 }
 0x4e4   :  { %1587 = vpow2.f32 %v1473_v45 }
 0x4e6   :  { %v779_v2 = vpop.f32.mrf.mxu2  ;;  %v792_v4 = vpop.f32.mrf.mxu3 }
 0x4e9   :  { %v1586_v12 = vpop.eup %1585 }
 0x4ea   :  { %v1588_v13 = vpop.eup %1587  ;;  %v817_v14 = vadd.f32 1.0, %v1586_v12 }
 0x4eb   :  { %v837_v16 = vadd.f32 1.0, %v1588_v13 }
 0x4ec   :  { %1589 = vrcp.f32 %v817_v14  ;;  %v829_v24 = vand.u32 2147483648, %v817_v14  ;;  %v827_v28 = vand.u32 2147483647, %v817_v14  ;;  %vm823_vm1 = vweird.f32 %v817_v14 }
 0x4ed   :  { %1591 = vrcp.f32 %v837_v16  ;;  %v849_v34 = vand.u32 2147483648, %v837_v16  ;;  %vm843_vm5 = vweird.f32 %v837_v16  ;;  %v847_v54 = vand.u32 2147483647, %v837_v16 }
 0x4ee   :  { %v830_v33 = vor.u32 1.1754944e-38, %v829_v24  ;;  %vm828_vm3 = vcmp.eq.f32.partialorder %v827_v28, 8.507059e+37 }
 0x4ef   :  { %v850_v56 = vor.u32 1.1754944e-38, %v849_v34  ;;  %vm848_vm7 = vcmp.eq.f32.partialorder %v847_v54, 8.507059e+37 }
 0x4f2   :  { %v1590_v17 = vpop.eup %1589 }
 0x4f3   :  { %v1592_v21 = vpop.eup %1591  ;;  %v819_v62 = vmul.f32 %v1590_v17, %v817_v14  ;;  %vm824_vm0 = vweird.f32 %v1590_v17 }
 0x4f4   :  { %v839_v25 = vmul.f32 %v1592_v21, %v837_v16  ;;  %vm825_vm2 = vmor %vm823_vm1, %vm824_vm0  ;;  %vm844_vm4 = vweird.f32 %v1592_v21 }
 0x4f5   :  { %v820_v23 = vsub.f32 1.0, %v819_v62  ;;  %vm845_vm6 = vmor %vm843_vm5, %vm844_vm4 }
 0x4f6   :  { %v840_v36 = vsub.f32 1.0, %v839_v25 }
 0x4f7   :  { %v821_v27 = vmul.f32 %v1590_v17, %v820_v23 }
 0x4f8   :  { %v841_v42 = vmul.f32 %v1592_v21, %v840_v36 }
 0x4f9   :  { %v822_v5 = vadd.f32 %v1590_v17, %v821_v27 }
 0x4fa   :  { %v842_v51 = vadd.f32 %v1592_v21, %v841_v42 }
 0x4fb   :  { %v826_v38 = vsel %vm825_vm2, %v1590_v17, %v822_v5 }
 0x4fc   :  { %v831_v46 = vsel %vm828_vm3, %v830_v33, %v826_v38  ;;  %v846_v55 = vsel %vm845_vm6, %v1592_v21, %v842_v51 }
 0x4fd   :  { %v854_v41 = vmul.f32 %v853_v20, %v831_v46  ;;  %v851_v58 = vsel %vm848_vm7, %v850_v56, %v846_v55 }
 0x4ff   :  { %v855_v43 = vadd.f32 %v854_v41, %v812_v37  ;;  %v1476_v37 = vld [vmem:[%s2376_s0 + $0x5c] sm:$0xf] }
 0x500   :  { %v908_v34 = vunpack.c.l.bf16 %v1476_v37 }
 0x501   :  { %1593 = vtanh.f32 %v855_v43 }
 0x507   :  { %v1594_v50 = vpop.eup %1593 }
 0x508   :  { %v857_v52 = vsub.f32 %v2192_v29, %v1594_v50  ;;  %v1475_v29 = vld [vmem:[%s2376_s0 + $0x54] sm:$0xff] }
 0x509   :  { %v906_v2 = vunpack.c.l.bf16 %v1475_v29  ;;  %v907_v14 = vunpack.c.h.bf16 %v1475_v29 }
 0x50a   :  { %v858_v61 = vmul.f32 %v857_v52, %v851_v58 }
 0x50c   :  { %v859_v63 = vadd.f32 %v1594_v50, %v858_v61 }
 0x50e   :  { %1474 = vst [vmem:[%s2377_s5 + $0x30] sm:$0xff] %v859_v63  ;;  %v2237_v45 = vmul.f32 %v2189_v47, %v859_v63 }
 0x510   :  { %v863_v1 = vpack.c.bf16 %v2237_v45, %v2237_v45 }
 0x512   :  { %872 = vmatmul.bf16.vlgmr.msrb.gmra.mxu1 %v863_v1  ;;  %885 = vmatmul.bf16.vlgmr.msrb.gmra.mxu2 %v863_v1 }
 0x513   :  { %898 = vmatmul.bf16.vlgmr.msrb.gmra.mxu3 %v863_v1  ;;  %1082 = vmatpush.bf16.msrb.mxu1 %v1730_v18 }
 0x514   :  { %1152 = vmatpush.bf16.msrb.mxu2 %v1686_v3  ;;  %1165 = vmatpush.bf16.msrb.mxu3 %v1697_v7 }
 0x517   :  { %1083 = vmatpush.bf16.msrb.mxu1 %v1755_v26 }
 0x518   :  { %1153 = vmatpush.bf16.msrb.mxu2 %v1706_v10  ;;  %1166 = vmatpush.bf16.msrb.mxu3 %v1710_v11 }
 0x51b   :  { %1084 = vmatpush.bf16.msrb.mxu1 %v1783_v35 }
 0x51c   :  { %1154 = vmatpush.bf16.msrb.mxu2 %v1733_v19  ;;  %1167 = vmatpush.bf16.msrb.mxu3 %v1743_v22 }
 0x51f   :  { %1085 = vmatpush.bf16.msrb.mxu1 %v1811_v44 }
 0x520   :  { %1155 = vmatpush.bf16.msrb.mxu2 %v1767_v30  ;;  %1168 = vmatpush.bf16.msrb.mxu3 %v1771_v31 }
 0x523   :  { %1086 = vmatpush.bf16.msrb.mxu1 %v1839_v53 }
 0x524   :  { %1156 = vmatpush.bf16.msrb.mxu2 %v1795_v39  ;;  %1169 = vmatpush.bf16.msrb.mxu3 %v1799_v40 }
 0x527   :  { %1087 = vmatpush.bf16.msrb.mxu1 %v1875_v0 }
 0x528   :  { %1157 = vmatpush.bf16.msrb.mxu2 %v1823_v48  ;;  %1170 = vmatpush.bf16.msrb.mxu3 %v1827_v49 }
 0x52b   :  { %1088 = vmatpush.bf16.msrb.mxu1 %v1897_v9 }
 0x52c   :  { %1158 = vmatpush.bf16.msrb.mxu2 %v1851_v57  ;;  %1171 = vmatpush.bf16.msrb.mxu3 %v1863_v60 }
 0x52f   :  { %1089 = vmatpush.bf16.msrb.mxu1 %v1911_v15 }
 0x530   :  { %1159 = vmatpush.bf16.msrb.mxu2 %v1890_v6  ;;  %1172 = vmatpush.bf16.msrb.mxu3 %v1894_v8 }
 0x58f   :  { %v873_v4 = vpop.f32.mrf.mxu1 }
 0x590   :  { %v909_v12 = vadd.f32 %v906_v2, %v873_v4 }
 0x592   :  { %v1477_v13 = vmul.f32 -1.442695, %v909_v12 }
 0x594   :  { %1595 = vpow2.f32 %v1477_v13 }
 0x595   :  { %v886_v16 = vpop.f32.mrf.mxu2 }
 0x596   :  { %v929_v17 = vadd.f32 %v907_v14, %v886_v16  ;;  %v899_v21 = vpop.f32.mrf.mxu3 }
 0x597   :  { %v875_v62 = vpop.f32.mrf.mxu1  ;;  %v949_v56 = vadd.f32 %v2229_v59, %v899_v21 }
 0x598   :  { %v1478_v23 = vmul.f32 -1.442695, %v929_v17 }
 0x59a   :  { %v1596_v24 = vpop.eup %1595  ;;  %1597 = vpow2.f32 %v1478_v23 }
 0x59b   :  { %v913_v25 = vadd.f32 1.0, %v1596_v24 }
 0x59d   :  { %1599 = vrcp.f32 %v913_v25  ;;  %v888_v27 = vpop.f32.mrf.mxu2  ;;  %v925_v38 = vand.u32 2147483648, %v913_v25  ;;  %v923_v41 = vand.u32 2147483647, %v913_v25  ;;  %vm919_vm9 = vweird.f32 %v913_v25 }
 0x59e   :  { %v901_v28 = vpop.f32.mrf.mxu3 }
 0x59f   :  { %v926_v54 = vor.u32 1.1754944e-38, %v925_v38  ;;  %vm924_vm11 = vcmp.eq.f32.partialorder %v923_v41, 8.507059e+37 }
 0x5a0   :  { %v1598_v32 = vpop.eup %1597 }
 0x5a1   :  { %v933_v5 = vadd.f32 1.0, %v1598_v32 }
 0x5a3   :  { %v1600_v33 = vpop.eup %1599  ;;  %1601 = vrcp.f32 %v933_v5  ;;  %v945_v29 = vand.u32 2147483648, %v933_v5  ;;  %vm939_vm13 = vweird.f32 %v933_v5  ;;  %v943_v2 = vand.u32 2147483647, %v933_v5 }
 0x5a4   :  { %v915_v36 = vmul.f32 %v1600_v33, %v913_v25  ;;  %vm920_vm8 = vweird.f32 %v1600_v33 }
 0x5a5   :  { %vm921_vm10 = vmor %vm919_vm9, %vm920_vm8  ;;  %v946_v13 = vor.u32 1.1754944e-38, %v945_v29  ;;  %vm944_vm15 = vcmp.eq.f32.partialorder %v943_v2, 8.507059e+37 }
 0x5a6   :  { %v916_v20 = vsub.f32 1.0, %v915_v36 }
 0x5a8   :  { %v917_v46 = vmul.f32 %v1600_v33, %v916_v20  ;;  %v1481_v20 = vld [vmem:[%s2376_s0 + $0x68] sm:$0xf] }
 0x5a9   :  { %v1602_v42 = vpop.eup %1601  ;;  %v1004_v41 = vunpack.c.l.bf16 %v1481_v20 }
 0x5aa   :  { %v935_v43 = vmul.f32 %v1602_v42, %v933_v5  ;;  %v918_v51 = vadd.f32 %v1600_v33, %v917_v46  ;;  %vm940_vm12 = vweird.f32 %v1602_v42 }
 0x5ab   :  { %vm941_vm14 = vmor %vm939_vm13, %vm940_vm12 }
 0x5ac   :  { %v936_v55 = vsub.f32 1.0, %v935_v43  ;;  %v922_v50 = vsel %vm921_vm10, %v1600_v33, %v918_v51 }
 0x5ad   :  { %v927_v52 = vsel %vm924_vm11, %v926_v54, %v922_v50 }
 0x5ae   :  { %v950_v58 = vmul.f32 %v949_v56, %v927_v52  ;;  %v937_v61 = vmul.f32 %v1602_v42, %v936_v55 }
 0x5b0   :  { %v951_v63 = vadd.f32 %v950_v58, %v908_v34  ;;  %v938_v1 = vadd.f32 %v1602_v42, %v937_v61 }
 0x5b2   :  { %1603 = vtanh.f32 %v951_v63  ;;  %v942_v4 = vsel %vm941_vm14, %v1602_v42, %v938_v1 }
 0x5b3   :  { %v947_v16 = vsel %vm944_vm15, %v946_v13, %v942_v4 }
 0x5b8   :  { %v1604_v12 = vpop.eup %1603 }
 0x5b9   :  { %v953_v14 = vsub.f32 %v2237_v45, %v1604_v12 }
 0x5bb   :  { %v954_v17 = vmul.f32 %v953_v14, %v947_v16  ;;  %v1485_v14 = vld [vmem:[%s2376_s0 + $0x6c] sm:$0xff] }
 0x5bc   :  { %v1099_v16 = vunpack.c.h.bf16 %v1485_v14 }
 0x5bd   :  { %v955_v21 = vadd.f32 %v1604_v12, %v954_v17 }
 0x5bf   :  { %1479 = vst [vmem:[%s2377_s5 + $0x38] sm:$0xff] %v955_v21  ;;  %v2277_v62 = vmul.f32 %v2189_v47, %v955_v21  ;;  %v1098_v21 = vunpack.c.l.bf16 %v1485_v14 }
 0x5c1   :  { %v959_v23 = vpack.c.bf16 %v2277_v62, %v2277_v62 }
 0x5c3   :  { %968 = vmatmul.bf16.vlgmr.msra.gmra.mxu0 %v959_v23  ;;  %981 = vmatmul.bf16.vlgmr.msra.gmra.mxu1 %v959_v23 }
 0x5c4   :  { %994 = vmatmul.bf16.vlgmr.msra.gmra.mxu2 %v959_v23  ;;  %1178 = vmatpush.bf16.msra.mxu0 %v1730_v18 }
 0x5c5   :  { %1248 = vmatpush.bf16.msra.mxu1 %v1686_v3  ;;  %1261 = vmatpush.bf16.msra.mxu2 %v1697_v7  ;;  %v1480_v3 = vld [vmem:[%s2376_s0 + $0x60] sm:$0xff] }
 0x5c6   :  { %v1002_v7 = vunpack.c.l.bf16 %v1480_v3 }
 0x5c8   :  { %1179 = vmatpush.bf16.msra.mxu0 %v1755_v26 }
 0x5c9   :  { %1249 = vmatpush.bf16.msra.mxu1 %v1706_v10  ;;  %1262 = vmatpush.bf16.msra.mxu2 %v1710_v11  ;;  %v1003_v10 = vunpack.c.h.bf16 %v1480_v3 }
 0x5cc   :  { %1180 = vmatpush.bf16.msra.mxu0 %v1783_v35 }
 0x5cd   :  { %1250 = vmatpush.bf16.msra.mxu1 %v1733_v19  ;;  %1263 = vmatpush.bf16.msra.mxu2 %v1743_v22 }
 0x5d0   :  { %1181 = vmatpush.bf16.msra.mxu0 %v1811_v44 }
 0x5d1   :  { %1251 = vmatpush.bf16.msra.mxu1 %v1767_v30  ;;  %1264 = vmatpush.bf16.msra.mxu2 %v1771_v31 }
 0x5d4   :  { %1182 = vmatpush.bf16.msra.mxu0 %v1839_v53 }
 0x5d5   :  { %1252 = vmatpush.bf16.msra.mxu1 %v1795_v39  ;;  %1265 = vmatpush.bf16.msra.mxu2 %v1799_v40 }
 0x5d8   :  { %1183 = vmatpush.bf16.msra.mxu0 %v1875_v0 }
 0x5d9   :  { %1253 = vmatpush.bf16.msra.mxu1 %v1823_v48  ;;  %1266 = vmatpush.bf16.msra.mxu2 %v1827_v49 }
 0x5dc   :  { %1184 = vmatpush.bf16.msra.mxu0 %v1897_v9 }
 0x5dd   :  { %1254 = vmatpush.bf16.msra.mxu1 %v1851_v57  ;;  %1267 = vmatpush.bf16.msra.mxu2 %v1863_v60 }
 0x5e0   :  { %1185 = vmatpush.bf16.msra.mxu0 %v1911_v15 }
 0x5e1   :  { %1255 = vmatpush.bf16.msra.mxu1 %v1890_v6  ;;  %1268 = vmatpush.bf16.msra.mxu2 %v1894_v8 }
 0x640   :  { %v969_v11 = vpop.f32.mrf.mxu0  ;;  %v982_v19 = vpop.f32.mrf.mxu1 }
 0x641   :  { %v1005_v22 = vadd.f32 %v1002_v7, %v969_v11  ;;  %v1025_v30 = vadd.f32 %v1003_v10, %v982_v19 }
 0x643   :  { %v1482_v31 = vmul.f32 -1.442695, %v1005_v22  ;;  %v1483_v39 = vmul.f32 -1.442695, %v1025_v30 }
 0x645   :  { %1605 = vpow2.f32 %v1482_v31 }
 0x646   :  { %1607 = vpow2.f32 %v1483_v39 }
 0x647   :  { %v995_v40 = vpop.f32.mrf.mxu2 }
 0x648   :  { %v971_v48 = vpop.f32.mrf.mxu0  ;;  %v984_v49 = vpop.f32.mrf.mxu1  ;;  %v1045_v43 = vadd.f32 %v2229_v59, %v995_v40 }
 0x649   :  { %v1486_v49 = vld [vmem:[%s2376_s0 + $0x74] sm:$0xf] }
 0x64b   :  { %v1606_v57 = vpop.eup %1605 }
 0x64c   :  { %v1608_v60 = vpop.eup %1607  ;;  %v1009_v6 = vadd.f32 1.0, %v1606_v57 }
 0x64d   :  { %v1029_v8 = vadd.f32 1.0, %v1608_v60 }
 0x64e   :  { %1609 = vrcp.f32 %v1009_v6  ;;  %v1021_v5 = vand.u32 2147483648, %v1009_v6  ;;  %v1019_v36 = vand.u32 2147483647, %v1009_v6  ;;  %vm1015_vm1 = vweird.f32 %v1009_v6 }
 0x64f   :  { %1611 = vrcp.f32 %v1029_v8  ;;  %v997_v45 = vpop.f32.mrf.mxu2  ;;  %v1041_v56 = vand.u32 2147483648, %v1029_v8  ;;  %vm1035_vm5 = vweird.f32 %v1029_v8  ;;  %v1039_v52 = vand.u32 2147483647, %v1029_v8 }
 0x650   :  { %v1022_v46 = vor.u32 1.1754944e-38, %v1021_v5  ;;  %vm1020_vm3 = vcmp.eq.f32.partialorder %v1019_v36, 8.507059e+37 }
 0x651   :  { %v1042_v63 = vor.u32 1.1754944e-38, %v1041_v56  ;;  %vm1040_vm7 = vcmp.eq.f32.partialorder %v1039_v52, 8.507059e+37 }
 0x654   :  { %v1610_v24 = vpop.eup %1609 }
 0x655   :  { %v1612_v25 = vpop.eup %1611  ;;  %v1011_v27 = vmul.f32 %v1610_v24, %v1009_v6  ;;  %vm1016_vm0 = vweird.f32 %v1610_v24 }
 0x656   :  { %v1031_v32 = vmul.f32 %v1612_v25, %v1029_v8  ;;  %vm1017_vm2 = vmor %vm1015_vm1, %vm1016_vm0  ;;  %vm1036_vm4 = vweird.f32 %v1612_v25 }
 0x657   :  { %v1012_v28 = vsub.f32 1.0, %v1011_v27  ;;  %vm1037_vm6 = vmor %vm1035_vm5, %vm1036_vm4 }
 0x658   :  { %v1032_v37 = vsub.f32 1.0, %v1031_v32 }
 0x659   :  { %v1013_v33 = vmul.f32 %v1610_v24, %v1012_v28 }
 0x65a   :  { %v1033_v54 = vmul.f32 %v1612_v25, %v1032_v37 }
 0x65b   :  { %v1014_v38 = vadd.f32 %v1610_v24, %v1013_v33 }
 0x65c   :  { %v1034_v50 = vadd.f32 %v1612_v25, %v1033_v54  ;;  %v1490_v54 = vld [vmem:[%s2376_s0 + $0x78] sm:$0xff] }
 0x65d   :  { %v1018_v42 = vsel %vm1017_vm2, %v1610_v24, %v1014_v38  ;;  %v1100_v24 = vunpack.c.l.bf16 %v1486_v49  ;;  %v1195_v56 = vunpack.c.h.bf16 %v1490_v54 }
 0x65e   :  { %v1023_v51 = vsel %vm1020_vm3, %v1022_v46, %v1018_v42  ;;  %v1038_v58 = vsel %vm1037_vm6, %v1612_v25, %v1034_v50  ;;  %v1194_v50 = vunpack.c.l.bf16 %v1490_v54 }
 0x65f   :  { %v1046_v34 = vmul.f32 %v1045_v43, %v1023_v51  ;;  %v1043_v29 = vsel %vm1040_vm7, %v1042_v63, %v1038_v58 }
 0x661   :  { %v1047_v55 = vadd.f32 %v1046_v34, %v1004_v41 }
 0x663   :  { %1613 = vtanh.f32 %v1047_v55 }
 0x669   :  { %v1614_v61 = vpop.eup %1613 }
 0x66a   :  { %v1049_v1 = vsub.f32 %v2277_v62, %v1614_v61 }
 0x66c   :  { %v1050_v2 = vmul.f32 %v1049_v1, %v1043_v29 }
 0x66e   :  { %v1051_v4 = vadd.f32 %v1614_v61, %v1050_v2 }
 0x670   :  { %1484 = vst [vmem:[%s2377_s5 + $0x40] sm:$0xff] %v1051_v4  ;;  %v2317_v12 = vmul.f32 %v2189_v47, %v1051_v4 }
 0x672   :  { %v1055_v13 = vpack.c.bf16 %v2317_v12, %v2317_v12 }
 0x674   :  { %1064 = vmatmul.bf16.vlgmr.msra.gmra.mxu3 %v1055_v13  ;;  %1077 = vmatmul.bf16.vlgmr.msrb.gmra.mxu0 %v1055_v13 }
 0x675   :  { %1090 = vmatmul.bf16.vlgmr.msrb.gmra.mxu1 %v1055_v13  ;;  %1274 = vmatpush.bf16.msra.mxu3 %v1730_v18 }
 0x679   :  { %1275 = vmatpush.bf16.msra.mxu3 %v1755_v26 }
 0x67d   :  { %1276 = vmatpush.bf16.msra.mxu3 %v1783_v35 }
 0x681   :  { %1277 = vmatpush.bf16.msra.mxu3 %v1811_v44 }
 0x685   :  { %1278 = vmatpush.bf16.msra.mxu3 %v1839_v53 }
 0x689   :  { %1279 = vmatpush.bf16.msra.mxu3 %v1875_v0 }
 0x68d   :  { %1280 = vmatpush.bf16.msra.mxu3 %v1897_v9 }
 0x691   :  { %1281 = vmatpush.bf16.msra.mxu3 %v1911_v15 }
 0x6f1   :  { %v1078_v18 = vpop.f32.mrf.mxu0 }
 0x6f2   :  { %v1121_v17 = vadd.f32 %v1099_v16, %v1078_v18  ;;  %v1091_v26 = vpop.f32.mrf.mxu1 }
 0x6f3   :  { %v1141_v8 = vadd.f32 %v2229_v59, %v1091_v26 }
 0x6f4   :  { %v1488_v35 = vmul.f32 -1.442695, %v1121_v17 }
 0x6f6   :  { %1615 = vpow2.f32 %v1488_v35 }
 0x6f7   :  { %v1065_v62 = vpop.f32.mrf.mxu3 }
 0x6f8   :  { %v1101_v44 = vadd.f32 %v1098_v21, %v1065_v62 }
 0x6f9   :  { %v1080_v53 = vpop.f32.mrf.mxu0 }
 0x6fa   :  { %v1487_v23 = vmul.f32 -1.442695, %v1101_v44  ;;  %v1093_v0 = vpop.f32.mrf.mxu1 }
 0x6fb   :  { %v1491_v0 = vld [vmem:[%s2376_s0 + $0x80] sm:$0xf] }
 0x6fc   :  { %1617 = vpow2.f32 %v1487_v23  ;;  %v1616_v9 = vpop.eup %1615 }
 0x6fd   :  { %v1125_v7 = vadd.f32 1.0, %v1616_v9 }
 0x6ff   :  { %v1067_v3 = vpop.f32.mrf.mxu3  ;;  %v1137_v33 = vand.u32 2147483648, %v1125_v7  ;;  %vm1131_vm13 = vweird.f32 %v1125_v7  ;;  %v1135_v36 = vand.u32 2147483647, %v1125_v7 }
 0x701   :  { %v1138_v37 = vor.u32 1.1754944e-38, %v1137_v33  ;;  %vm1136_vm15 = vcmp.eq.f32.partialorder %v1135_v36, 8.507059e+37 }
 0x702   :  { %v1618_v15 = vpop.eup %1617 }
 0x703   :  { %v1105_v10 = vadd.f32 1.0, %v1618_v15 }
 0x705   :  { %1619 = vrcp.f32 %v1105_v10  ;;  %v1117_v39 = vand.u32 2147483648, %v1105_v10  ;;  %v1115_v48 = vand.u32 2147483647, %v1105_v10  ;;  %vm1111_vm9 = vweird.f32 %v1105_v10 }
 0x706   :  { %1621 = vrcp.f32 %v1125_v7 }
 0x707   :  { %v1118_v6 = vor.u32 1.1754944e-38, %v1117_v39  ;;  %vm1116_vm11 = vcmp.eq.f32.partialorder %v1115_v48, 8.507059e+37 }
 0x70b   :  { %v1620_v11 = vpop.eup %1619 }
 0x70c   :  { %v1622_v19 = vpop.eup %1621  ;;  %v1107_v22 = vmul.f32 %v1620_v11, %v1105_v10  ;;  %vm1112_vm8 = vweird.f32 %v1620_v11 }
 0x70d   :  { %v1127_v31 = vmul.f32 %v1622_v19, %v1125_v7  ;;  %vm1113_vm10 = vmor %vm1111_vm9, %vm1112_vm8  ;;  %vm1132_vm12 = vweird.f32 %v1622_v19 }
 0x70e   :  { %v1108_v30 = vsub.f32 1.0, %v1107_v22  ;;  %vm1133_vm14 = vmor %vm1131_vm13, %vm1132_vm12 }
 0x70f   :  { %v1128_v60 = vsub.f32 1.0, %v1127_v31 }
 0x710   :  { %v1109_v40 = vmul.f32 %v1620_v11, %v1108_v30 }
 0x711   :  { %v1129_v28 = vmul.f32 %v1622_v19, %v1128_v60 }
 0x712   :  { %v1110_v57 = vadd.f32 %v1620_v11, %v1109_v40 }
 0x713   :  { %v1130_v5 = vadd.f32 %v1622_v19, %v1129_v28  ;;  %v1495_v28 = vld [vmem:[%s2376_s0 + $0x84] sm:$0xff] }
 0x714   :  { %v1114_v45 = vsel %vm1113_vm10, %v1620_v11, %v1110_v57  ;;  %v1196_v11 = vunpack.c.l.bf16 %v1491_v0 }
 0x715   :  { %v1119_v25 = vsel %vm1116_vm11, %v1118_v6, %v1114_v45  ;;  %v1134_v20 = vsel %vm1133_vm14, %v1622_v19, %v1130_v5 }
 0x716   :  { %v1142_v27 = vmul.f32 %v1141_v8, %v1119_v25  ;;  %v1139_v41 = vsel %vm1136_vm15, %v1138_v37, %v1134_v20  ;;  %v1291_v20 = vunpack.c.h.bf16 %v1495_v28 }
 0x718   :  { %v1143_v32 = vadd.f32 %v1142_v27, %v1100_v24 }
 0x71a   :  { %1623 = vtanh.f32 %v1143_v32  ;;  %v1290_v32 = vunpack.c.l.bf16 %v1495_v28 }
 0x720   :  { %v1624_v38 = vpop.eup %1623 }
 0x721   :  { %v1145_v46 = vsub.f32 %v2317_v12, %v1624_v38 }
 0x723   :  { %v1146_v42 = vmul.f32 %v1145_v46, %v1139_v41 }
 0x725   :  { %v1147_v43 = vadd.f32 %v1624_v38, %v1146_v42 }
 0x727   :  { %1489 = vst [vmem:[%s2377_s5 + $0x48] sm:$0xff] %v1147_v43  ;;  %v2341_v51 = vmul.f32 %v2189_v47, %v1147_v43 }
 0x729   :  { %v1151_v34 = vpack.c.bf16 %v2341_v51, %v2341_v51 }
 0x72b   :  { %1160 = vmatmul.bf16.vlgmr.msrb.gmra.mxu2 %v1151_v34  ;;  %1173 = vmatmul.bf16.vlgmr.msrb.gmra.mxu3 %v1151_v34 }
 0x72c   :  { %1186 = vmatmul.bf16.vlgmr.msra.gmra.mxu0 %v1151_v34 }
 0x7a9   :  { %v1187_v55 = vpop.f32.mrf.mxu0 }
 0x7aa   :  { %v1237_v7 = vadd.f32 %v2229_v59, %v1187_v55 }
 0x7ae   :  { %v1161_v52 = vpop.f32.mrf.mxu2  ;;  %v1174_v58 = vpop.f32.mrf.mxu3 }
 0x7af   :  { %v1197_v61 = vadd.f32 %v1194_v50, %v1161_v52  ;;  %v1217_v63 = vadd.f32 %v1195_v56, %v1174_v58 }
 0x7b1   :  { %v1492_v1 = vmul.f32 -1.442695, %v1197_v61  ;;  %v1493_v29 = vmul.f32 -1.442695, %v1217_v63  ;;  %v1189_v2 = vpop.f32.mrf.mxu0  ;;  %v1496_v61 = vld [vmem:[%s2376_s0 + $0x8c] sm:$0xf] }
 0x7b3   :  { %1625 = vpow2.f32 %v1492_v1 }
 0x7b4   :  { %1627 = vpow2.f32 %v1493_v29 }
 0x7b6   :  { %v1163_v4 = vpop.f32.mrf.mxu2  ;;  %v1176_v12 = vpop.f32.mrf.mxu3 }
 0x7b7   :  { %v1292_v12 = vunpack.c.l.bf16 %v1496_v61 }
 0x7b9   :  { %v1626_v13 = vpop.eup %1625 }
 0x7ba   :  { %v1628_v14 = vpop.eup %1627  ;;  %v1201_v16 = vadd.f32 1.0, %v1626_v13 }
 0x7bb   :  { %v1221_v18 = vadd.f32 1.0, %v1628_v14 }
 0x7bc   :  { %1629 = vrcp.f32 %v1201_v16  ;;  %v1213_v62 = vand.u32 2147483648, %v1201_v16  ;;  %v1211_v23 = vand.u32 2147483647, %v1201_v16  ;;  %vm1207_vm1 = vweird.f32 %v1201_v16 }
 0x7bd   :  { %1631 = vrcp.f32 %v1221_v18  ;;  %v1233_v40 = vand.u32 2147483648, %v1221_v18  ;;  %vm1227_vm5 = vweird.f32 %v1221_v18  ;;  %v1231_v48 = vand.u32 2147483647, %v1221_v18 }
 0x7be   :  { %v1214_v3 = vor.u32 1.1754944e-38, %v1213_v62  ;;  %vm1212_vm3 = vcmp.eq.f32.partialorder %v1211_v23, 8.507059e+37 }
 0x7bf   :  { %v1234_v60 = vor.u32 1.1754944e-38, %v1233_v40  ;;  %vm1232_vm7 = vcmp.eq.f32.partialorder %v1231_v48, 8.507059e+37 }
 0x7c2   :  { %v1630_v17 = vpop.eup %1629 }
 0x7c3   :  { %v1632_v26 = vpop.eup %1631  ;;  %v1203_v21 = vmul.f32 %v1630_v17, %v1201_v16  ;;  %vm1208_vm0 = vweird.f32 %v1630_v17 }
 0x7c4   :  { %v1223_v44 = vmul.f32 %v1632_v26, %v1221_v18  ;;  %vm1209_vm2 = vmor %vm1207_vm1, %vm1208_vm0  ;;  %vm1228_vm4 = vweird.f32 %v1632_v26 }
 0x7c5   :  { %v1204_v35 = vsub.f32 1.0, %v1203_v21  ;;  %vm1229_vm6 = vmor %vm1227_vm5, %vm1228_vm4 }
 0x7c6   :  { %v1224_v15 = vsub.f32 1.0, %v1223_v44 }
 0x7c7   :  { %v1205_v53 = vmul.f32 %v1630_v17, %v1204_v35 }
 0x7c8   :  { %v1225_v30 = vmul.f32 %v1632_v26, %v1224_v15 }
 0x7c9   :  { %v1206_v9 = vadd.f32 %v1630_v17, %v1205_v53 }
 0x7ca   :  { %v1226_v39 = vadd.f32 %v1632_v26, %v1225_v30 }
 0x7cb   :  { %v1210_v10 = vsel %vm1209_vm2, %v1630_v17, %v1206_v9 }
 0x7cc   :  { %v1215_v19 = vsel %vm1212_vm3, %v1214_v3, %v1210_v10  ;;  %v1230_v49 = vsel %vm1229_vm6, %v1632_v26, %v1226_v39 }
 0x7cd   :  { %v1238_v22 = vmul.f32 %v1237_v7, %v1215_v19  ;;  %v1235_v8 = vsel %vm1232_vm7, %v1234_v60, %v1230_v49 }
 0x7cf   :  { %v1239_v31 = vadd.f32 %v1238_v22, %v1196_v11 }
 0x7d1   :  { %1633 = vtanh.f32 %v1239_v31 }
 0x7d7   :  { %v1634_v57 = vpop.eup %1633 }
 0x7d8   :  { %v1241_v6 = vsub.f32 %v2341_v51, %v1634_v57 }
 0x7da   :  { %v1242_v45 = vmul.f32 %v1241_v6, %v1235_v8 }
 0x7dc   :  { %v1243_v24 = vadd.f32 %v1634_v57, %v1242_v45 }
 0x7de   :  { %1494 = vst [vmem:[%s2377_s5 + $0x50] sm:$0xff] %v1243_v24  ;;  %v2357_v25 = vmul.f32 %v2189_v47, %v1243_v24 }
 0x7e0   :  { %v1247_v27 = vpack.c.bf16 %v2357_v25, %v2357_v25 }
 0x7e2   :  { %1256 = vmatmul.bf16.vlgmr.msra.gmra.mxu1 %v1247_v27  ;;  %1269 = vmatmul.bf16.vlgmr.msra.gmra.mxu2 %v1247_v27 }
 0x7e3   :  { %1282 = vmatmul.bf16.vlgmr.msra.gmra.mxu3 %v1247_v27 }
 0x85f   :  { %v1257_v5 = vpop.f32.mrf.mxu1 }
 0x860   :  { %v1293_v33 = vadd.f32 %v1290_v32, %v1257_v5 }
 0x862   :  { %v1497_v36 = vmul.f32 -1.442695, %v1293_v33 }
 0x864   :  { %1635 = vpow2.f32 %v1497_v36 }
 0x865   :  { %v1270_v38 = vpop.f32.mrf.mxu2 }
 0x866   :  { %v1313_v37 = vadd.f32 %v1291_v20, %v1270_v38  ;;  %v1283_v47 = vpop.f32.mrf.mxu3 }
 0x867   :  { %v1259_v46 = vpop.f32.mrf.mxu1  ;;  %v1333_v18 = vadd.f32 %v2229_v59, %v1283_v47 }
 0x868   :  { %v1498_v41 = vmul.f32 -1.442695, %v1313_v37 }
 0x86a   :  { %v1636_v42 = vpop.eup %1635  ;;  %1637 = vpow2.f32 %v1498_v41 }
 0x86b   :  { %v1297_v43 = vadd.f32 1.0, %v1636_v42 }
 0x86d   :  { %1639 = vrcp.f32 %v1297_v43  ;;  %v1272_v51 = vpop.f32.mrf.mxu2  ;;  %v1309_v58 = vand.u32 2147483648, %v1297_v43  ;;  %v1307_v1 = vand.u32 2147483647, %v1297_v43  ;;  %vm1303_vm9 = vweird.f32 %v1297_v43 }
 0x86e   :  { %v1285_v34 = vpop.f32.mrf.mxu3 }
 0x86f   :  { %v1310_v13 = vor.u32 1.1754944e-38, %v1309_v58  ;;  %vm1308_vm11 = vcmp.eq.f32.partialorder %v1307_v1, 8.507059e+37 }
 0x870   :  { %v1638_v54 = vpop.eup %1637 }
 0x871   :  { %v1317_v55 = vadd.f32 1.0, %v1638_v54 }
 0x873   :  { %v1640_v50 = vpop.eup %1639  ;;  %1641 = vrcp.f32 %v1317_v55  ;;  %v1329_v44 = vand.u32 2147483648, %v1317_v55  ;;  %vm1323_vm13 = vweird.f32 %v1317_v55  ;;  %v1327_v53 = vand.u32 2147483647, %v1317_v55 }
 0x874   :  { %v1299_v56 = vmul.f32 %v1640_v50, %v1297_v43  ;;  %vm1304_vm8 = vweird.f32 %v1640_v50 }
 0x875   :  { %vm1305_vm10 = vmor %vm1303_vm9, %vm1304_vm8  ;;  %v1330_v9 = vor.u32 1.1754944e-38, %v1329_v44  ;;  %vm1328_vm15 = vcmp.eq.f32.partialorder %v1327_v53, 8.507059e+37 }
 0x876   :  { %v1300_v52 = vsub.f32 1.0, %v1299_v56 }
 0x878   :  { %v1301_v63 = vmul.f32 %v1640_v50, %v1300_v52 }
 0x879   :  { %v1642_v29 = vpop.eup %1641 }
 0x87a   :  { %v1319_v2 = vmul.f32 %v1642_v29, %v1317_v55  ;;  %v1302_v4 = vadd.f32 %v1640_v50, %v1301_v63  ;;  %vm1324_vm12 = vweird.f32 %v1642_v29 }
 0x87b   :  { %vm1325_vm14 = vmor %vm1323_vm13, %vm1324_vm12 }
 0x87c   :  { %v1320_v14 = vsub.f32 1.0, %v1319_v2  ;;  %v1306_v16 = vsel %vm1305_vm10, %v1640_v50, %v1302_v4 }
 0x87d   :  { %v1311_v17 = vsel %vm1308_vm11, %v1310_v13, %v1306_v16 }
 0x87e   :  { %v1334_v26 = vmul.f32 %v1333_v18, %v1311_v17  ;;  %v1321_v21 = vmul.f32 %v1642_v29, %v1320_v14 }
 0x880   :  { %v1335_v35 = vadd.f32 %v1334_v26, %v1292_v12  ;;  %v1322_v62 = vadd.f32 %v1642_v29, %v1321_v21 }
 0x882   :  { %1643 = vtanh.f32 %v1335_v35  ;;  %v1326_v23 = vsel %vm1325_vm14, %v1642_v29, %v1322_v62 }
 0x883   :  { %v1331_v15 = vsel %vm1328_vm15, %v1330_v9, %v1326_v23 }
 0x888   :  { %v1644_v0 = vpop.eup %1643 }
 0x889   :  { %v1337_v3 = vsub.f32 %v2357_v25, %v1644_v0 }
 0x88b   :  { %v1338_v7 = vmul.f32 %v1337_v3, %v1331_v15 }
 0x88d   :  { %v1339_v59 = vadd.f32 %v1644_v0, %v1338_v7 }
 0x88f   :  { %1499 = vst [vmem:[%s2377_s5 + $0x58] sm:$0xff] %v1339_v59 }

// kernel: _forward_impl.1
= control target key start
LH: loop header
LB: loop body
LE: loop exit
PB: predicated region body
PF: predicated region fallthrough
CT: control target
= control target key end

     0   :  { %s2372_s3 = inlined_call_operand.vmem [shape: bf16[128,384], index: 3, kind: input, shape index: {}]   ;;  %s2373_s1 = inlined_call_operand.vmem [shape: f32[8,128], index: 1, kind: input, shape index: {}]   ;;  %s2374_s2 = inlined_call_operand.vmem [shape: f32[8,128], index: 2, kind: input, shape index: {}]   ;;  %s2375_s4 = inlined_call_operand.vmem [shape: f32[1,128], index: 4, kind: input, shape index: {}]   ;;  %s2376_s0 = inlined_call_operand.vmem [shape: bf16[12,8,384], index: 0, kind: input, shape index: {}]   ;;  %s2377_s5 = inlined_call_operand.vmem [shape: f32[12,8,128], index: 5, kind: output, shape index: {}]  }
   0x1   :  { %v1433_v0 = vld [vmem:[%s2372_s3 + $0xa8] sm:$0xf]  ;;  %v1522_v1 = vld [vmem:[%s2372_s3 + $0xb0] sm:$0xf0]  ;;  %v1521_v2 = vld [vmem:[%s2372_s3 + $0xac] sm:$0xf] }
   0x2   :  { %v1686_v3 = vor.u32 %v1522_v1, %v1433_v0  ;;  %v1435_v4 = vld [vmem:[%s2372_s3 + $0xb4] sm:$0xf0]  ;;  %v1421_v5 = vld [vmem:[%s2372_s3 + $0x90] sm:$0xf]  ;;  %v1519_v6 = vld [vmem:[%s2372_s3 + $0x98] sm:$0xf0] }
   0x3   :  { %v1697_v7 = vor.u32 %v1521_v2, %v1435_v4  ;;  %v1518_v8 = vld [vmem:[%s2372_s3 + $0x94] sm:$0xf]  ;;  %v1423_v9 = vld [vmem:[%s2372_s3 + $0x9c] sm:$0xf0]  ;;  %v1706_v10 = vor.u32 %v1519_v6, %v1421_v5  ;;  %v1409_v12 = vld [vmem:[%s2372_s3 + $0x78] sm:$0xf] }
   0x4   :  { %194 = vmatpush.bf16.msra.mxu0 %v1686_v3  ;;  %288 = vmatpush.bf16.msra.mxu3 %v1686_v3  ;;  %v1710_v11 = vor.u32 %v1518_v8, %v1423_v9  ;;  %v1516_v13 = vld [vmem:[%s2372_s3 + $0x80] sm:$0xf0]  ;;  %v1515_v14 = vld [vmem:[%s2372_s3 + $0x7c] sm:$0xf]  ;;  %v1411_v15 = vld [vmem:[%s2372_s3 + $0x84] sm:$0xf0] }
   0x5   :  { %207 = vmatpush.bf16.msra.mxu1 %v1697_v7  ;;  %v1441_v16 = vld [vmem:[%s2372_s3 + $0xb0] sm:$0xf]  ;;  %v1523_v17 = vld [vmem:[%s2372_s3 + $0xb8] sm:$0xf0]  ;;  %v1733_v19 = vor.u32 %v1516_v13, %v1409_v12  ;;  %v1429_v20 = vld [vmem:[%s2372_s3 + $0x98] sm:$0xf]  ;;  %v1743_v22 = vor.u32 %v1515_v14, %v1411_v15 }
   0x6   :  { %v1730_v18 = vor.u32 %v1523_v17, %v1441_v16  ;;  %v1520_v21 = vld [vmem:[%s2372_s3 + $0xa0] sm:$0xf0]  ;;  %v1397_v23 = vld [vmem:[%s2372_s3 + $0x60] sm:$0xf]  ;;  %v1513_v24 = vld [vmem:[%s2372_s3 + $0x68] sm:$0xf0] }
   0x7   :  { %v1512_v25 = vld [vmem:[%s2372_s3 + $0x64] sm:$0xf]  ;;  %v1755_v26 = vor.u32 %v1520_v21, %v1429_v20  ;;  %v1399_v27 = vld [vmem:[%s2372_s3 + $0x6c] sm:$0xf0]  ;;  %v1417_v28 = vld [vmem:[%s2372_s3 + $0x80] sm:$0xf]  ;;  %v1767_v30 = vor.u32 %v1513_v24, %v1397_v23 }
   0x8   :  { %195 = vmatpush.bf16.msra.mxu0 %v1706_v10  ;;  %289 = vmatpush.bf16.msra.mxu3 %v1706_v10  ;;  %v1517_v29 = vld [vmem:[%s2372_s3 + $0x88] sm:$0xf0]  ;;  %v1771_v31 = vor.u32 %v1512_v25, %v1399_v27  ;;  %v1385_v32 = vld [vmem:[%s2372_s3 + $0x48] sm:$0xf]  ;;  %v1510_v33 = vld [vmem:[%s2372_s3 + $0x50] sm:$0xf0] }
   0x9   :  { %208 = vmatpush.bf16.msra.mxu1 %v1710_v11  ;;  %220 = vmatpush.bf16.msra.mxu2 %v1730_v18  ;;  %v1509_v34 = vld [vmem:[%s2372_s3 + $0x4c] sm:$0xf]  ;;  %v1783_v35 = vor.u32 %v1517_v29, %v1417_v28  ;;  %v1387_v36 = vld [vmem:[%s2372_s3 + $0x54] sm:$0xf0]  ;;  %v1405_v37 = vld [vmem:[%s2372_s3 + $0x68] sm:$0xf]  ;;  %v1795_v39 = vor.u32 %v1510_v33, %v1385_v32 }
   0xa   :  { %v1514_v38 = vld [vmem:[%s2372_s3 + $0x70] sm:$0xf0]  ;;  %v1799_v40 = vor.u32 %v1509_v34, %v1387_v36  ;;  %v1373_v41 = vld [vmem:[%s2372_s3 + $0x30] sm:$0xf]  ;;  %v1507_v42 = vld [vmem:[%s2372_s3 + $0x38] sm:$0xf0] }
   0xb   :  { %v1506_v43 = vld [vmem:[%s2372_s3 + $0x34] sm:$0xf]  ;;  %v1811_v44 = vor.u32 %v1514_v38, %v1405_v37  ;;  %v1375_v45 = vld [vmem:[%s2372_s3 + $0x3c] sm:$0xf0]  ;;  %v1393_v46 = vld [vmem:[%s2372_s3 + $0x50] sm:$0xf]  ;;  %v1823_v48 = vor.u32 %v1507_v42, %v1373_v41 }
   0xc   :  { %196 = vmatpush.bf16.msra.mxu0 %v1733_v19  ;;  %290 = vmatpush.bf16.msra.mxu3 %v1733_v19  ;;  %v1511_v47 = vld [vmem:[%s2372_s3 + $0x58] sm:$0xf0]  ;;  %v1827_v49 = vor.u32 %v1506_v43, %v1375_v45  ;;  %v1361_v50 = vld [vmem:[%s2372_s3 + $0x18] sm:$0xf]  ;;  %v1504_v51 = vld [vmem:[%s2372_s3 + $0x20] sm:$0xf0] }
   0xd   :  { %209 = vmatpush.bf16.msra.mxu1 %v1743_v22  ;;  %221 = vmatpush.bf16.msra.mxu2 %v1755_v26  ;;  %v1503_v52 = vld [vmem:[%s2372_s3 + $0x1c] sm:$0xf]  ;;  %v1839_v53 = vor.u32 %v1511_v47, %v1393_v46  ;;  %v1363_v54 = vld [vmem:[%s2372_s3 + $0x24] sm:$0xf0]  ;;  %v1381_v55 = vld [vmem:[%s2372_s3 + $0x38] sm:$0xf]  ;;  %v1851_v57 = vor.u32 %v1504_v51, %v1361_v50 }
   0xe   :  { %v1508_v56 = vld [vmem:[%s2372_s3 + $0x40] sm:$0xf0]  ;;  %v1863_v60 = vor.u32 %v1503_v52, %v1363_v54  ;;  %v1349_v61 = vld [vmem:[%s2372_s3] sm:$0xf]  ;;  %v1501_v62 = vld [vmem:[%s2372_s3 + $0x8] sm:$0xf0] }
   0xf   :  { %v24_v58 = vld [vmem:[%s2373_s1] sm:$0xff]  ;;  %v1875_v0 = vor.u32 %v1508_v56, %v1381_v55  ;;  %v1351_v1 = vld [vmem:[%s2372_s3 + $0xc] sm:$0xf0]  ;;  %v1505_v4 = vld [vmem:[%s2372_s3 + $0x28] sm:$0xf0]  ;;  %v1890_v6 = vor.u32 %v1501_v62, %v1349_v61 }
  0x10   :  { %197 = vmatpush.bf16.msra.mxu0 %v1767_v30  ;;  %291 = vmatpush.bf16.msra.mxu3 %v1767_v30  ;;  %v1859_v59 = vld [vmem:[%s2374_s2] sm:$0xff]  ;;  %v1357_v12 = vld [vmem:[%s2372_s3 + $0x8] sm:$0xf]  ;;  %v1502_v13 = vld [vmem:[%s2372_s3 + $0x10] sm:$0xf0] }
  0x11   :  { %210 = vmatpush.bf16.msra.mxu1 %v1771_v31  ;;  %222 = vmatpush.bf16.msra.mxu2 %v1783_v35  ;;  %v1500_v63 = vld [vmem:[%s2372_s3 + $0x4] sm:$0xf]  ;;  %v1369_v2 = vld [vmem:[%s2372_s3 + $0x20] sm:$0xf]  ;;  %v1887_v5 = vmul.f32 %v1859_v59, %v24_v58  ;;  %v1911_v15 = vor.u32 %v1502_v13, %v1357_v12  ;;  %v234_v55 = vld [vmem:[%s2376_s0 + $0x8] sm:$0xf] }
  0x12   :  { %v1894_v8 = vor.u32 %v1500_v63, %v1351_v1  ;;  %v1897_v9 = vor.u32 %v1505_v4, %v1369_v2  ;;  %v233_v16 = vld [vmem:[%s2376_s0] sm:$0xff]  ;;  %v237_v63 = vunpack.c.l.bf16 %v234_v55 }
  0x13   :  { %v65_v14 = vpack.c.bf16 %v1887_v5, %v1887_v5  ;;  %v235_v17 = vunpack.c.l.bf16 %v233_v16  ;;  %v236_v20 = vunpack.c.h.bf16 %v233_v16  ;;  %v1976_v46 = vld [vmem:[%s2375_s4] ss:$0 sm:$0xff] }
  0x14   :  { %198 = vmatpush.bf16.msra.mxu0 %v1795_v39  ;;  %292 = vmatpush.bf16.msra.mxu3 %v1795_v39 }
  0x15   :  { %211 = vmatpush.bf16.msra.mxu1 %v1799_v40  ;;  %223 = vmatpush.bf16.msra.mxu2 %v1811_v44 }
  0x18   :  { %199 = vmatpush.bf16.msra.mxu0 %v1823_v48  ;;  %293 = vmatpush.bf16.msra.mxu3 %v1823_v48 }
  0x19   :  { %212 = vmatpush.bf16.msra.mxu1 %v1827_v49  ;;  %224 = vmatpush.bf16.msra.mxu2 %v1839_v53 }
  0x1c   :  { %200 = vmatpush.bf16.msra.mxu0 %v1851_v57  ;;  %294 = vmatpush.bf16.msra.mxu3 %v1851_v57 }
  0x1d   :  { %213 = vmatpush.bf16.msra.mxu1 %v1863_v60  ;;  %225 = vmatpush.bf16.msra.mxu2 %v1875_v0 }
  0x20   :  { %201 = vmatpush.bf16.msra.mxu0 %v1890_v6  ;;  %295 = vmatpush.bf16.msra.mxu3 %v1890_v6 }
  0x21   :  { %214 = vmatpush.bf16.msra.mxu1 %v1894_v8  ;;  %226 = vmatpush.bf16.msra.mxu2 %v1897_v9 }
  0x23   :  { %202 = vmatmul.bf16.vlgmr.msra.gmra.mxu0 %v65_v14 }
  0x24   :  { %301 = vmatpush.bf16.msrb.mxu0 %v1697_v7  ;;  %397 = vmatpush.bf16.msrb.mxu3 %v1697_v7 }
  0x25   :  { %314 = vmatpush.bf16.msrb.mxu1 %v1730_v18  ;;  %227 = vmatpush.bf16.msra.mxu2 %v1911_v15 }
  0x26   :  { %215 = vmatmul.bf16.vlgmr.msra.gmra.mxu1 %v65_v14 }
  0x28   :  { %302 = vmatpush.bf16.msrb.mxu0 %v1710_v11  ;;  %398 = vmatpush.bf16.msrb.mxu3 %v1710_v11 }
  0x29   :  { %315 = vmatpush.bf16.msrb.mxu1 %v1755_v26  ;;  %384 = vmatpush.bf16.msrb.mxu2 %v1686_v3 }
  0x2a   :  { %228 = vmatmul.bf16.vlgmr.msra.gmra.mxu2 %v65_v14 }
  0x2c   :  { %303 = vmatpush.bf16.msrb.mxu0 %v1743_v22  ;;  %399 = vmatpush.bf16.msrb.mxu3 %v1743_v22 }
  0x2d   :  { %316 = vmatpush.bf16.msrb.mxu1 %v1783_v35  ;;  %385 = vmatpush.bf16.msrb.mxu2 %v1706_v10 }
  0x30   :  { %304 = vmatpush.bf16.msrb.mxu0 %v1771_v31  ;;  %400 = vmatpush.bf16.msrb.mxu3 %v1771_v31 }
  0x31   :  { %317 = vmatpush.bf16.msrb.mxu1 %v1811_v44  ;;  %386 = vmatpush.bf16.msrb.mxu2 %v1733_v19 }
  0x34   :  { %305 = vmatpush.bf16.msrb.mxu0 %v1799_v40  ;;  %401 = vmatpush.bf16.msrb.mxu3 %v1799_v40 }
  0x35   :  { %318 = vmatpush.bf16.msrb.mxu1 %v1839_v53  ;;  %387 = vmatpush.bf16.msrb.mxu2 %v1767_v30 }
  0x38   :  { %306 = vmatpush.bf16.msrb.mxu0 %v1827_v49  ;;  %402 = vmatpush.bf16.msrb.mxu3 %v1827_v49 }
  0x39   :  { %319 = vmatpush.bf16.msrb.mxu1 %v1875_v0  ;;  %388 = vmatpush.bf16.msrb.mxu2 %v1795_v39 }
  0x3c   :  { %307 = vmatpush.bf16.msrb.mxu0 %v1863_v60  ;;  %403 = vmatpush.bf16.msrb.mxu3 %v1863_v60 }
  0x3d   :  { %320 = vmatpush.bf16.msrb.mxu1 %v1897_v9  ;;  %389 = vmatpush.bf16.msrb.mxu2 %v1823_v48 }
  0x40   :  { %308 = vmatpush.bf16.msrb.mxu0 %v1894_v8  ;;  %404 = vmatpush.bf16.msrb.mxu3 %v1894_v8 }
  0x41   :  { %321 = vmatpush.bf16.msrb.mxu1 %v1911_v15  ;;  %390 = vmatpush.bf16.msrb.mxu2 %v1851_v57 }
  0x44   :  { %410 = vmatpush.bf16.msra.mxu0 %v1730_v18 }
  0x45   :  { %480 = vmatpush.bf16.msra.mxu1 %v1686_v3  ;;  %391 = vmatpush.bf16.msrb.mxu2 %v1890_v6 }
  0x48   :  { %411 = vmatpush.bf16.msra.mxu0 %v1755_v26 }
  0x49   :  { %493 = vmatpush.bf16.msra.mxu2 %v1697_v7  ;;  %481 = vmatpush.bf16.msra.mxu1 %v1706_v10 }
  0x4c   :  { %412 = vmatpush.bf16.msra.mxu0 %v1783_v35 }
  0x4d   :  { %494 = vmatpush.bf16.msra.mxu2 %v1710_v11  ;;  %482 = vmatpush.bf16.msra.mxu1 %v1733_v19 }
  0x50   :  { %413 = vmatpush.bf16.msra.mxu0 %v1811_v44 }
  0x51   :  { %495 = vmatpush.bf16.msra.mxu2 %v1743_v22  ;;  %483 = vmatpush.bf16.msra.mxu1 %v1767_v30 }
  0x54   :  { %414 = vmatpush.bf16.msra.mxu0 %v1839_v53 }
  0x55   :  { %496 = vmatpush.bf16.msra.mxu2 %v1771_v31  ;;  %484 = vmatpush.bf16.msra.mxu1 %v1795_v39 }
  0x58   :  { %415 = vmatpush.bf16.msra.mxu0 %v1875_v0 }
  0x59   :  { %497 = vmatpush.bf16.msra.mxu2 %v1799_v40  ;;  %485 = vmatpush.bf16.msra.mxu1 %v1823_v48 }
  0x5c   :  { %416 = vmatpush.bf16.msra.mxu0 %v1897_v9 }
  0x5d   :  { %498 = vmatpush.bf16.msra.mxu2 %v1827_v49  ;;  %486 = vmatpush.bf16.msra.mxu1 %v1851_v57 }
  0x60   :  { %417 = vmatpush.bf16.msra.mxu0 %v1911_v15 }
  0x61   :  { %499 = vmatpush.bf16.msra.mxu2 %v1863_v60  ;;  %487 = vmatpush.bf16.msra.mxu1 %v1890_v6 }
  0x65   :  { %500 = vmatpush.bf16.msra.mxu2 %v1894_v8 }
  0xa0   :  { %v203_v21 = vpop.f32.mrf.mxu0 }
  0xa1   :  { %v238_v23 = vadd.f32 %v235_v17, %v203_v21 }
  0xa3   :  { %v216_v24 = vpop.f32.mrf.mxu1  ;;  %v1443_v27 = vmul.f32 -1.442695, %v238_v23 }
  0xa4   :  { %v258_v25 = vadd.f32 %v236_v20, %v216_v24 }
  0xa5   :  { %1525 = vpow2.f32 %v1443_v27 }
  0xa6   :  { %v1444_v28 = vmul.f32 -1.442695, %v258_v25 }
  0xa8   :  { %1527 = vpow2.f32 %v1444_v28  ;;  %v205_v29 = vpop.f32.mrf.mxu0 }
  0xab   :  { %v218_v32 = vpop.f32.mrf.mxu1  ;;  %v1526_v33 = vpop.eup %1525 }
  0xac   :  { %v242_v37 = vadd.f32 1.0, %v1526_v33 }
  0xad   :  { %v229_v34 = vpop.f32.mrf.mxu2 }
  0xae   :  { %v1528_v36 = vpop.eup %1527  ;;  %1529 = vrcp.f32 %v242_v37  ;;  %v254_v51 = vand.u32 2147483648, %v242_v37  ;;  %v252_v54 = vand.u32 2147483647, %v242_v37  ;;  %vm248_vm1 = vweird.f32 %v242_v37 }
  0xaf   :  { %v262_v38 = vadd.f32 1.0, %v1528_v36  ;;  %v278_v58 = vadd.f32 %v1976_v46, %v229_v34 }
  0xb0   :  { %v255_v62 = vor.u32 1.1754944e-38, %v254_v51  ;;  %vm253_vm3 = vcmp.eq.f32.partialorder %v252_v54, 8.507059e+37 }
  0xb1   :  { %1531 = vrcp.f32 %v262_v38  ;;  %vm268_vm4 = vweird.f32 %v262_v38  ;;  %v274_v14 = vand.u32 2147483648, %v262_v38  ;;  %v272_v17 = vand.u32 2147483647, %v262_v38 }
  0xb3   :  { %v275_v20 = vor.u32 1.1754944e-38, %v274_v14  ;;  %vm273_vm7 = vcmp.eq.f32.partialorder %v272_v17, 8.507059e+37 }
  0xb4   :  { %v1530_v42 = vpop.eup %1529 }
  0xb5   :  { %v231_v41 = vpop.f32.mrf.mxu2  ;;  %v244_v45 = vmul.f32 %v1530_v42, %v242_v37  ;;  %vm249_vm0 = vweird.f32 %v1530_v42 }
  0xb6   :  { %vm250_vm2 = vmor %vm248_vm1, %vm249_vm0 }
  0xb7   :  { %v1532_v43 = vpop.eup %1531  ;;  %v245_v47 = vsub.f32 1.0, %v244_v45 }
  0xb8   :  { %v264_v50 = vmul.f32 %v1532_v43, %v262_v38  ;;  %vm269_vm5 = vweird.f32 %v1532_v43 }
  0xb9   :  { %v246_v52 = vmul.f32 %v1530_v42, %v245_v47  ;;  %vm270_vm6 = vmor %vm268_vm4, %vm269_vm5 }
  0xba   :  { %v265_v61 = vsub.f32 1.0, %v264_v50 }
  0xbb   :  { %v247_v56 = vadd.f32 %v1530_v42, %v246_v52 }
  0xbc   :  { %v266_v12 = vmul.f32 %v1532_v43, %v265_v61 }
  0xbd   :  { %v251_v1 = vsel %vm250_vm2, %v1530_v42, %v247_v56 }
  0xbe   :  { %v256_v2 = vsel %vm253_vm3, %v255_v62, %v251_v1  ;;  %v267_v16 = vadd.f32 %v1532_v43, %v266_v12 }
  0xbf   :  { %v279_v4 = vmul.f32 %v278_v58, %v256_v2 }
  0xc0   :  { %v271_v21 = vsel %vm270_vm6, %v1532_v43, %v267_v16 }
  0xc1   :  { %v280_v13 = vadd.f32 %v279_v4, %v237_v63  ;;  %v276_v25 = vsel %vm273_vm7, %v275_v20, %v271_v21 }
  0xc3   :  { %1533 = vtanh.f32 %v280_v13  ;;  %v1446_v13 = vld [vmem:[%s2376_s0 + $0x14] sm:$0xf] }
  0xc9   :  { %v1534_v23 = vpop.eup %1533 }
  0xca   :  { %v282_v24 = vsub.f32 %v1887_v5, %v1534_v23  ;;  %v1445_v5 = vld [vmem:[%s2376_s0 + $0xc] sm:$0xff] }
  0xcb   :  { %v331_v33 = vunpack.c.h.bf16 %v1445_v5  ;;  %v330_v38 = vunpack.c.l.bf16 %v1445_v5 }
  0xcc   :  { %v283_v27 = vmul.f32 %v282_v24, %v276_v25 }
  0xce   :  { %v284_v28 = vadd.f32 %v1534_v23, %v283_v27  ;;  %v332_v23 = vunpack.c.l.bf16 %v1446_v13 }
  0xd0   :  { %285 = vst [vmem:[%s2377_s5] sm:$0xff] %v284_v28  ;;  %v1987_v29 = vmul.f32 %v284_v28, %v1859_v59 }
  0xd2   :  { %v287_v32 = vpack.c.bf16 %v1987_v29, %v1987_v29 }
  0xd4   :  { %296 = vmatmul.bf16.vlgmr.msra.gmra.mxu3 %v287_v32  ;;  %309 = vmatmul.bf16.vlgmr.msrb.gmra.mxu0 %v287_v32 }
  0xd5   :  { %322 = vmatmul.bf16.vlgmr.msrb.gmra.mxu1 %v287_v32  ;;  %506 = vmatpush.bf16.msra.mxu3 %v1730_v18 }
  0xd6   :  { %576 = vmatpush.bf16.msrb.mxu0 %v1686_v3  ;;  %589 = vmatpush.bf16.msrb.mxu1 %v1697_v7 }
  0xd9   :  { %507 = vmatpush.bf16.msra.mxu3 %v1755_v26 }
  0xda   :  { %577 = vmatpush.bf16.msrb.mxu0 %v1706_v10  ;;  %590 = vmatpush.bf16.msrb.mxu1 %v1710_v11 }
  0xdd   :  { %508 = vmatpush.bf16.msra.mxu3 %v1783_v35 }
  0xde   :  { %578 = vmatpush.bf16.msrb.mxu0 %v1733_v19  ;;  %591 = vmatpush.bf16.msrb.mxu1 %v1743_v22 }
  0xe1   :  { %509 = vmatpush.bf16.msra.mxu3 %v1811_v44 }
  0xe2   :  { %579 = vmatpush.bf16.msrb.mxu0 %v1767_v30  ;;  %592 = vmatpush.bf16.msrb.mxu1 %v1771_v31 }
  0xe5   :  { %510 = vmatpush.bf16.msra.mxu3 %v1839_v53 }
  0xe6   :  { %580 = vmatpush.bf16.msrb.mxu0 %v1795_v39  ;;  %593 = vmatpush.bf16.msrb.mxu1 %v1799_v40 }
  0xe9   :  { %511 = vmatpush.bf16.msra.mxu3 %v1875_v0 }
  0xea   :  { %581 = vmatpush.bf16.msrb.mxu0 %v1823_v48  ;;  %594 = vmatpush.bf16.msrb.mxu1 %v1827_v49 }
  0xed   :  { %512 = vmatpush.bf16.msra.mxu3 %v1897_v9 }
  0xee   :  { %582 = vmatpush.bf16.msrb.mxu0 %v1851_v57  ;;  %595 = vmatpush.bf16.msrb.mxu1 %v1863_v60 }
  0xf1   :  { %513 = vmatpush.bf16.msra.mxu3 %v1911_v15 }
  0xf2   :  { %583 = vmatpush.bf16.msrb.mxu0 %v1890_v6  ;;  %596 = vmatpush.bf16.msrb.mxu1 %v1894_v8 }
 0x151   :  { %v310_v34 = vpop.f32.mrf.mxu0 }
 0x152   :  { %v353_v36 = vadd.f32 %v331_v33, %v310_v34  ;;  %v323_v37 = vpop.f32.mrf.mxu1 }
 0x153   :  { %v373_v20 = vadd.f32 %v1976_v46, %v323_v37 }
 0x154   :  { %v1448_v41 = vmul.f32 -1.442695, %v353_v36 }
 0x156   :  { %1535 = vpow2.f32 %v1448_v41 }
 0x157   :  { %v297_v42 = vpop.f32.mrf.mxu3 }
 0x158   :  { %v333_v43 = vadd.f32 %v330_v38, %v297_v42 }
 0x159   :  { %v312_v45 = vpop.f32.mrf.mxu0 }
 0x15a   :  { %v1447_v47 = vmul.f32 -1.442695, %v333_v43  ;;  %v325_v50 = vpop.f32.mrf.mxu1 }
 0x15c   :  { %1537 = vpow2.f32 %v1447_v47  ;;  %v1536_v51 = vpop.eup %1535 }
 0x15d   :  { %v357_v55 = vadd.f32 1.0, %v1536_v51 }
 0x15f   :  { %v299_v52 = vpop.f32.mrf.mxu3  ;;  %v369_v5 = vand.u32 2147483648, %v357_v55  ;;  %vm363_vm13 = vweird.f32 %v357_v55  ;;  %v367_v33 = vand.u32 2147483647, %v357_v55 }
 0x161   :  { %v370_v38 = vor.u32 1.1754944e-38, %v369_v5  ;;  %vm368_vm15 = vcmp.eq.f32.partialorder %v367_v33, 8.507059e+37 }
 0x162   :  { %v1538_v54 = vpop.eup %1537 }
 0x163   :  { %v337_v56 = vadd.f32 1.0, %v1538_v54 }
 0x165   :  { %1539 = vrcp.f32 %v337_v56  ;;  %v349_v2 = vand.u32 2147483648, %v337_v56  ;;  %v347_v12 = vand.u32 2147483647, %v337_v56  ;;  %vm343_vm9 = vweird.f32 %v337_v56 }
 0x166   :  { %1541 = vrcp.f32 %v357_v55 }
 0x167   :  { %v350_v17 = vor.u32 1.1754944e-38, %v349_v2  ;;  %vm348_vm11 = vcmp.eq.f32.partialorder %v347_v12, 8.507059e+37 }
 0x16b   :  { %v1540_v58 = vpop.eup %1539 }
 0x16c   :  { %v1542_v61 = vpop.eup %1541  ;;  %v339_v62 = vmul.f32 %v1540_v58, %v337_v56  ;;  %vm344_vm8 = vweird.f32 %v1540_v58 }
 0x16d   :  { %v359_v1 = vmul.f32 %v1542_v61, %v357_v55  ;;  %vm345_vm10 = vmor %vm343_vm9, %vm344_vm8  ;;  %vm364_vm12 = vweird.f32 %v1542_v61 }
 0x16e   :  { %v340_v63 = vsub.f32 1.0, %v339_v62  ;;  %vm365_vm14 = vmor %vm363_vm13, %vm364_vm12 }
 0x16f   :  { %v360_v16 = vsub.f32 1.0, %v359_v1 }
 0x170   :  { %v341_v4 = vmul.f32 %v1540_v58, %v340_v63 }
 0x171   :  { %v361_v27 = vmul.f32 %v1542_v61, %v360_v16 }
 0x172   :  { %v342_v14 = vadd.f32 %v1540_v58, %v341_v4 }
 0x173   :  { %v362_v32 = vadd.f32 %v1542_v61, %v361_v27 }
 0x174   :  { %v346_v21 = vsel %vm345_vm10, %v1540_v58, %v342_v14 }
 0x175   :  { %v351_v24 = vsel %vm348_vm11, %v350_v17, %v346_v21  ;;  %v366_v34 = vsel %vm365_vm14, %v1542_v61, %v362_v32 }
 0x176   :  { %v374_v25 = vmul.f32 %v373_v20, %v351_v24  ;;  %v371_v41 = vsel %vm368_vm15, %v370_v38, %v366_v34 }
 0x178   :  { %v375_v28 = vadd.f32 %v374_v25, %v332_v23 }
 0x17a   :  { %1543 = vtanh.f32 %v375_v28  ;;  %v1451_v28 = vld [vmem:[%s2376_s0 + $0x20] sm:$0xf] }
 0x17b   :  { %v428_v38 = vunpack.c.l.bf16 %v1451_v28 }
 0x180   :  { %v1544_v36 = vpop.eup %1543 }
 0x181   :  { %v377_v37 = vsub.f32 %v1987_v29, %v1544_v36  ;;  %v1450_v29 = vld [vmem:[%s2376_s0 + $0x18] sm:$0xff] }
 0x182   :  { %v426_v51 = vunpack.c.l.bf16 %v1450_v29  ;;  %v427_v52 = vunpack.c.h.bf16 %v1450_v29 }
 0x183   :  { %v378_v42 = vmul.f32 %v377_v37, %v371_v41 }
 0x185   :  { %v379_v43 = vadd.f32 %v1544_v36, %v378_v42 }
 0x187   :  { %1449 = vst [vmem:[%s2377_s5 + $0x8] sm:$0xff] %v379_v43  ;;  %v2027_v45 = vmul.f32 %v379_v43, %v1859_v59 }
 0x189   :  { %v383_v47 = vpack.c.bf16 %v2027_v45, %v2027_v45 }
 0x18b   :  { %392 = vmatmul.bf16.vlgmr.msrb.gmra.mxu2 %v383_v47  ;;  %405 = vmatmul.bf16.vlgmr.msrb.gmra.mxu3 %v383_v47 }
 0x18c   :  { %418 = vmatmul.bf16.vlgmr.msra.gmra.mxu0 %v383_v47  ;;  %602 = vmatpush.bf16.msrb.mxu2 %v1730_v18 }
 0x18d   :  { %672 = vmatpush.bf16.msrb.mxu3 %v1686_v3  ;;  %685 = vmatpush.bf16.msra.mxu0 %v1697_v7 }
 0x190   :  { %603 = vmatpush.bf16.msrb.mxu2 %v1755_v26 }
 0x191   :  { %673 = vmatpush.bf16.msrb.mxu3 %v1706_v10  ;;  %686 = vmatpush.bf16.msra.mxu0 %v1710_v11 }
 0x194   :  { %604 = vmatpush.bf16.msrb.mxu2 %v1783_v35 }
 0x195   :  { %674 = vmatpush.bf16.msrb.mxu3 %v1733_v19  ;;  %687 = vmatpush.bf16.msra.mxu0 %v1743_v22 }
 0x198   :  { %605 = vmatpush.bf16.msrb.mxu2 %v1811_v44 }
 0x199   :  { %675 = vmatpush.bf16.msrb.mxu3 %v1767_v30  ;;  %688 = vmatpush.bf16.msra.mxu0 %v1771_v31 }
 0x19c   :  { %606 = vmatpush.bf16.msrb.mxu2 %v1839_v53 }
 0x19d   :  { %676 = vmatpush.bf16.msrb.mxu3 %v1795_v39  ;;  %689 = vmatpush.bf16.msra.mxu0 %v1799_v40 }
 0x1a0   :  { %607 = vmatpush.bf16.msrb.mxu2 %v1875_v0 }
 0x1a1   :  { %677 = vmatpush.bf16.msrb.mxu3 %v1823_v48  ;;  %690 = vmatpush.bf16.msra.mxu0 %v1827_v49 }
 0x1a4   :  { %608 = vmatpush.bf16.msrb.mxu2 %v1897_v9 }
 0x1a5   :  { %678 = vmatpush.bf16.msrb.mxu3 %v1851_v57  ;;  %691 = vmatpush.bf16.msra.mxu0 %v1863_v60 }
 0x1a8   :  { %609 = vmatpush.bf16.msrb.mxu2 %v1911_v15 }
 0x1a9   :  { %679 = vmatpush.bf16.msrb.mxu3 %v1890_v6  ;;  %692 = vmatpush.bf16.msra.mxu0 %v1894_v8 }
 0x209   :  { %v419_v50 = vpop.f32.mrf.mxu0 }
 0x20a   :  { %v469_v34 = vadd.f32 %v1976_v46, %v419_v50 }
 0x20e   :  { %v393_v54 = vpop.f32.mrf.mxu2  ;;  %v406_v55 = vpop.f32.mrf.mxu3 }
 0x20f   :  { %v429_v56 = vadd.f32 %v426_v51, %v393_v54  ;;  %v449_v58 = vadd.f32 %v427_v52, %v406_v55 }
 0x211   :  { %v1452_v61 = vmul.f32 -1.442695, %v429_v56  ;;  %v1453_v62 = vmul.f32 -1.442695, %v449_v58  ;;  %v421_v63 = vpop.f32.mrf.mxu0 }
 0x213   :  { %1545 = vpow2.f32 %v1452_v61 }
 0x214   :  { %1547 = vpow2.f32 %v1453_v62 }
 0x216   :  { %v395_v1 = vpop.f32.mrf.mxu2  ;;  %v408_v2 = vpop.f32.mrf.mxu3 }
 0x219   :  { %v1546_v4 = vpop.eup %1545 }
 0x21a   :  { %v1548_v12 = vpop.eup %1547  ;;  %v433_v13 = vadd.f32 1.0, %v1546_v4 }
 0x21b   :  { %v453_v14 = vadd.f32 1.0, %v1548_v12 }
 0x21c   :  { %1549 = vrcp.f32 %v433_v13  ;;  %v445_v23 = vand.u32 2147483648, %v433_v13  ;;  %v443_v27 = vand.u32 2147483647, %v433_v13  ;;  %vm439_vm1 = vweird.f32 %v433_v13 }
 0x21d   :  { %1551 = vrcp.f32 %v453_v14  ;;  %v465_v29 = vand.u32 2147483648, %v453_v14  ;;  %vm459_vm5 = vweird.f32 %v453_v14  ;;  %v463_v51 = vand.u32 2147483647, %v453_v14 }
 0x21e   :  { %v446_v5 = vor.u32 1.1754944e-38, %v445_v23  ;;  %vm444_vm3 = vcmp.eq.f32.partialorder %v443_v27, 8.507059e+37 }
 0x21f   :  { %v466_v55 = vor.u32 1.1754944e-38, %v465_v29  ;;  %vm464_vm7 = vcmp.eq.f32.partialorder %v463_v51, 8.507059e+37 }
 0x222   :  { %v1550_v16 = vpop.eup %1549 }
 0x223   :  { %v1552_v17 = vpop.eup %1551  ;;  %v435_v20 = vmul.f32 %v1550_v16, %v433_v13  ;;  %vm440_vm0 = vweird.f32 %v1550_v16 }
 0x224   :  { %v455_v24 = vmul.f32 %v1552_v17, %v453_v14  ;;  %vm441_vm2 = vmor %vm439_vm1, %vm440_vm0  ;;  %vm460_vm4 = vweird.f32 %v1552_v17 }
 0x225   :  { %v436_v21 = vsub.f32 1.0, %v435_v20  ;;  %vm461_vm6 = vmor %vm459_vm5, %vm460_vm4 }
 0x226   :  { %v456_v33 = vsub.f32 1.0, %v455_v24 }
 0x227   :  { %v437_v25 = vmul.f32 %v1550_v16, %v436_v21 }
 0x228   :  { %v457_v42 = vmul.f32 %v1552_v17, %v456_v33 }
 0x229   :  { %v438_v32 = vadd.f32 %v1550_v16, %v437_v25 }
 0x22a   :  { %v458_v47 = vadd.f32 %v1552_v17, %v457_v42 }
 0x22b   :  { %v442_v36 = vsel %vm441_vm2, %v1550_v16, %v438_v32 }
 0x22c   :  { %v447_v37 = vsel %vm444_vm3, %v446_v5, %v442_v36  ;;  %v462_v52 = vsel %vm461_vm6, %v1552_v17, %v458_v47 }
 0x22d   :  { %v470_v41 = vmul.f32 %v469_v34, %v447_v37  ;;  %v467_v56 = vsel %vm464_vm7, %v466_v55, %v462_v52 }
 0x22f   :  { %v471_v43 = vadd.f32 %v470_v41, %v428_v38  ;;  %v1456_v38 = vld [vmem:[%s2376_s0 + $0x2c] sm:$0xf] }
 0x230   :  { %v524_v29 = vunpack.c.l.bf16 %v1456_v38 }
 0x231   :  { %1553 = vtanh.f32 %v471_v43 }
 0x237   :  { %v1554_v54 = vpop.eup %1553 }
 0x238   :  { %v473_v50 = vsub.f32 %v2027_v45, %v1554_v54  ;;  %v1455_v45 = vld [vmem:[%s2376_s0 + $0x24] sm:$0xff] }
 0x239   :  { %v522_v1 = vunpack.c.l.bf16 %v1455_v45  ;;  %v523_v13 = vunpack.c.h.bf16 %v1455_v45 }
 0x23a   :  { %v474_v58 = vmul.f32 %v473_v50, %v467_v56 }
 0x23c   :  { %v475_v61 = vadd.f32 %v1554_v54, %v474_v58 }
 0x23e   :  { %1454 = vst [vmem:[%s2377_s5 + $0x10] sm:$0xff] %v475_v61  ;;  %v2067_v62 = vmul.f32 %v475_v61, %v1859_v59 }
 0x240   :  { %v479_v63 = vpack.c.bf16 %v2067_v62, %v2067_v62 }
 0x242   :  { %488 = vmatmul.bf16.vlgmr.msra.gmra.mxu1 %v479_v63  ;;  %501 = vmatmul.bf16.vlgmr.msra.gmra.mxu2 %v479_v63 }
 0x243   :  { %514 = vmatmul.bf16.vlgmr.msra.gmra.mxu3 %v479_v63  ;;  %698 = vmatpush.bf16.msra.mxu1 %v1730_v18 }
 0x244   :  { %768 = vmatpush.bf16.msra.mxu2 %v1686_v3  ;;  %781 = vmatpush.bf16.msra.mxu3 %v1697_v7 }
 0x247   :  { %699 = vmatpush.bf16.msra.mxu1 %v1755_v26 }
 0x248   :  { %769 = vmatpush.bf16.msra.mxu2 %v1706_v10  ;;  %782 = vmatpush.bf16.msra.mxu3 %v1710_v11 }
 0x24b   :  { %700 = vmatpush.bf16.msra.mxu1 %v1783_v35 }
 0x24c   :  { %770 = vmatpush.bf16.msra.mxu2 %v1733_v19  ;;  %783 = vmatpush.bf16.msra.mxu3 %v1743_v22 }
 0x24f   :  { %701 = vmatpush.bf16.msra.mxu1 %v1811_v44 }
 0x250   :  { %771 = vmatpush.bf16.msra.mxu2 %v1767_v30  ;;  %784 = vmatpush.bf16.msra.mxu3 %v1771_v31 }
 0x253   :  { %702 = vmatpush.bf16.msra.mxu1 %v1839_v53 }
 0x254   :  { %772 = vmatpush.bf16.msra.mxu2 %v1795_v39  ;;  %785 = vmatpush.bf16.msra.mxu3 %v1799_v40 }
 0x257   :  { %703 = vmatpush.bf16.msra.mxu1 %v1875_v0 }
 0x258   :  { %773 = vmatpush.bf16.msra.mxu2 %v1823_v48  ;;  %786 = vmatpush.bf16.msra.mxu3 %v1827_v49 }
 0x25b   :  { %704 = vmatpush.bf16.msra.mxu1 %v1897_v9 }
 0x25c   :  { %774 = vmatpush.bf16.msra.mxu2 %v1851_v57  ;;  %787 = vmatpush.bf16.msra.mxu3 %v1863_v60 }
 0x25f   :  { %705 = vmatpush.bf16.msra.mxu1 %v1911_v15 }
 0x260   :  { %775 = vmatpush.bf16.msra.mxu2 %v1890_v6  ;;  %788 = vmatpush.bf16.msra.mxu3 %v1894_v8 }
 0x2bf   :  { %v489_v2 = vpop.f32.mrf.mxu1 }
 0x2c0   :  { %v525_v4 = vadd.f32 %v522_v1, %v489_v2 }
 0x2c2   :  { %v1457_v12 = vmul.f32 -1.442695, %v525_v4 }
 0x2c4   :  { %1555 = vpow2.f32 %v1457_v12 }
 0x2c5   :  { %v502_v14 = vpop.f32.mrf.mxu2 }
 0x2c6   :  { %v545_v16 = vadd.f32 %v523_v13, %v502_v14  ;;  %v515_v17 = vpop.f32.mrf.mxu3 }
 0x2c7   :  { %v491_v20 = vpop.f32.mrf.mxu1  ;;  %v565_v55 = vadd.f32 %v1976_v46, %v515_v17 }
 0x2c8   :  { %v1458_v21 = vmul.f32 -1.442695, %v545_v16 }
 0x2ca   :  { %v1556_v23 = vpop.eup %1555  ;;  %1557 = vpow2.f32 %v1458_v21 }
 0x2cb   :  { %v529_v24 = vadd.f32 1.0, %v1556_v23 }
 0x2cd   :  { %1559 = vrcp.f32 %v529_v24  ;;  %v504_v25 = vpop.f32.mrf.mxu2  ;;  %v541_v36 = vand.u32 2147483648, %v529_v24  ;;  %v539_v41 = vand.u32 2147483647, %v529_v24  ;;  %vm535_vm9 = vweird.f32 %v529_v24 }
 0x2ce   :  { %v517_v27 = vpop.f32.mrf.mxu3 }
 0x2cf   :  { %v542_v51 = vor.u32 1.1754944e-38, %v541_v36  ;;  %vm540_vm11 = vcmp.eq.f32.partialorder %v539_v41, 8.507059e+37 }
 0x2d0   :  { %v1558_v28 = vpop.eup %1557 }
 0x2d1   :  { %v549_v32 = vadd.f32 1.0, %v1558_v28 }
 0x2d3   :  { %v1560_v5 = vpop.eup %1559  ;;  %1561 = vrcp.f32 %v549_v32  ;;  %v561_v45 = vand.u32 2147483648, %v549_v32  ;;  %vm555_vm13 = vweird.f32 %v549_v32  ;;  %v559_v1 = vand.u32 2147483647, %v549_v32 }
 0x2d4   :  { %v531_v33 = vmul.f32 %v1560_v5, %v529_v24  ;;  %vm536_vm8 = vweird.f32 %v1560_v5 }
 0x2d5   :  { %vm537_vm10 = vmor %vm535_vm9, %vm536_vm8  ;;  %v562_v12 = vor.u32 1.1754944e-38, %v561_v45  ;;  %vm560_vm15 = vcmp.eq.f32.partialorder %v559_v1, 8.507059e+37 }
 0x2d6   :  { %v532_v34 = vsub.f32 1.0, %v531_v33 }
 0x2d8   :  { %v533_v37 = vmul.f32 %v1560_v5, %v532_v34 }
 0x2d9   :  { %v1562_v42 = vpop.eup %1561 }
 0x2da   :  { %v551_v43 = vmul.f32 %v1562_v42, %v549_v32  ;;  %v534_v47 = vadd.f32 %v1560_v5, %v533_v37  ;;  %vm556_vm12 = vweird.f32 %v1562_v42 }
 0x2db   :  { %vm557_vm14 = vmor %vm555_vm13, %vm556_vm12 }
 0x2dc   :  { %v552_v52 = vsub.f32 1.0, %v551_v43  ;;  %v538_v54 = vsel %vm537_vm10, %v1560_v5, %v534_v47 }
 0x2dd   :  { %v543_v50 = vsel %vm540_vm11, %v542_v51, %v538_v54 }
 0x2de   :  { %v566_v56 = vmul.f32 %v565_v55, %v543_v50  ;;  %v553_v58 = vmul.f32 %v1562_v42, %v552_v52 }
 0x2e0   :  { %v567_v61 = vadd.f32 %v566_v56, %v524_v29  ;;  %v554_v63 = vadd.f32 %v1562_v42, %v553_v58 }
 0x2e2   :  { %1563 = vtanh.f32 %v567_v61  ;;  %v558_v2 = vsel %vm557_vm14, %v1562_v42, %v554_v63  ;;  %v1461_v61 = vld [vmem:[%s2376_s0 + $0x38] sm:$0xf] }
 0x2e3   :  { %v563_v14 = vsel %vm560_vm15, %v562_v12, %v558_v2  ;;  %v620_v2 = vunpack.c.l.bf16 %v1461_v61 }
 0x2e8   :  { %v1564_v4 = vpop.eup %1563 }
 0x2e9   :  { %v569_v13 = vsub.f32 %v2067_v62, %v1564_v4  ;;  %v1460_v62 = vld [vmem:[%s2376_s0 + $0x30] sm:$0xff] }
 0x2ea   :  { %v618_v23 = vunpack.c.l.bf16 %v1460_v62  ;;  %v619_v24 = vunpack.c.h.bf16 %v1460_v62 }
 0x2eb   :  { %v570_v16 = vmul.f32 %v569_v13, %v563_v14 }
 0x2ed   :  { %v571_v17 = vadd.f32 %v1564_v4, %v570_v16 }
 0x2ef   :  { %1459 = vst [vmem:[%s2377_s5 + $0x18] sm:$0xff] %v571_v17  ;;  %v2107_v20 = vmul.f32 %v571_v17, %v1859_v59 }
 0x2f1   :  { %v575_v21 = vpack.c.bf16 %v2107_v20, %v2107_v20 }
 0x2f3   :  { %584 = vmatmul.bf16.vlgmr.msrb.gmra.mxu0 %v575_v21  ;;  %597 = vmatmul.bf16.vlgmr.msrb.gmra.mxu1 %v575_v21 }
 0x2f4   :  { %610 = vmatmul.bf16.vlgmr.msrb.gmra.mxu2 %v575_v21  ;;  %794 = vmatpush.bf16.msrb.mxu0 %v1730_v18 }
 0x2f5   :  { %864 = vmatpush.bf16.msrb.mxu1 %v1686_v3  ;;  %877 = vmatpush.bf16.msrb.mxu2 %v1697_v7 }
 0x2f8   :  { %795 = vmatpush.bf16.msrb.mxu0 %v1755_v26 }
 0x2f9   :  { %865 = vmatpush.bf16.msrb.mxu1 %v1706_v10  ;;  %878 = vmatpush.bf16.msrb.mxu2 %v1710_v11 }
 0x2fc   :  { %796 = vmatpush.bf16.msrb.mxu0 %v1783_v35 }
 0x2fd   :  { %866 = vmatpush.bf16.msrb.mxu1 %v1733_v19  ;;  %879 = vmatpush.bf16.msrb.mxu2 %v1743_v22 }
 0x300   :  { %797 = vmatpush.bf16.msrb.mxu0 %v1811_v44 }
 0x301   :  { %867 = vmatpush.bf16.msrb.mxu1 %v1767_v30  ;;  %880 = vmatpush.bf16.msrb.mxu2 %v1771_v31 }
 0x304   :  { %798 = vmatpush.bf16.msrb.mxu0 %v1839_v53 }
 0x305   :  { %868 = vmatpush.bf16.msrb.mxu1 %v1795_v39  ;;  %881 = vmatpush.bf16.msrb.mxu2 %v1799_v40 }
 0x308   :  { %799 = vmatpush.bf16.msrb.mxu0 %v1875_v0 }
 0x309   :  { %869 = vmatpush.bf16.msrb.mxu1 %v1823_v48  ;;  %882 = vmatpush.bf16.msrb.mxu2 %v1827_v49 }
 0x30c   :  { %800 = vmatpush.bf16.msrb.mxu0 %v1897_v9 }
 0x30d   :  { %870 = vmatpush.bf16.msrb.mxu1 %v1851_v57  ;;  %883 = vmatpush.bf16.msrb.mxu2 %v1863_v60 }
 0x310   :  { %801 = vmatpush.bf16.msrb.mxu0 %v1911_v15 }
 0x311   :  { %871 = vmatpush.bf16.msrb.mxu1 %v1890_v6  ;;  %884 = vmatpush.bf16.msrb.mxu2 %v1894_v8 }
 0x370   :  { %v585_v25 = vpop.f32.mrf.mxu0  ;;  %v598_v27 = vpop.f32.mrf.mxu1 }
 0x371   :  { %v621_v28 = vadd.f32 %v618_v23, %v585_v25  ;;  %v641_v32 = vadd.f32 %v619_v24, %v598_v27 }
 0x373   :  { %v1462_v5 = vmul.f32 -1.442695, %v621_v28  ;;  %v1463_v33 = vmul.f32 -1.442695, %v641_v32 }
 0x375   :  { %1565 = vpow2.f32 %v1462_v5 }
 0x376   :  { %1567 = vpow2.f32 %v1463_v33 }
 0x377   :  { %v611_v34 = vpop.f32.mrf.mxu2 }
 0x378   :  { %v587_v36 = vpop.f32.mrf.mxu0  ;;  %v600_v38 = vpop.f32.mrf.mxu1  ;;  %v661_v12 = vadd.f32 %v1976_v46, %v611_v34 }
 0x37b   :  { %v1566_v37 = vpop.eup %1565 }
 0x37c   :  { %v1568_v41 = vpop.eup %1567  ;;  %v625_v42 = vadd.f32 1.0, %v1566_v37 }
 0x37d   :  { %v645_v43 = vadd.f32 1.0, %v1568_v41 }
 0x37e   :  { %1569 = vrcp.f32 %v625_v42  ;;  %v637_v50 = vand.u32 2147483648, %v625_v42  ;;  %v635_v58 = vand.u32 2147483647, %v625_v42  ;;  %vm631_vm1 = vweird.f32 %v625_v42 }
 0x37f   :  { %1571 = vrcp.f32 %v645_v43  ;;  %v613_v47 = vpop.f32.mrf.mxu2  ;;  %v657_v62 = vand.u32 2147483648, %v645_v43  ;;  %vm651_vm5 = vweird.f32 %v645_v43  ;;  %v655_v23 = vand.u32 2147483647, %v645_v43 }
 0x380   :  { %v638_v1 = vor.u32 1.1754944e-38, %v637_v50  ;;  %vm636_vm3 = vcmp.eq.f32.partialorder %v635_v58, 8.507059e+37 }
 0x381   :  { %v658_v27 = vor.u32 1.1754944e-38, %v657_v62  ;;  %vm656_vm7 = vcmp.eq.f32.partialorder %v655_v23, 8.507059e+37 }
 0x384   :  { %v1570_v29 = vpop.eup %1569 }
 0x385   :  { %v1572_v51 = vpop.eup %1571  ;;  %v627_v52 = vmul.f32 %v1570_v29, %v625_v42  ;;  %vm632_vm0 = vweird.f32 %v1570_v29 }
 0x386   :  { %v647_v55 = vmul.f32 %v1572_v51, %v645_v43  ;;  %vm633_vm2 = vmor %vm631_vm1, %vm632_vm0  ;;  %vm652_vm4 = vweird.f32 %v1572_v51 }
 0x387   :  { %v628_v54 = vsub.f32 1.0, %v627_v52  ;;  %vm653_vm6 = vmor %vm651_vm5, %vm652_vm4 }
 0x388   :  { %v648_v45 = vsub.f32 1.0, %v647_v55 }
 0x389   :  { %v629_v56 = vmul.f32 %v1570_v29, %v628_v54 }
 0x38a   :  { %v649_v16 = vmul.f32 %v1572_v51, %v648_v45 }
 0x38b   :  { %v630_v63 = vadd.f32 %v1570_v29, %v629_v56 }
 0x38c   :  { %v650_v21 = vadd.f32 %v1572_v51, %v649_v16  ;;  %v1466_v16 = vld [vmem:[%s2376_s0 + $0x44] sm:$0xf] }
 0x38d   :  { %v634_v4 = vsel %vm633_vm2, %v1570_v29, %v630_v63 }
 0x38e   :  { %v639_v13 = vsel %vm636_vm3, %v638_v1, %v634_v4  ;;  %v654_v24 = vsel %vm653_vm6, %v1572_v51, %v650_v21 }
 0x38f   :  { %v662_v14 = vmul.f32 %v661_v12, %v639_v13  ;;  %v659_v32 = vsel %vm656_vm7, %v658_v27, %v654_v24 }
 0x391   :  { %v663_v17 = vadd.f32 %v662_v14, %v620_v2 }
 0x393   :  { %1573 = vtanh.f32 %v663_v17 }
 0x399   :  { %v1574_v25 = vpop.eup %1573 }
 0x39a   :  { %v665_v28 = vsub.f32 %v2107_v20, %v1574_v25 }
 0x39c   :  { %v666_v5 = vmul.f32 %v665_v28, %v659_v32 }
 0x39e   :  { %v667_v33 = vadd.f32 %v1574_v25, %v666_v5  ;;  %v716_v25 = vunpack.c.l.bf16 %v1466_v16 }
 0x3a0   :  { %1464 = vst [vmem:[%s2377_s5 + $0x20] sm:$0xff] %v667_v33  ;;  %v2147_v34 = vmul.f32 %v667_v33, %v1859_v59  ;;  %v1465_v59 = vld [vmem:[%s2376_s0 + $0x3c] sm:$0xff] }
 0x3a1   :  { %v715_v20 = vunpack.c.h.bf16 %v1465_v59  ;;  %v714_v42 = vunpack.c.l.bf16 %v1465_v59 }
 0x3a2   :  { %v671_v36 = vpack.c.bf16 %v2147_v34, %v2147_v34 }
 0x3a4   :  { %680 = vmatmul.bf16.vlgmr.msrb.gmra.mxu3 %v671_v36  ;;  %693 = vmatmul.bf16.vlgmr.msra.gmra.mxu0 %v671_v36 }
 0x3a5   :  { %706 = vmatmul.bf16.vlgmr.msra.gmra.mxu1 %v671_v36  ;;  %890 = vmatpush.bf16.msrb.mxu3 %v1730_v18 }
 0x3a6   :  { %960 = vmatpush.bf16.msra.mxu0 %v1686_v3  ;;  %973 = vmatpush.bf16.msra.mxu1 %v1697_v7 }
 0x3a9   :  { %891 = vmatpush.bf16.msrb.mxu3 %v1755_v26 }
 0x3aa   :  { %961 = vmatpush.bf16.msra.mxu0 %v1706_v10  ;;  %974 = vmatpush.bf16.msra.mxu1 %v1710_v11 }
 0x3ad   :  { %892 = vmatpush.bf16.msrb.mxu3 %v1783_v35 }
 0x3ae   :  { %962 = vmatpush.bf16.msra.mxu0 %v1733_v19  ;;  %975 = vmatpush.bf16.msra.mxu1 %v1743_v22 }
 0x3b1   :  { %893 = vmatpush.bf16.msrb.mxu3 %v1811_v44 }
 0x3b2   :  { %963 = vmatpush.bf16.msra.mxu0 %v1767_v30  ;;  %976 = vmatpush.bf16.msra.mxu1 %v1771_v31 }
 0x3b5   :  { %894 = vmatpush.bf16.msrb.mxu3 %v1839_v53 }
 0x3b6   :  { %964 = vmatpush.bf16.msra.mxu0 %v1795_v39  ;;  %977 = vmatpush.bf16.msra.mxu1 %v1799_v40 }
 0x3b9   :  { %895 = vmatpush.bf16.msrb.mxu3 %v1875_v0 }
 0x3ba   :  { %965 = vmatpush.bf16.msra.mxu0 %v1823_v48  ;;  %978 = vmatpush.bf16.msra.mxu1 %v1827_v49 }
 0x3bd   :  { %896 = vmatpush.bf16.msrb.mxu3 %v1897_v9 }
 0x3be   :  { %966 = vmatpush.bf16.msra.mxu0 %v1851_v57  ;;  %979 = vmatpush.bf16.msra.mxu1 %v1863_v60 }
 0x3c1   :  { %897 = vmatpush.bf16.msrb.mxu3 %v1911_v15 }
 0x3c2   :  { %967 = vmatpush.bf16.msra.mxu0 %v1890_v6  ;;  %980 = vmatpush.bf16.msra.mxu1 %v1894_v8 }
 0x421   :  { %v694_v38 = vpop.f32.mrf.mxu0 }
 0x422   :  { %v737_v37 = vadd.f32 %v715_v20, %v694_v38  ;;  %v707_v41 = vpop.f32.mrf.mxu1 }
 0x423   :  { %v757_v23 = vadd.f32 %v1976_v46, %v707_v41 }
 0x424   :  { %v1468_v43 = vmul.f32 -1.442695, %v737_v37 }
 0x426   :  { %1575 = vpow2.f32 %v1468_v43 }
 0x427   :  { %v681_v47 = vpop.f32.mrf.mxu3 }
 0x428   :  { %v717_v29 = vadd.f32 %v714_v42, %v681_v47  ;;  %v2189_v47 = vld [vmem:[%s2374_s2] sm:$0xff] }
 0x429   :  { %v696_v51 = vpop.f32.mrf.mxu0 }
 0x42a   :  { %v1467_v52 = vmul.f32 -1.442695, %v717_v29  ;;  %v709_v54 = vpop.f32.mrf.mxu1 }
 0x42c   :  { %1577 = vpow2.f32 %v1467_v52  ;;  %v1576_v55 = vpop.eup %1575 }
 0x42d   :  { %v741_v58 = vadd.f32 1.0, %v1576_v55 }
 0x42f   :  { %v683_v50 = vpop.f32.mrf.mxu3  ;;  %v753_v36 = vand.u32 2147483648, %v741_v58  ;;  %vm747_vm13 = vweird.f32 %v741_v58  ;;  %v751_v59 = vand.u32 2147483647, %v741_v58 }
 0x431   :  { %v754_v37 = vor.u32 1.1754944e-38, %v753_v36  ;;  %vm752_vm15 = vcmp.eq.f32.partialorder %v751_v59, 8.507059e+37  ;;  %v2229_v59 = vld [vmem:[%s2375_s4] ss:$0 sm:$0xff] }
 0x432   :  { %v1578_v56 = vpop.eup %1577 }
 0x433   :  { %v721_v61 = vadd.f32 1.0, %v1578_v56 }
 0x435   :  { %1579 = vrcp.f32 %v721_v61  ;;  %v733_v12 = vand.u32 2147483648, %v721_v61  ;;  %v731_v14 = vand.u32 2147483647, %v721_v61  ;;  %vm727_vm9 = vweird.f32 %v721_v61 }
 0x436   :  { %1581 = vrcp.f32 %v741_v58 }
 0x437   :  { %v734_v62 = vor.u32 1.1754944e-38, %v733_v12  ;;  %vm732_vm11 = vcmp.eq.f32.partialorder %v731_v14, 8.507059e+37 }
 0x43b   :  { %v1580_v63 = vpop.eup %1579 }
 0x43c   :  { %v1582_v45 = vpop.eup %1581  ;;  %v723_v1 = vmul.f32 %v1580_v63, %v721_v61  ;;  %vm728_vm8 = vweird.f32 %v1580_v63 }
 0x43d   :  { %v743_v4 = vmul.f32 %v1582_v45, %v741_v58  ;;  %vm729_vm10 = vmor %vm727_vm9, %vm728_vm8  ;;  %vm748_vm12 = vweird.f32 %v1582_v45 }
 0x43e   :  { %v724_v2 = vsub.f32 1.0, %v723_v1  ;;  %vm749_vm14 = vmor %vm747_vm13, %vm748_vm12 }
 0x43f   :  { %v744_v21 = vsub.f32 1.0, %v743_v4 }
 0x440   :  { %v725_v13 = vmul.f32 %v1580_v63, %v724_v2 }
 0x441   :  { %v745_v32 = vmul.f32 %v1582_v45, %v744_v21 }
 0x442   :  { %v726_v17 = vadd.f32 %v1580_v63, %v725_v13 }
 0x443   :  { %v746_v33 = vadd.f32 %v1582_v45, %v745_v32  ;;  %v1471_v32 = vld [vmem:[%s2376_s0 + $0x50] sm:$0xf] }
 0x444   :  { %v730_v24 = vsel %vm729_vm10, %v1580_v63, %v726_v17 }
 0x445   :  { %v735_v27 = vsel %vm732_vm11, %v734_v62, %v730_v24  ;;  %v750_v20 = vsel %vm749_vm14, %v1582_v45, %v746_v33 }
 0x446   :  { %v758_v28 = vmul.f32 %v757_v23, %v735_v27  ;;  %v755_v41 = vsel %vm752_vm15, %v754_v37, %v750_v20  ;;  %v812_v37 = vunpack.c.l.bf16 %v1471_v32 }
 0x448   :  { %v759_v5 = vadd.f32 %v758_v28, %v716_v25 }
 0x44a   :  { %1583 = vtanh.f32 %v759_v5 }
 0x450   :  { %v1584_v38 = vpop.eup %1583 }
 0x451   :  { %v761_v46 = vsub.f32 %v2147_v34, %v1584_v38  ;;  %v1470_v34 = vld [vmem:[%s2376_s0 + $0x48] sm:$0xff] }
 0x452   :  { %v810_v54 = vunpack.c.l.bf16 %v1470_v34  ;;  %v811_v55 = vunpack.c.h.bf16 %v1470_v34 }
 0x453   :  { %v762_v42 = vmul.f32 %v761_v46, %v755_v41 }
 0x455   :  { %v763_v43 = vadd.f32 %v1584_v38, %v762_v42 }
 0x457   :  { %1469 = vst [vmem:[%s2377_s5 + $0x28] sm:$0xff] %v763_v43  ;;  %v2192_v29 = vmul.f32 %v2189_v47, %v763_v43 }
 0x459   :  { %v767_v51 = vpack.c.bf16 %v2192_v29, %v2192_v29 }
 0x45b   :  { %776 = vmatmul.bf16.vlgmr.msra.gmra.mxu2 %v767_v51  ;;  %789 = vmatmul.bf16.vlgmr.msra.gmra.mxu3 %v767_v51 }
 0x45c   :  { %802 = vmatmul.bf16.vlgmr.msrb.gmra.mxu0 %v767_v51  ;;  %986 = vmatpush.bf16.msra.mxu2 %v1730_v18 }
 0x45d   :  { %1056 = vmatpush.bf16.msra.mxu3 %v1686_v3  ;;  %1069 = vmatpush.bf16.msrb.mxu0 %v1697_v7 }
 0x460   :  { %987 = vmatpush.bf16.msra.mxu2 %v1755_v26 }
 0x461   :  { %1057 = vmatpush.bf16.msra.mxu3 %v1706_v10  ;;  %1070 = vmatpush.bf16.msrb.mxu0 %v1710_v11 }
 0x464   :  { %988 = vmatpush.bf16.msra.mxu2 %v1783_v35 }
 0x465   :  { %1058 = vmatpush.bf16.msra.mxu3 %v1733_v19  ;;  %1071 = vmatpush.bf16.msrb.mxu0 %v1743_v22 }
 0x468   :  { %989 = vmatpush.bf16.msra.mxu2 %v1811_v44 }
 0x469   :  { %1059 = vmatpush.bf16.msra.mxu3 %v1767_v30  ;;  %1072 = vmatpush.bf16.msrb.mxu0 %v1771_v31 }
 0x46c   :  { %990 = vmatpush.bf16.msra.mxu2 %v1839_v53 }
 0x46d   :  { %1060 = vmatpush.bf16.msra.mxu3 %v1795_v39  ;;  %1073 = vmatpush.bf16.msrb.mxu0 %v1799_v40 }
 0x470   :  { %991 = vmatpush.bf16.msra.mxu2 %v1875_v0 }
 0x471   :  { %1061 = vmatpush.bf16.msra.mxu3 %v1823_v48  ;;  %1074 = vmatpush.bf16.msrb.mxu0 %v1827_v49 }
 0x474   :  { %992 = vmatpush.bf16.msra.mxu2 %v1897_v9 }
 0x475   :  { %1062 = vmatpush.bf16.msra.mxu3 %v1851_v57  ;;  %1075 = vmatpush.bf16.msrb.mxu0 %v1863_v60 }
 0x478   :  { %993 = vmatpush.bf16.msra.mxu2 %v1911_v15 }
 0x479   :  { %1063 = vmatpush.bf16.msra.mxu3 %v1890_v6  ;;  %1076 = vmatpush.bf16.msrb.mxu0 %v1894_v8 }
 0x4d9   :  { %v803_v52 = vpop.f32.mrf.mxu0 }
 0x4da   :  { %v853_v20 = vadd.f32 %v2229_v59, %v803_v52 }
 0x4de   :  { %v777_v50 = vpop.f32.mrf.mxu2  ;;  %v790_v56 = vpop.f32.mrf.mxu3 }
 0x4df   :  { %v813_v58 = vadd.f32 %v810_v54, %v777_v50  ;;  %v833_v61 = vadd.f32 %v811_v55, %v790_v56 }
 0x4e1   :  { %v1472_v63 = vmul.f32 -1.442695, %v813_v58  ;;  %v1473_v45 = vmul.f32 -1.442695, %v833_v61  ;;  %v805_v1 = vpop.f32.mrf.mxu0 }
 0x4e3   :  { %1585 = vpow2.f32 %v1472_v63 }
 0x4e4   :  { %1587 = vpow2.f32 %v1473_v45 }
 0x4e6   :  { %v779_v2 = vpop.f32.mrf.mxu2  ;;  %v792_v4 = vpop.f32.mrf.mxu3 }
 0x4e9   :  { %v1586_v12 = vpop.eup %1585 }
 0x4ea   :  { %v1588_v13 = vpop.eup %1587  ;;  %v817_v14 = vadd.f32 1.0, %v1586_v12 }
 0x4eb   :  { %v837_v16 = vadd.f32 1.0, %v1588_v13 }
 0x4ec   :  { %1589 = vrcp.f32 %v817_v14  ;;  %v829_v24 = vand.u32 2147483648, %v817_v14  ;;  %v827_v28 = vand.u32 2147483647, %v817_v14  ;;  %vm823_vm1 = vweird.f32 %v817_v14 }
 0x4ed   :  { %1591 = vrcp.f32 %v837_v16  ;;  %v849_v34 = vand.u32 2147483648, %v837_v16  ;;  %vm843_vm5 = vweird.f32 %v837_v16  ;;  %v847_v54 = vand.u32 2147483647, %v837_v16 }
 0x4ee   :  { %v830_v33 = vor.u32 1.1754944e-38, %v829_v24  ;;  %vm828_vm3 = vcmp.eq.f32.partialorder %v827_v28, 8.507059e+37 }
 0x4ef   :  { %v850_v56 = vor.u32 1.1754944e-38, %v849_v34  ;;  %vm848_vm7 = vcmp.eq.f32.partialorder %v847_v54, 8.507059e+37 }
 0x4f2   :  { %v1590_v17 = vpop.eup %1589 }
 0x4f3   :  { %v1592_v21 = vpop.eup %1591  ;;  %v819_v62 = vmul.f32 %v1590_v17, %v817_v14  ;;  %vm824_vm0 = vweird.f32 %v1590_v17 }
 0x4f4   :  { %v839_v25 = vmul.f32 %v1592_v21, %v837_v16  ;;  %vm825_vm2 = vmor %vm823_vm1, %vm824_vm0  ;;  %vm844_vm4 = vweird.f32 %v1592_v21 }
 0x4f5   :  { %v820_v23 = vsub.f32 1.0, %v819_v62  ;;  %vm845_vm6 = vmor %vm843_vm5, %vm844_vm4 }
 0x4f6   :  { %v840_v36 = vsub.f32 1.0, %v839_v25 }
 0x4f7   :  { %v821_v27 = vmul.f32 %v1590_v17, %v820_v23 }
 0x4f8   :  { %v841_v42 = vmul.f32 %v1592_v21, %v840_v36 }
 0x4f9   :  { %v822_v5 = vadd.f32 %v1590_v17, %v821_v27 }
 0x4fa   :  { %v842_v51 = vadd.f32 %v1592_v21, %v841_v42 }
 0x4fb   :  { %v826_v38 = vsel %vm825_vm2, %v1590_v17, %v822_v5 }
 0x4fc   :  { %v831_v46 = vsel %vm828_vm3, %v830_v33, %v826_v38  ;;  %v846_v55 = vsel %vm845_vm6, %v1592_v21, %v842_v51 }
 0x4fd   :  { %v854_v41 = vmul.f32 %v853_v20, %v831_v46  ;;  %v851_v58 = vsel %vm848_vm7, %v850_v56, %v846_v55 }
 0x4ff   :  { %v855_v43 = vadd.f32 %v854_v41, %v812_v37  ;;  %v1476_v37 = vld [vmem:[%s2376_s0 + $0x5c] sm:$0xf] }
 0x500   :  { %v908_v34 = vunpack.c.l.bf16 %v1476_v37 }
 0x501   :  { %1593 = vtanh.f32 %v855_v43 }
 0x507   :  { %v1594_v50 = vpop.eup %1593 }
 0x508   :  { %v857_v52 = vsub.f32 %v2192_v29, %v1594_v50  ;;  %v1475_v29 = vld [vmem:[%s2376_s0 + $0x54] sm:$0xff] }
 0x509   :  { %v906_v2 = vunpack.c.l.bf16 %v1475_v29  ;;  %v907_v14 = vunpack.c.h.bf16 %v1475_v29 }
 0x50a   :  { %v858_v61 = vmul.f32 %v857_v52, %v851_v58 }
 0x50c   :  { %v859_v63 = vadd.f32 %v1594_v50, %v858_v61 }
 0x50e   :  { %1474 = vst [vmem:[%s2377_s5 + $0x30] sm:$0xff] %v859_v63  ;;  %v2237_v45 = vmul.f32 %v2189_v47, %v859_v63 }
 0x510   :  { %v863_v1 = vpack.c.bf16 %v2237_v45, %v2237_v45 }
 0x512   :  { %872 = vmatmul.bf16.vlgmr.msrb.gmra.mxu1 %v863_v1  ;;  %885 = vmatmul.bf16.vlgmr.msrb.gmra.mxu2 %v863_v1 }
 0x513   :  { %898 = vmatmul.bf16.vlgmr.msrb.gmra.mxu3 %v863_v1  ;;  %1082 = vmatpush.bf16.msrb.mxu1 %v1730_v18 }
 0x514   :  { %1152 = vmatpush.bf16.msrb.mxu2 %v1686_v3  ;;  %1165 = vmatpush.bf16.msrb.mxu3 %v1697_v7 }
 0x517   :  { %1083 = vmatpush.bf16.msrb.mxu1 %v1755_v26 }
 0x518   :  { %1153 = vmatpush.bf16.msrb.mxu2 %v1706_v10  ;;  %1166 = vmatpush.bf16.msrb.mxu3 %v1710_v11 }
 0x51b   :  { %1084 = vmatpush.bf16.msrb.mxu1 %v1783_v35 }
 0x51c   :  { %1154 = vmatpush.bf16.msrb.mxu2 %v1733_v19  ;;  %1167 = vmatpush.bf16.msrb.mxu3 %v1743_v22 }
 0x51f   :  { %1085 = vmatpush.bf16.msrb.mxu1 %v1811_v44 }
 0x520   :  { %1155 = vmatpush.bf16.msrb.mxu2 %v1767_v30  ;;  %1168 = vmatpush.bf16.msrb.mxu3 %v1771_v31 }
 0x523   :  { %1086 = vmatpush.bf16.msrb.mxu1 %v1839_v53 }
 0x524   :  { %1156 = vmatpush.bf16.msrb.mxu2 %v1795_v39  ;;  %1169 = vmatpush.bf16.msrb.mxu3 %v1799_v40 }
 0x527   :  { %1087 = vmatpush.bf16.msrb.mxu1 %v1875_v0 }
 0x528   :  { %1157 = vmatpush.bf16.msrb.mxu2 %v1823_v48  ;;  %1170 = vmatpush.bf16.msrb.mxu3 %v1827_v49 }
 0x52b   :  { %1088 = vmatpush.bf16.msrb.mxu1 %v1897_v9 }
 0x52c   :  { %1158 = vmatpush.bf16.msrb.mxu2 %v1851_v57  ;;  %1171 = vmatpush.bf16.msrb.mxu3 %v1863_v60 }
 0x52f   :  { %1089 = vmatpush.bf16.msrb.mxu1 %v1911_v15 }
 0x530   :  { %1159 = vmatpush.bf16.msrb.mxu2 %v1890_v6  ;;  %1172 = vmatpush.bf16.msrb.mxu3 %v1894_v8 }
 0x58f   :  { %v873_v4 = vpop.f32.mrf.mxu1 }
 0x590   :  { %v909_v12 = vadd.f32 %v906_v2, %v873_v4 }
 0x592   :  { %v1477_v13 = vmul.f32 -1.442695, %v909_v12 }
 0x594   :  { %1595 = vpow2.f32 %v1477_v13 }
 0x595   :  { %v886_v16 = vpop.f32.mrf.mxu2 }
 0x596   :  { %v929_v17 = vadd.f32 %v907_v14, %v886_v16  ;;  %v899_v21 = vpop.f32.mrf.mxu3 }
 0x597   :  { %v875_v62 = vpop.f32.mrf.mxu1  ;;  %v949_v56 = vadd.f32 %v2229_v59, %v899_v21 }
 0x598   :  { %v1478_v23 = vmul.f32 -1.442695, %v929_v17 }
 0x59a   :  { %v1596_v24 = vpop.eup %1595  ;;  %1597 = vpow2.f32 %v1478_v23 }
 0x59b   :  { %v913_v25 = vadd.f32 1.0, %v1596_v24 }
 0x59d   :  { %1599 = vrcp.f32 %v913_v25  ;;  %v888_v27 = vpop.f32.mrf.mxu2  ;;  %v925_v38 = vand.u32 2147483648, %v913_v25  ;;  %v923_v41 = vand.u32 2147483647, %v913_v25  ;;  %vm919_vm9 = vweird.f32 %v913_v25 }
 0x59e   :  { %v901_v28 = vpop.f32.mrf.mxu3 }
 0x59f   :  { %v926_v54 = vor.u32 1.1754944e-38, %v925_v38  ;;  %vm924_vm11 = vcmp.eq.f32.partialorder %v923_v41, 8.507059e+37 }
 0x5a0   :  { %v1598_v32 = vpop.eup %1597 }
 0x5a1   :  { %v933_v5 = vadd.f32 1.0, %v1598_v32 }
 0x5a3   :  { %v1600_v33 = vpop.eup %1599  ;;  %1601 = vrcp.f32 %v933_v5  ;;  %v945_v29 = vand.u32 2147483648, %v933_v5  ;;  %vm939_vm13 = vweird.f32 %v933_v5  ;;  %v943_v2 = vand.u32 2147483647, %v933_v5 }
 0x5a4   :  { %v915_v36 = vmul.f32 %v1600_v33, %v913_v25  ;;  %vm920_vm8 = vweird.f32 %v1600_v33 }
 0x5a5   :  { %vm921_vm10 = vmor %vm919_vm9, %vm920_vm8  ;;  %v946_v13 = vor.u32 1.1754944e-38, %v945_v29  ;;  %vm944_vm15 = vcmp.eq.f32.partialorder %v943_v2, 8.507059e+37 }
 0x5a6   :  { %v916_v20 = vsub.f32 1.0, %v915_v36 }
 0x5a8   :  { %v917_v46 = vmul.f32 %v1600_v33, %v916_v20  ;;  %v1481_v20 = vld [vmem:[%s2376_s0 + $0x68] sm:$0xf] }
 0x5a9   :  { %v1602_v42 = vpop.eup %1601  ;;  %v1004_v41 = vunpack.c.l.bf16 %v1481_v20 }
 0x5aa   :  { %v935_v43 = vmul.f32 %v1602_v42, %v933_v5  ;;  %v918_v51 = vadd.f32 %v1600_v33, %v917_v46  ;;  %vm940_vm12 = vweird.f32 %v1602_v42 }
 0x5ab   :  { %vm941_vm14 = vmor %vm939_vm13, %vm940_vm12 }
 0x5ac   :  { %v936_v55 = vsub.f32 1.0, %v935_v43  ;;  %v922_v50 = vsel %vm921_vm10, %v1600_v33, %v918_v51 }
 0x5ad   :  { %v927_v52 = vsel %vm924_vm11, %v926_v54, %v922_v50 }
 0x5ae   :  { %v950_v58 = vmul.f32 %v949_v56, %v927_v52  ;;  %v937_v61 = vmul.f32 %v1602_v42, %v936_v55 }
 0x5b0   :  { %v951_v63 = vadd.f32 %v950_v58, %v908_v34  ;;  %v938_v1 = vadd.f32 %v1602_v42, %v937_v61 }
 0x5b2   :  { %1603 = vtanh.f32 %v951_v63  ;;  %v942_v4 = vsel %vm941_vm14, %v1602_v42, %v938_v1 }
 0x5b3   :  { %v947_v16 = vsel %vm944_vm15, %v946_v13, %v942_v4 }
 0x5b8   :  { %v1604_v12 = vpop.eup %1603 }
 0x5b9   :  { %v953_v14 = vsub.f32 %v2237_v45, %v1604_v12 }
 0x5bb   :  { %v954_v17 = vmul.f32 %v953_v14, %v947_v16  ;;  %v1485_v14 = vld [vmem:[%s2376_s0 + $0x6c] sm:$0xff] }
 0x5bc   :  { %v1099_v16 = vunpack.c.h.bf16 %v1485_v14 }
 0x5bd   :  { %v955_v21 = vadd.f32 %v1604_v12, %v954_v17 }
 0x5bf   :  { %1479 = vst [vmem:[%s2377_s5 + $0x38] sm:$0xff] %v955_v21  ;;  %v2277_v62 = vmul.f32 %v2189_v47, %v955_v21  ;;  %v1098_v21 = vunpack.c.l.bf16 %v1485_v14 }
 0x5c1   :  { %v959_v23 = vpack.c.bf16 %v2277_v62, %v2277_v62 }
 0x5c3   :  { %968 = vmatmul.bf16.vlgmr.msra.gmra.mxu0 %v959_v23  ;;  %981 = vmatmul.bf16.vlgmr.msra.gmra.mxu1 %v959_v23 }
 0x5c4   :  { %994 = vmatmul.bf16.vlgmr.msra.gmra.mxu2 %v959_v23  ;;  %1178 = vmatpush.bf16.msra.mxu0 %v1730_v18 }
 0x5c5   :  { %1248 = vmatpush.bf16.msra.mxu1 %v1686_v3  ;;  %1261 = vmatpush.bf16.msra.mxu2 %v1697_v7  ;;  %v1480_v3 = vld [vmem:[%s2376_s0 + $0x60] sm:$0xff] }
 0x5c6   :  { %v1002_v7 = vunpack.c.l.bf16 %v1480_v3 }
 0x5c8   :  { %1179 = vmatpush.bf16.msra.mxu0 %v1755_v26 }
 0x5c9   :  { %1249 = vmatpush.bf16.msra.mxu1 %v1706_v10  ;;  %1262 = vmatpush.bf16.msra.mxu2 %v1710_v11  ;;  %v1003_v10 = vunpack.c.h.bf16 %v1480_v3 }
 0x5cc   :  { %1180 = vmatpush.bf16.msra.mxu0 %v1783_v35 }
 0x5cd   :  { %1250 = vmatpush.bf16.msra.mxu1 %v1733_v19  ;;  %1263 = vmatpush.bf16.msra.mxu2 %v1743_v22 }
 0x5d0   :  { %1181 = vmatpush.bf16.msra.mxu0 %v1811_v44 }
 0x5d1   :  { %1251 = vmatpush.bf16.msra.mxu1 %v1767_v30  ;;  %1264 = vmatpush.bf16.msra.mxu2 %v1771_v31 }
 0x5d4   :  { %1182 = vmatpush.bf16.msra.mxu0 %v1839_v53 }
 0x5d5   :  { %1252 = vmatpush.bf16.msra.mxu1 %v1795_v39  ;;  %1265 = vmatpush.bf16.msra.mxu2 %v1799_v40 }
 0x5d8   :  { %1183 = vmatpush.bf16.msra.mxu0 %v1875_v0 }
 0x5d9   :  { %1253 = vmatpush.bf16.msra.mxu1 %v1823_v48  ;;  %1266 = vmatpush.bf16.msra.mxu2 %v1827_v49 }
 0x5dc   :  { %1184 = vmatpush.bf16.msra.mxu0 %v1897_v9 }
 0x5dd   :  { %1254 = vmatpush.bf16.msra.mxu1 %v1851_v57  ;;  %1267 = vmatpush.bf16.msra.mxu2 %v1863_v60 }
 0x5e0   :  { %1185 = vmatpush.bf16.msra.mxu0 %v1911_v15 }
 0x5e1   :  { %1255 = vmatpush.bf16.msra.mxu1 %v1890_v6  ;;  %1268 = vmatpush.bf16.msra.mxu2 %v1894_v8 }
 0x640   :  { %v969_v11 = vpop.f32.mrf.mxu0  ;;  %v982_v19 = vpop.f32.mrf.mxu1 }
 0x641   :  { %v1005_v22 = vadd.f32 %v1002_v7, %v969_v11  ;;  %v1025_v30 = vadd.f32 %v1003_v10, %v982_v19 }
 0x643   :  { %v1482_v31 = vmul.f32 -1.442695, %v1005_v22  ;;  %v1483_v39 = vmul.f32 -1.442695, %v1025_v30 }
 0x645   :  { %1605 = vpow2.f32 %v1482_v31 }
 0x646   :  { %1607 = vpow2.f32 %v1483_v39 }
 0x647   :  { %v995_v40 = vpop.f32.mrf.mxu2 }
 0x648   :  { %v971_v48 = vpop.f32.mrf.mxu0  ;;  %v984_v49 = vpop.f32.mrf.mxu1  ;;  %v1045_v43 = vadd.f32 %v2229_v59, %v995_v40 }
 0x649   :  { %v1486_v49 = vld [vmem:[%s2376_s0 + $0x74] sm:$0xf] }
 0x64b   :  { %v1606_v57 = vpop.eup %1605 }
 0x64c   :  { %v1608_v60 = vpop.eup %1607  ;;  %v1009_v6 = vadd.f32 1.0, %v1606_v57 }
 0x64d   :  { %v1029_v8 = vadd.f32 1.0, %v1608_v60 }
 0x64e   :  { %1609 = vrcp.f32 %v1009_v6  ;;  %v1021_v5 = vand.u32 2147483648, %v1009_v6  ;;  %v1019_v36 = vand.u32 2147483647, %v1009_v6  ;;  %vm1015_vm1 = vweird.f32 %v1009_v6 }
 0x64f   :  { %1611 = vrcp.f32 %v1029_v8  ;;  %v997_v45 = vpop.f32.mrf.mxu2  ;;  %v1041_v56 = vand.u32 2147483648, %v1029_v8  ;;  %vm1035_vm5 = vweird.f32 %v1029_v8  ;;  %v1039_v52 = vand.u32 2147483647, %v1029_v8 }
 0x650   :  { %v1022_v46 = vor.u32 1.1754944e-38, %v1021_v5  ;;  %vm1020_vm3 = vcmp.eq.f32.partialorder %v1019_v36, 8.507059e+37 }
 0x651   :  { %v1042_v63 = vor.u32 1.1754944e-38, %v1041_v56  ;;  %vm1040_vm7 = vcmp.eq.f32.partialorder %v1039_v52, 8.507059e+37 }
 0x654   :  { %v1610_v24 = vpop.eup %1609 }
 0x655   :  { %v1612_v25 = vpop.eup %1611  ;;  %v1011_v27 = vmul.f32 %v1610_v24, %v1009_v6  ;;  %vm1016_vm0 = vweird.f32 %v1610_v24 }
 0x656   :  { %v1031_v32 = vmul.f32 %v1612_v25, %v1029_v8  ;;  %vm1017_vm2 = vmor %vm1015_vm1, %vm1016_vm0  ;;  %vm1036_vm4 = vweird.f32 %v1612_v25 }
 0x657   :  { %v1012_v28 = vsub.f32 1.0, %v1011_v27  ;;  %vm1037_vm6 = vmor %vm1035_vm5, %vm1036_vm4 }
 0x658   :  { %v1032_v37 = vsub.f32 1.0, %v1031_v32 }
 0x659   :  { %v1013_v33 = vmul.f32 %v1610_v24, %v1012_v28 }
 0x65a   :  { %v1033_v54 = vmul.f32 %v1612_v25, %v1032_v37 }
 0x65b   :  { %v1014_v38 = vadd.f32 %v1610_v24, %v1013_v33 }
 0x65c   :  { %v1034_v50 = vadd.f32 %v1612_v25, %v1033_v54  ;;  %v1490_v54 = vld [vmem:[%s2376_s0 + $0x78] sm:$0xff] }
 0x65d   :  { %v1018_v42 = vsel %vm1017_vm2, %v1610_v24, %v1014_v38  ;;  %v1100_v24 = vunpack.c.l.bf16 %v1486_v49  ;;  %v1195_v56 = vunpack.c.h.bf16 %v1490_v54 }
 0x65e   :  { %v1023_v51 = vsel %vm1020_vm3, %v1022_v46, %v1018_v42  ;;  %v1038_v58 = vsel %vm1037_vm6, %v1612_v25, %v1034_v50  ;;  %v1194_v50 = vunpack.c.l.bf16 %v1490_v54 }
 0x65f   :  { %v1046_v34 = vmul.f32 %v1045_v43, %v1023_v51  ;;  %v1043_v29 = vsel %vm1040_vm7, %v1042_v63, %v1038_v58 }
 0x661   :  { %v1047_v55 = vadd.f32 %v1046_v34, %v1004_v41 }
 0x663   :  { %1613 = vtanh.f32 %v1047_v55 }
 0x669   :  { %v1614_v61 = vpop.eup %1613 }
 0x66a   :  { %v1049_v1 = vsub.f32 %v2277_v62, %v1614_v61 }
 0x66c   :  { %v1050_v2 = vmul.f32 %v1049_v1, %v1043_v29 }
 0x66e   :  { %v1051_v4 = vadd.f32 %v1614_v61, %v1050_v2 }
 0x670   :  { %1484 = vst [vmem:[%s2377_s5 + $0x40] sm:$0xff] %v1051_v4  ;;  %v2317_v12 = vmul.f32 %v2189_v47, %v1051_v4 }
 0x672   :  { %v1055_v13 = vpack.c.bf16 %v2317_v12, %v2317_v12 }
 0x674   :  { %1064 = vmatmul.bf16.vlgmr.msra.gmra.mxu3 %v1055_v13  ;;  %1077 = vmatmul.bf16.vlgmr.msrb.gmra.mxu0 %v1055_v13 }
 0x675   :  { %1090 = vmatmul.bf16.vlgmr.msrb.gmra.mxu1 %v1055_v13  ;;  %1274 = vmatpush.bf16.msra.mxu3 %v1730_v18 }
 0x679   :  { %1275 = vmatpush.bf16.msra.mxu3 %v1755_v26 }
 0x67d   :  { %1276 = vmatpush.bf16.msra.mxu3 %v1783_v35 }
 0x681   :  { %1277 = vmatpush.bf16.msra.mxu3 %v1811_v44 }
 0x685   :  { %1278 = vmatpush.bf16.msra.mxu3 %v1839_v53 }
 0x689   :  { %1279 = vmatpush.bf16.msra.mxu3 %v1875_v0 }
 0x68d   :  { %1280 = vmatpush.bf16.msra.mxu3 %v1897_v9 }
 0x691   :  { %1281 = vmatpush.bf16.msra.mxu3 %v1911_v15 }
 0x6f1   :  { %v1078_v18 = vpop.f32.mrf.mxu0 }
 0x6f2   :  { %v1121_v17 = vadd.f32 %v1099_v16, %v1078_v18  ;;  %v1091_v26 = vpop.f32.mrf.mxu1 }
 0x6f3   :  { %v1141_v8 = vadd.f32 %v2229_v59, %v1091_v26 }
 0x6f4   :  { %v1488_v35 = vmul.f32 -1.442695, %v1121_v17 }
 0x6f6   :  { %1615 = vpow2.f32 %v1488_v35 }
 0x6f7   :  { %v1065_v62 = vpop.f32.mrf.mxu3 }
 0x6f8   :  { %v1101_v44 = vadd.f32 %v1098_v21, %v1065_v62 }
 0x6f9   :  { %v1080_v53 = vpop.f32.mrf.mxu0 }
 0x6fa   :  { %v1487_v23 = vmul.f32 -1.442695, %v1101_v44  ;;  %v1093_v0 = vpop.f32.mrf.mxu1 }
 0x6fb   :  { %v1491_v0 = vld [vmem:[%s2376_s0 + $0x80] sm:$0xf] }
 0x6fc   :  { %1617 = vpow2.f32 %v1487_v23  ;;  %v1616_v9 = vpop.eup %1615 }
 0x6fd   :  { %v1125_v7 = vadd.f32 1.0, %v1616_v9 }
 0x6ff   :  { %v1067_v3 = vpop.f32.mrf.mxu3  ;;  %v1137_v33 = vand.u32 2147483648, %v1125_v7  ;;  %vm1131_vm13 = vweird.f32 %v1125_v7  ;;  %v1135_v36 = vand.u32 2147483647, %v1125_v7 }
 0x701   :  { %v1138_v37 = vor.u32 1.1754944e-38, %v1137_v33  ;;  %vm1136_vm15 = vcmp.eq.f32.partialorder %v1135_v36, 8.507059e+37 }
 0x702   :  { %v1618_v15 = vpop.eup %1617 }
 0x703   :  { %v1105_v10 = vadd.f32 1.0, %v1618_v15 }
 0x705   :  { %1619 = vrcp.f32 %v1105_v10  ;;  %v1117_v39 = vand.u32 2147483648, %v1105_v10  ;;  %v1115_v48 = vand.u32 2147483647, %v1105_v10  ;;  %vm1111_vm9 = vweird.f32 %v1105_v10 }
 0x706   :  { %1621 = vrcp.f32 %v1125_v7 }
 0x707   :  { %v1118_v6 = vor.u32 1.1754944e-38, %v1117_v39  ;;  %vm1116_vm11 = vcmp.eq.f32.partialorder %v1115_v48, 8.507059e+37 }
 0x70b   :  { %v1620_v11 = vpop.eup %1619 }
 0x70c   :  { %v1622_v19 = vpop.eup %1621  ;;  %v1107_v22 = vmul.f32 %v1620_v11, %v1105_v10  ;;  %vm1112_vm8 = vweird.f32 %v1620_v11 }
 0x70d   :  { %v1127_v31 = vmul.f32 %v1622_v19, %v1125_v7  ;;  %vm1113_vm10 = vmor %vm1111_vm9, %vm1112_vm8  ;;  %vm1132_vm12 = vweird.f32 %v1622_v19 }
 0x70e   :  { %v1108_v30 = vsub.f32 1.0, %v1107_v22  ;;  %vm1133_vm14 = vmor %vm1131_vm13, %vm1132_vm12 }
 0x70f   :  { %v1128_v60 = vsub.f32 1.0, %v1127_v31 }
 0x710   :  { %v1109_v40 = vmul.f32 %v1620_v11, %v1108_v30 }
 0x711   :  { %v1129_v28 = vmul.f32 %v1622_v19, %v1128_v60 }
 0x712   :  { %v1110_v57 = vadd.f32 %v1620_v11, %v1109_v40 }
 0x713   :  { %v1130_v5 = vadd.f32 %v1622_v19, %v1129_v28  ;;  %v1495_v28 = vld [vmem:[%s2376_s0 + $0x84] sm:$0xff] }
 0x714   :  { %v1114_v45 = vsel %vm1113_vm10, %v1620_v11, %v1110_v57  ;;  %v1196_v11 = vunpack.c.l.bf16 %v1491_v0 }
 0x715   :  { %v1119_v25 = vsel %vm1116_vm11, %v1118_v6, %v1114_v45  ;;  %v1134_v20 = vsel %vm1133_vm14, %v1622_v19, %v1130_v5 }
 0x716   :  { %v1142_v27 = vmul.f32 %v1141_v8, %v1119_v25  ;;  %v1139_v41 = vsel %vm1136_vm15, %v1138_v37, %v1134_v20  ;;  %v1291_v20 = vunpack.c.h.bf16 %v1495_v28 }
 0x718   :  { %v1143_v32 = vadd.f32 %v1142_v27, %v1100_v24 }
 0x71a   :  { %1623 = vtanh.f32 %v1143_v32  ;;  %v1290_v32 = vunpack.c.l.bf16 %v1495_v28 }
 0x720   :  { %v1624_v38 = vpop.eup %1623 }
 0x721   :  { %v1145_v46 = vsub.f32 %v2317_v12, %v1624_v38 }
 0x723   :  { %v1146_v42 = vmul.f32 %v1145_v46, %v1139_v41 }
 0x725   :  { %v1147_v43 = vadd.f32 %v1624_v38, %v1146_v42 }
 0x727   :  { %1489 = vst [vmem:[%s2377_s5 + $0x48] sm:$0xff] %v1147_v43  ;;  %v2341_v51 = vmul.f32 %v2189_v47, %v1147_v43 }
 0x729   :  { %v1151_v34 = vpack.c.bf16 %v2341_v51, %v2341_v51 }
 0x72b   :  { %1160 = vmatmul.bf16.vlgmr.msrb.gmra.mxu2 %v1151_v34  ;;  %1173 = vmatmul.bf16.vlgmr.msrb.gmra.mxu3 %v1151_v34 }
 0x72c   :  { %1186 = vmatmul.bf16.vlgmr.msra.gmra.mxu0 %v1151_v34 }
 0x7a9   :  { %v1187_v55 = vpop.f32.mrf.mxu0 }
 0x7aa   :  { %v1237_v7 = vadd.f32 %v2229_v59, %v1187_v55 }
 0x7ae   :  { %v1161_v52 = vpop.f32.mrf.mxu2  ;;  %v1174_v58 = vpop.f32.mrf.mxu3 }
 0x7af   :  { %v1197_v61 = vadd.f32 %v1194_v50, %v1161_v52  ;;  %v1217_v63 = vadd.f32 %v1195_v56, %v1174_v58 }
 0x7b1   :  { %v1492_v1 = vmul.f32 -1.442695, %v1197_v61  ;;  %v1493_v29 = vmul.f32 -1.442695, %v1217_v63  ;;  %v1189_v2 = vpop.f32.mrf.mxu0  ;;  %v1496_v61 = vld [vmem:[%s2376_s0 + $0x8c] sm:$0xf] }
 0x7b3   :  { %1625 = vpow2.f32 %v1492_v1 }
 0x7b4   :  { %1627 = vpow2.f32 %v1493_v29 }
 0x7b6   :  { %v1163_v4 = vpop.f32.mrf.mxu2  ;;  %v1176_v12 = vpop.f32.mrf.mxu3 }
 0x7b7   :  { %v1292_v12 = vunpack.c.l.bf16 %v1496_v61 }
 0x7b9   :  { %v1626_v13 = vpop.eup %1625 }
 0x7ba   :  { %v1628_v14 = vpop.eup %1627  ;;  %v1201_v16 = vadd.f32 1.0, %v1626_v13 }
 0x7bb   :  { %v1221_v18 = vadd.f32 1.0, %v1628_v14 }
 0x7bc   :  { %1629 = vrcp.f32 %v1201_v16  ;;  %v1213_v62 = vand.u32 2147483648, %v1201_v16  ;;  %v1211_v23 = vand.u32 2147483647, %v1201_v16  ;;  %vm1207_vm1 = vweird.f32 %v1201_v16 }
 0x7bd   :  { %1631 = vrcp.f32 %v1221_v18  ;;  %v1233_v40 = vand.u32 2147483648, %v1221_v18  ;;  %vm1227_vm5 = vweird.f32 %v1221_v18  ;;  %v1231_v48 = vand.u32 2147483647, %v1221_v18 }
 0x7be   :  { %v1214_v3 = vor.u32 1.1754944e-38, %v1213_v62  ;;  %vm1212_vm3 = vcmp.eq.f32.partialorder %v1211_v23, 8.507059e+37 }
 0x7bf   :  { %v1234_v60 = vor.u32 1.1754944e-38, %v1233_v40  ;;  %vm1232_vm7 = vcmp.eq.f32.partialorder %v1231_v48, 8.507059e+37 }
 0x7c2   :  { %v1630_v17 = vpop.eup %1629 }
 0x7c3   :  { %v1632_v26 = vpop.eup %1631  ;;  %v1203_v21 = vmul.f32 %v1630_v17, %v1201_v16  ;;  %vm1208_vm0 = vweird.f32 %v1630_v17 }
 0x7c4   :  { %v1223_v44 = vmul.f32 %v1632_v26, %v1221_v18  ;;  %vm1209_vm2 = vmor %vm1207_vm1, %vm1208_vm0  ;;  %vm1228_vm4 = vweird.f32 %v1632_v26 }
 0x7c5   :  { %v1204_v35 = vsub.f32 1.0, %v1203_v21  ;;  %vm1229_vm6 = vmor %vm1227_vm5, %vm1228_vm4 }
 0x7c6   :  { %v1224_v15 = vsub.f32 1.0, %v1223_v44 }
 0x7c7   :  { %v1205_v53 = vmul.f32 %v1630_v17, %v1204_v35 }
 0x7c8   :  { %v1225_v30 = vmul.f32 %v1632_v26, %v1224_v15 }
 0x7c9   :  { %v1206_v9 = vadd.f32 %v1630_v17, %v1205_v53 }
 0x7ca   :  { %v1226_v39 = vadd.f32 %v1632_v26, %v1225_v30 }
 0x7cb   :  { %v1210_v10 = vsel %vm1209_vm2, %v1630_v17, %v1206_v9 }
 0x7cc   :  { %v1215_v19 = vsel %vm1212_vm3, %v1214_v3, %v1210_v10  ;;  %v1230_v49 = vsel %vm1229_vm6, %v1632_v26, %v1226_v39 }
 0x7cd   :  { %v1238_v22 = vmul.f32 %v1237_v7, %v1215_v19  ;;  %v1235_v8 = vsel %vm1232_vm7, %v1234_v60, %v1230_v49 }
 0x7cf   :  { %v1239_v31 = vadd.f32 %v1238_v22, %v1196_v11 }
 0x7d1   :  { %1633 = vtanh.f32 %v1239_v31 }
 0x7d7   :  { %v1634_v57 = vpop.eup %1633 }
 0x7d8   :  { %v1241_v6 = vsub.f32 %v2341_v51, %v1634_v57 }
 0x7da   :  { %v1242_v45 = vmul.f32 %v1241_v6, %v1235_v8 }
 0x7dc   :  { %v1243_v24 = vadd.f32 %v1634_v57, %v1242_v45 }
 0x7de   :  { %1494 = vst [vmem:[%s2377_s5 + $0x50] sm:$0xff] %v1243_v24  ;;  %v2357_v25 = vmul.f32 %v2189_v47, %v1243_v24 }
 0x7e0   :  { %v1247_v27 = vpack.c.bf16 %v2357_v25, %v2357_v25 }
 0x7e2   :  { %1256 = vmatmul.bf16.vlgmr.msra.gmra.mxu1 %v1247_v27  ;;  %1269 = vmatmul.bf16.vlgmr.msra.gmra.mxu2 %v1247_v27 }
 0x7e3   :  { %1282 = vmatmul.bf16.vlgmr.msra.gmra.mxu3 %v1247_v27 }
 0x85f   :  { %v1257_v5 = vpop.f32.mrf.mxu1 }
 0x860   :  { %v1293_v33 = vadd.f32 %v1290_v32, %v1257_v5 }
 0x862   :  { %v1497_v36 = vmul.f32 -1.442695, %v1293_v33 }
 0x864   :  { %1635 = vpow2.f32 %v1497_v36 }
 0x865   :  { %v1270_v38 = vpop.f32.mrf.mxu2 }
 0x866   :  { %v1313_v37 = vadd.f32 %v1291_v20, %v1270_v38  ;;  %v1283_v47 = vpop.f32.mrf.mxu3 }
 0x867   :  { %v1259_v46 = vpop.f32.mrf.mxu1  ;;  %v1333_v18 = vadd.f32 %v2229_v59, %v1283_v47 }
 0x868   :  { %v1498_v41 = vmul.f32 -1.442695, %v1313_v37 }
 0x86a   :  { %v1636_v42 = vpop.eup %1635  ;;  %1637 = vpow2.f32 %v1498_v41 }
 0x86b   :  { %v1297_v43 = vadd.f32 1.0, %v1636_v42 }
 0x86d   :  { %1639 = vrcp.f32 %v1297_v43  ;;  %v1272_v51 = vpop.f32.mrf.mxu2  ;;  %v1309_v58 = vand.u32 2147483648, %v1297_v43  ;;  %v1307_v1 = vand.u32 2147483647, %v1297_v43  ;;  %vm1303_vm9 = vweird.f32 %v1297_v43 }
 0x86e   :  { %v1285_v34 = vpop.f32.mrf.mxu3 }
 0x86f   :  { %v1310_v13 = vor.u32 1.1754944e-38, %v1309_v58  ;;  %vm1308_vm11 = vcmp.eq.f32.partialorder %v1307_v1, 8.507059e+37 }
 0x870   :  { %v1638_v54 = vpop.eup %1637 }
 0x871   :  { %v1317_v55 = vadd.f32 1.0, %v1638_v54 }
 0x873   :  { %v1640_v50 = vpop.eup %1639  ;;  %1641 = vrcp.f32 %v1317_v55  ;;  %v1329_v44 = vand.u32 2147483648, %v1317_v55  ;;  %vm1323_vm13 = vweird.f32 %v1317_v55  ;;  %v1327_v53 = vand.u32 2147483647, %v1317_v55 }
 0x874   :  { %v1299_v56 = vmul.f32 %v1640_v50, %v1297_v43  ;;  %vm1304_vm8 = vweird.f32 %v1640_v50 }
 0x875   :  { %vm1305_vm10 = vmor %vm1303_vm9, %vm1304_vm8  ;;  %v1330_v9 = vor.u32 1.1754944e-38, %v1329_v44  ;;  %vm1328_vm15 = vcmp.eq.f32.partialorder %v1327_v53, 8.507059e+37 }
 0x876   :  { %v1300_v52 = vsub.f32 1.0, %v1299_v56 }
 0x878   :  { %v1301_v63 = vmul.f32 %v1640_v50, %v1300_v52 }
 0x879   :  { %v1642_v29 = vpop.eup %1641 }
 0x87a   :  { %v1319_v2 = vmul.f32 %v1642_v29, %v1317_v55  ;;  %v1302_v4 = vadd.f32 %v1640_v50, %v1301_v63  ;;  %vm1324_vm12 = vweird.f32 %v1642_v29 }
 0x87b   :  { %vm1325_vm14 = vmor %vm1323_vm13, %vm1324_vm12 }
 0x87c   :  { %v1320_v14 = vsub.f32 1.0, %v1319_v2  ;;  %v1306_v16 = vsel %vm1305_vm10, %v1640_v50, %v1302_v4 }
 0x87d   :  { %v1311_v17 = vsel %vm1308_vm11, %v1310_v13, %v1306_v16 }
 0x87e   :  { %v1334_v26 = vmul.f32 %v1333_v18, %v1311_v17  ;;  %v1321_v21 = vmul.f32 %v1642_v29, %v1320_v14 }
 0x880   :  { %v1335_v35 = vadd.f32 %v1334_v26, %v1292_v12  ;;  %v1322_v62 = vadd.f32 %v1642_v29, %v1321_v21 }
 0x882   :  { %1643 = vtanh.f32 %v1335_v35  ;;  %v1326_v23 = vsel %vm1325_vm14, %v1642_v29, %v1322_v62 }
 0x883   :  { %v1331_v15 = vsel %vm1328_vm15, %v1330_v9, %v1326_v23 }
 0x888   :  { %v1644_v0 = vpop.eup %1643 }
 0x889   :  { %v1337_v3 = vsub.f32 %v2357_v25, %v1644_v0 }
 0x88b   :  { %v1338_v7 = vmul.f32 %v1337_v3, %v1331_v15 }
 0x88d   :  { %v1339_v59 = vadd.f32 %v1644_v0, %v1338_v7 }
 0x88f   :  { %1499 = vst [vmem:[%s2377_s5 + $0x58] sm:$0xff] %v1339_v59 }

</bundles_post_ra>
